<compile_context>
chip_gen: v7x
topology: tpu7x:2x2x1
jax: 0.10.0
libtpu: 0.0.40
codegen_flags: <defaults>
</compile_context>

<pallas_src>
import numpy as np
import jax
import jax.numpy as jnp
from jax.experimental import pallas as pl
from jax.experimental.pallas import tpu as pltpu

BN_EPS = 1e-5

DOWN_CHANNELS = [(1, 4), (4, 16), (16, 32), (32, 64)]
UP_CHANNELS = [(64, 32), (32, 16), (16, 4), (4, 4)]


# ----------------------------------------------------------------------------
# Single fused Pallas kernel: 4 downs + 4 ups + outconv, all resident in VMEM.
# refs = (x, [L, Rcat, S_contract, S_expand, gamma_beta] x 8, R_out, b_out, o)
# ----------------------------------------------------------------------------
def make_fused_kernel(meta):
    def kernel(*refs):
        o_ref = refs[-1]
        x = refs[0][...]                                  # (N*H, W*Cin) f32
        idx = 1
        for lm in meta:
            l_ref, r_ref, sc_ref, se_ref, gb_ref = refs[idx:idx + 5]
            idx += 5
            x_b = x.astype(jnp.bfloat16)                  # MXU operand only

            if lm["kind"] == "down":
                # 3 row-selection taps -> lane concat -> ONE wide-K matmul.
                lx = [jnp.dot(l_ref[t], x_b,
                              preferred_element_type=jnp.float32
                              ).astype(jnp.bfloat16)
                      for t in range(lm["taps"])]
                lxcat = jnp.concatenate(lx, axis=1)       # (N*Ho, taps*W*Ci)
                y = jnp.dot(lxcat, r_ref[...],
                            preferred_element_type=jnp.float32)
            else:
                # Reversed contraction: X @ [R0 | R1] once (wide N), then the
                # two cheap even/odd row-scatter taps.
                w_all = jnp.dot(x_b, r_ref[...],
                                preferred_element_type=jnp.float32)
                woco = lm["woco"]
                w0 = w_all[:, :woco].astype(jnp.bfloat16)
                w1 = w_all[:, woco:].astype(jnp.bfloat16)
                y = (jnp.dot(l_ref[0], w0, preferred_element_type=jnp.float32)
                     + jnp.dot(l_ref[1], w1, preferred_element_type=jnp.float32))

            # BatchNorm (training-mode batch stats) + affine + ReLU — all f32.
            col_s = jnp.sum(y, axis=0, keepdims=True)        # (1, Wo*Co)
            col_sq = jnp.sum(y * y, axis=0, keepdims=True)   # (1, Wo*Co)
            stats = jnp.concatenate([col_s, col_sq], axis=0) # (2, Wo*Co)
            sums_c = jnp.dot(stats, sc_ref[...],
                             preferred_element_type=jnp.float32)  # (2, Co)
            inv_cnt = 1.0 / lm["count"]
            mean_c = sums_c[0:1] * inv_cnt
            ex2_c = sums_c[1:2] * inv_cnt
            var_c = jnp.maximum(ex2_c - mean_c * mean_c, 0.0)
            gb = gb_ref[...]
            scale_c = gb[0:1] * jax.lax.rsqrt(var_c + BN_EPS)
            shift_c = gb[1:2] - mean_c * scale_c
            ss = jnp.concatenate([scale_c, shift_c], axis=0)     # (2, Co)
            aff = jnp.dot(ss, se_ref[...],
                          preferred_element_type=jnp.float32)    # (2, Wo*Co)
            x = jnp.maximum(y * aff[0:1] + aff[1:2], 0.0)

        # outconv: 1x1 conv with bias, no BN / activation.
        rout_ref, bout_ref = refs[idx], refs[idx + 1]
        o_ref[...] = (jnp.dot(x.astype(jnp.bfloat16), rout_ref[...],
                              preferred_element_type=jnp.float32)
                      + bout_ref[...])
    return kernel


# ----------------------------------------------------------------------------
# Host-side, one-time construction of the dense selection/weight matrices.
# ----------------------------------------------------------------------------
def _down_ops(w, n, h, win):
    """Conv2d(ci,co,k=3,s=2,p=1,bias=False):  Y = [L0@X | L1@X | L2@X] @ Rcat."""
    co, ci = w.shape[0], w.shape[1]
    ho = (h - 1) // 2 + 1
    wo = (win - 1) // 2 + 1
    l = np.zeros((3, n * ho, n * h), np.float32)
    rcat = np.zeros((3 * win * ci, wo * co), np.float32)
    for ky in range(3):
        for b in range(n):
            for oh in range(ho):
                ih = 2 * oh + ky - 1
                if 0 <= ih < h:
                    l[ky, b * ho + oh, b * h + ih] = 1.0
        for kx in range(3):
            for ow in range(wo):
                iw = 2 * ow + kx - 1
                if 0 <= iw < win:
                    r0 = ky * win * ci + iw * ci
                    rcat[r0:r0 + ci, ow * co:(ow + 1) * co] = w[:, :, ky, kx].T
    return l, rcat, ho, wo


def _up_ops(w, n, hi, wi):
    """ConvTranspose2d(ci,co,k=2,s=2,bias=False): W = X @ [R0|R1]; Y = L0@W0 + L1@W1."""
    ci, co = w.shape[0], w.shape[1]
    ho, wo = 2 * hi, 2 * wi
    l = np.zeros((2, n * ho, n * hi), np.float32)
    rcat = np.zeros((wi * ci, 2 * wo * co), np.float32)
    for ty in range(2):
        for b in range(n):
            for ih in range(hi):
                l[ty, b * ho + 2 * ih + ty, b * hi + ih] = 1.0
        for tx in range(2):
            for iw in range(wi):
                c0 = ty * wo * co + (2 * iw + tx) * co
                rcat[iw * ci:(iw + 1) * ci, c0:c0 + co] = w[:, :, ty, tx]
    return l, rcat, ho, wo


def _s_mats(co, wo):
    """S (Wo*Co, Co): 0/1 channel-selection; used for BN stat fold & expand."""
    q = np.arange(wo * co)
    s = (q[:, None] % co == np.arange(co)[None, :]).astype(np.float32)
    return s, np.ascontiguousarray(s.T)


def _outc_r(w, win):
    """Conv2d(4,1,k=1,bias=True) weight as block-diagonal (win*ci, win*co)."""
    co, ci = w.shape[0], w.shape[1]
    r = np.zeros((win * ci, win * co), np.float32)
    for iw in range(win):
        r[iw * ci:(iw + 1) * ci, iw * co:(iw + 1) * co] = w[:, :, 0, 0].T
    return r


def prepare_operands(params, n, h, w):
    ops, meta = [], []
    flops = 0
    hh, ww = h, w
    for i, (ci, co) in enumerate(DOWN_CHANNELS):
        p = params[f"down{i + 1}"]
        l, rcat, ho, wo = _down_ops(np.asarray(p["w"], np.float32), n, hh, ww)
        sc, se = _s_mats(co, wo)
        gb = np.stack([np.asarray(p["gamma"], np.float32),
                       np.asarray(p["beta"], np.float32)])
        ops += [jnp.asarray(l, jnp.bfloat16), jnp.asarray(rcat, jnp.bfloat16),
                jnp.asarray(sc), jnp.asarray(se), jnp.asarray(gb)]
        meta.append(dict(kind="down", taps=3, woco=wo * co,
                         count=float(n * ho * wo)))
        flops += (2 * 3 * (n * ho) * (n * hh) * (ww * ci)
                  + 2 * (n * ho) * (3 * ww * ci) * (wo * co)
                  + 2 * 2 * (wo * co) * co + 2 * 2 * co * (wo * co))
        hh, ww = ho, wo
    for i, (ci, co) in enumerate(UP_CHANNELS):
        p = params[f"up{i + 1}"]
        l, rcat, ho, wo = _up_ops(np.asarray(p["w"], np.float32), n, hh, ww)
        sc, se = _s_mats(co, wo)
        gb = np.stack([np.asarray(p["gamma"], np.float32),
                       np.asarray(p["beta"], np.float32)])
        ops += [jnp.asarray(l, jnp.bfloat16), jnp.asarray(rcat, jnp.bfloat16),
                jnp.asarray(sc), jnp.asarray(se), jnp.asarray(gb)]
        meta.append(dict(kind="up", taps=2, woco=wo * co,
                         count=float(n * ho * wo)))
        flops += (2 * (n * hh) * (ww * ci) * (2 * wo * co)
                  + 2 * 2 * (n * ho) * (n * hh) * (wo * co)
                  + 2 * 2 * (wo * co) * co + 2 * 2 * co * (wo * co))
        hh, ww = ho, wo
    p = params["outc"]
    ci_o, co_o = 4, 1
    rout = _outc_r(np.asarray(p["w"], np.float32), ww)
    bout = np.tile(np.asarray(p["b"], np.float32), ww)[None, :]
    ops += [jnp.asarray(rout, jnp.bfloat16), jnp.asarray(bout)]
    flops += 2 * (n * hh) * (ww * ci_o) * (ww * co_o)

    out_rows, out_cols = n * hh, ww * co_o
    bytes_accessed = (4 * n * h * w + 4 * out_rows * out_cols
                      + sum(int(np.prod(o.shape)) * o.dtype.itemsize
                            for o in ops))
    cost = pl.CostEstimate(
        flops=int(flops),
        transcendentals=int(sum(c for _, c in DOWN_CHANNELS + UP_CHANNELS)),
        bytes_accessed=int(bytes_accessed))
    return ops, meta, (out_rows, out_cols), cost


# ----------------------------------------------------------------------------
# Parameters (fresh-init semantics: BN gamma=1, beta=0), PyTorch layouts.
# ----------------------------------------------------------------------------
def init_params(key):
    params = {}
    keys = iter(jax.random.split(key, 32))
    for i, (ci, co) in enumerate(DOWN_CHANNELS):
        w = jax.random.normal(next(keys), (co, ci, 3, 3), jnp.float32)
        w = w * (2.0 / (9.0 * ci)) ** 0.5
        params[f"down{i + 1}"] = dict(w=w,
                                      gamma=jnp.ones((co,), jnp.float32),
                                      beta=jnp.zeros((co,), jnp.float32))
    for i, (ci, co) in enumerate(UP_CHANNELS):
        w = jax.random.normal(next(keys), (ci, co, 2, 2), jnp.float32)
        w = w * (2.0 / (4.0 * ci)) ** 0.5
        params[f"up{i + 1}"] = dict(w=w,
                                    gamma=jnp.ones((co,), jnp.float32),
                                    beta=jnp.zeros((co,), jnp.float32))
    wo = jax.random.normal(next(keys), (1, 4, 1, 1), jnp.float32) * 0.5
    bo = jax.random.normal(next(keys), (1,), jnp.float32) * 0.1
    params["outc"] = dict(w=wo, b=bo)
    return params


# ----------------------------------------------------------------------------
# Forward pass: one pallas_call for the whole network.
# ----------------------------------------------------------------------------
def autoencoder_cba_forward(operands, meta, x_nchw, out_rows, out_cols, cost):
    n, _, h, w = x_nchw.shape
    x2d = x_nchw.astype(jnp.float32).reshape(n * h, w)   # Cin == 1
    vmem = pl.BlockSpec(memory_space=pltpu.MemorySpace.VMEM)
    out2d = pl.pallas_call(
        make_fused_kernel(meta),
        out_shape=jax.ShapeDtypeStruct((out_rows, out_cols), jnp.float32),
        in_specs=[vmem] * (1 + len(operands)),
        out_specs=vmem,
        cost_estimate=cost,
    )(x2d, *operands)
    return out2d.reshape(n, out_rows // n, out_cols)[:, None, :, :]


if __name__ == "__main__":
    key = jax.random.PRNGKey(0)
    k_x, k_p = jax.random.split(key)

    # batch=2, 1 channel, 32x32 spatial (4 stride-2 downs need spatial % 16 == 0)
    n, h, w = 2, 32, 32
    x = jax.random.normal(k_x, (n, 1, h, w), jnp.float32)

    params = init_params(k_p)
    # One-time host-side precompute (depends only on params / batch / size).
    operands, meta, (out_rows, out_cols), cost = prepare_operands(params, n, h, w)

    fwd = jax.jit(lambda ops, xx: autoencoder_cba_forward(
        ops, meta, xx, out_rows, out_cols, cost))
    out = jax.block_until_ready(fwd(operands, x))

    assert out.shape == (n, 1, h, w), out.shape
    assert out.dtype == jnp.float32
    assert bool(jnp.all(jnp.isfinite(out)))
    print("KERNEL_OK")
</pallas_src>

<mosaic_0001>
module attributes {stable_mosaic.version = 11 : i64} {
  func.func @kernel(%arg0: memref<64x32xf32, #tpu.memory_space<vmem>>, %arg1: memref<3x32x64xbf16, #tpu.memory_space<vmem>>, %arg2: memref<96x64xbf16, #tpu.memory_space<vmem>>, %arg3: memref<64x4xf32, #tpu.memory_space<vmem>>, %arg4: memref<4x64xf32, #tpu.memory_space<vmem>>, %arg5: memref<2x4xf32, #tpu.memory_space<vmem>>, %arg6: memref<3x16x32xbf16, #tpu.memory_space<vmem>>, %arg7: memref<192x128xbf16, #tpu.memory_space<vmem>>, %arg8: memref<128x16xf32, #tpu.memory_space<vmem>>, %arg9: memref<16x128xf32, #tpu.memory_space<vmem>>, %arg10: memref<2x16xf32, #tpu.memory_space<vmem>>, %arg11: memref<3x8x16xbf16, #tpu.memory_space<vmem>>, %arg12: memref<384x128xbf16, #tpu.memory_space<vmem>>, %arg13: memref<128x32xf32, #tpu.memory_space<vmem>>, %arg14: memref<32x128xf32, #tpu.memory_space<vmem>>, %arg15: memref<2x32xf32, #tpu.memory_space<vmem>>, %arg16: memref<3x4x8xbf16, #tpu.memory_space<vmem>>, %arg17: memref<384x128xbf16, #tpu.memory_space<vmem>>, %arg18: memref<128x64xf32, #tpu.memory_space<vmem>>, %arg19: memref<64x128xf32, #tpu.memory_space<vmem>>, %arg20: memref<2x64xf32, #tpu.memory_space<vmem>>, %arg21: memref<2x8x4xbf16, #tpu.memory_space<vmem>>, %arg22: memref<128x256xbf16, #tpu.memory_space<vmem>>, %arg23: memref<128x32xf32, #tpu.memory_space<vmem>>, %arg24: memref<32x128xf32, #tpu.memory_space<vmem>>, %arg25: memref<2x32xf32, #tpu.memory_space<vmem>>, %arg26: memref<2x16x8xbf16, #tpu.memory_space<vmem>>, %arg27: memref<128x256xbf16, #tpu.memory_space<vmem>>, %arg28: memref<128x16xf32, #tpu.memory_space<vmem>>, %arg29: memref<16x128xf32, #tpu.memory_space<vmem>>, %arg30: memref<2x16xf32, #tpu.memory_space<vmem>>, %arg31: memref<2x32x16xbf16, #tpu.memory_space<vmem>>, %arg32: memref<128x128xbf16, #tpu.memory_space<vmem>>, %arg33: memref<64x4xf32, #tpu.memory_space<vmem>>, %arg34: memref<4x64xf32, #tpu.memory_space<vmem>>, %arg35: memref<2x4xf32, #tpu.memory_space<vmem>>, %arg36: memref<2x64x32xbf16, #tpu.memory_space<vmem>>, %arg37: memref<64x256xbf16, #tpu.memory_space<vmem>>, %arg38: memref<128x4xf32, #tpu.memory_space<vmem>>, %arg39: memref<4x128xf32, #tpu.memory_space<vmem>>, %arg40: memref<2x4xf32, #tpu.memory_space<vmem>>, %arg41: memref<128x32xbf16, #tpu.memory_space<vmem>>, %arg42: memref<1x32xf32, #tpu.memory_space<vmem>>, %arg43: memref<64x32xf32, #tpu.memory_space<vmem>>) attributes {dimension_semantics = [], scalar_prefetch = 0 : i64, scratch_operands = 0 : i64, tpu.core_type = #tpu.core_type<tc>} {
    %c0 = arith.constant 0 : index
    %c0_0 = arith.constant 0 : index
    %0 = vector.load %arg0[%c0, %c0_0] : memref<64x32xf32, #tpu.memory_space<vmem>>, vector<64x32xf32>
    %1 = arith.truncf %0 : vector<64x32xf32> to vector<64x32xbf16>
    %c0_1 = arith.constant 0 : index
    %c0_2 = arith.constant 0 : index
    %c0_3 = arith.constant 0 : index
    %2 = vector.load %arg1[%c0_1, %c0_2, %c0_3] : memref<3x32x64xbf16, #tpu.memory_space<vmem>>, vector<1x32x64xbf16>
    %3 = vector.shape_cast %2 : vector<1x32x64xbf16> to vector<32x64xbf16>
    %cst = arith.constant dense<0.000000e+00> : vector<32x32xf32>
    %4 = tpu.matmul %3, %1, %cst {dimension_numbers = #tpu.dot_dimension_numbers<[1], [0], [0], [1], [0, 0, 1, 1], [], []>} : vector<32x64xbf16>, vector<64x32xbf16>, vector<32x32xf32> -> vector<32x32xf32>
    %5 = arith.truncf %4 : vector<32x32xf32> to vector<32x32xbf16>
    %c1 = arith.constant 1 : index
    %c0_4 = arith.constant 0 : index
    %c0_5 = arith.constant 0 : index
    %6 = vector.load %arg1[%c1, %c0_4, %c0_5] : memref<3x32x64xbf16, #tpu.memory_space<vmem>>, vector<1x32x64xbf16>
    %7 = vector.shape_cast %6 : vector<1x32x64xbf16> to vector<32x64xbf16>
    %cst_6 = arith.constant dense<0.000000e+00> : vector<32x32xf32>
    %8 = tpu.matmul %7, %1, %cst_6 {dimension_numbers = #tpu.dot_dimension_numbers<[1], [0], [0], [1], [0, 0, 1, 1], [], []>} : vector<32x64xbf16>, vector<64x32xbf16>, vector<32x32xf32> -> vector<32x32xf32>
    %9 = arith.truncf %8 : vector<32x32xf32> to vector<32x32xbf16>
    %c2 = arith.constant 2 : index
    %c0_7 = arith.constant 0 : index
    %c0_8 = arith.constant 0 : index
    %10 = vector.load %arg1[%c2, %c0_7, %c0_8] : memref<3x32x64xbf16, #tpu.memory_space<vmem>>, vector<1x32x64xbf16>
    %11 = vector.shape_cast %10 : vector<1x32x64xbf16> to vector<32x64xbf16>
    %cst_9 = arith.constant dense<0.000000e+00> : vector<32x32xf32>
    %12 = tpu.matmul %11, %1, %cst_9 {dimension_numbers = #tpu.dot_dimension_numbers<[1], [0], [0], [1], [0, 0, 1, 1], [], []>} : vector<32x64xbf16>, vector<64x32xbf16>, vector<32x32xf32> -> vector<32x32xf32>
    %13 = arith.truncf %12 : vector<32x32xf32> to vector<32x32xbf16>
    %14 = tpu.concatenate %5, %9, %13 in 1 : vector<32x32xbf16>, vector<32x32xbf16>, vector<32x32xbf16> -> vector<32x96xbf16>
    %c0_10 = arith.constant 0 : index
    %c0_11 = arith.constant 0 : index
    %15 = vector.load %arg2[%c0_10, %c0_11] : memref<96x64xbf16, #tpu.memory_space<vmem>>, vector<96x64xbf16>
    %cst_12 = arith.constant dense<0.000000e+00> : vector<32x64xf32>
    %16 = tpu.matmul %14, %15, %cst_12 {dimension_numbers = #tpu.dot_dimension_numbers<[1], [0], [0], [1], [0, 0, 1, 1], [], []>} : vector<32x96xbf16>, vector<96x64xbf16>, vector<32x64xf32> -> vector<32x64xf32>
    %cst_13 = arith.constant dense<0.000000e+00> : vector<64xf32>
    %17 = vector.multi_reduction <add>, %16, %cst_13 [0] : vector<32x64xf32> to vector<64xf32>
    %18 = vector.shape_cast %17 : vector<64xf32> to vector<1x64xf32>
    %19 = arith.mulf %16, %16 : vector<32x64xf32>
    %cst_14 = arith.constant dense<0.000000e+00> : vector<64xf32>
    %20 = vector.multi_reduction <add>, %19, %cst_14 [0] : vector<32x64xf32> to vector<64xf32>
    %21 = vector.shape_cast %20 : vector<64xf32> to vector<1x64xf32>
    %22 = tpu.concatenate %18, %21 in 0 : vector<1x64xf32>, vector<1x64xf32> -> vector<2x64xf32>
    %c0_15 = arith.constant 0 : index
    %c0_16 = arith.constant 0 : index
    %23 = vector.load %arg3[%c0_15, %c0_16] : memref<64x4xf32, #tpu.memory_space<vmem>>, vector<64x4xf32>
    %cst_17 = arith.constant dense<0.000000e+00> : vector<2x4xf32>
    %24 = tpu.matmul %22, %23, %cst_17 {dimension_numbers = #tpu.dot_dimension_numbers<[1], [0], [0], [1], [0, 0, 1, 1], [], []>} : vector<2x64xf32>, vector<64x4xf32>, vector<2x4xf32> -> vector<2x4xf32>
    %25 = vector.extract_strided_slice %24 {offsets = [0, 0], sizes = [1, 4], strides = [1, 1]} : vector<2x4xf32> to vector<1x4xf32>
    %cst_18 = arith.constant 0.001953125 : f32
    %26 = vector.broadcast %cst_18 : f32 to vector<1x4xf32>
    %27 = arith.mulf %25, %26 : vector<1x4xf32>
    %28 = vector.extract_strided_slice %24 {offsets = [1, 0], sizes = [1, 4], strides = [1, 1]} : vector<2x4xf32> to vector<1x4xf32>
    %cst_19 = arith.constant 0.001953125 : f32
    %29 = vector.broadcast %cst_19 : f32 to vector<1x4xf32>
    %30 = arith.mulf %28, %29 : vector<1x4xf32>
    %31 = arith.mulf %27, %27 : vector<1x4xf32>
    %32 = arith.subf %30, %31 : vector<1x4xf32>
    %cst_20 = arith.constant 0.000000e+00 : f32
    %33 = vector.broadcast %cst_20 : f32 to vector<1x4xf32>
    %34 = arith.maximumf %32, %33 : vector<1x4xf32>
    %c0_21 = arith.constant 0 : index
    %c0_22 = arith.constant 0 : index
    %35 = vector.load %arg5[%c0_21, %c0_22] : memref<2x4xf32, #tpu.memory_space<vmem>>, vector<2x4xf32>
    %36 = vector.extract_strided_slice %35 {offsets = [0, 0], sizes = [1, 4], strides = [1, 1]} : vector<2x4xf32> to vector<1x4xf32>
    %cst_23 = arith.constant 9.99999974E-6 : f32
    %37 = vector.broadcast %cst_23 : f32 to vector<1x4xf32>
    %38 = arith.addf %34, %37 : vector<1x4xf32>
    %39 = math.rsqrt %38 : vector<1x4xf32>
    %40 = arith.mulf %36, %39 : vector<1x4xf32>
    %41 = vector.extract_strided_slice %35 {offsets = [1, 0], sizes = [1, 4], strides = [1, 1]} : vector<2x4xf32> to vector<1x4xf32>
    %42 = arith.mulf %27, %40 : vector<1x4xf32>
    %43 = arith.subf %41, %42 : vector<1x4xf32>
    %44 = tpu.concatenate %40, %43 in 0 : vector<1x4xf32>, vector<1x4xf32> -> vector<2x4xf32>
    %c0_24 = arith.constant 0 : index
    %c0_25 = arith.constant 0 : index
    %45 = vector.load %arg4[%c0_24, %c0_25] : memref<4x64xf32, #tpu.memory_space<vmem>>, vector<4x64xf32>
    %cst_26 = arith.constant dense<0.000000e+00> : vector<2x64xf32>
    %46 = tpu.matmul %44, %45, %cst_26 {dimension_numbers = #tpu.dot_dimension_numbers<[1], [0], [0], [1], [0, 0, 1, 1], [], []>} : vector<2x4xf32>, vector<4x64xf32>, vector<2x64xf32> -> vector<2x64xf32>
    %47 = vector.extract_strided_slice %46 {offsets = [0, 0], sizes = [1, 64], strides = [1, 1]} : vector<2x64xf32> to vector<1x64xf32>
    %48 = vector.broadcast %47 : vector<1x64xf32> to vector<32x64xf32>
    %49 = arith.mulf %16, %48 : vector<32x64xf32>
    %50 = vector.extract_strided_slice %46 {offsets = [1, 0], sizes = [1, 64], strides = [1, 1]} : vector<2x64xf32> to vector<1x64xf32>
    %51 = vector.broadcast %50 : vector<1x64xf32> to vector<32x64xf32>
    %52 = arith.addf %49, %51 : vector<32x64xf32>
    %cst_27 = arith.constant 0.000000e+00 : f32
    %53 = vector.broadcast %cst_27 : f32 to vector<32x64xf32>
    %54 = arith.maximumf %52, %53 : vector<32x64xf32>
    %55 = arith.truncf %54 : vector<32x64xf32> to vector<32x64xbf16>
    %c0_28 = arith.constant 0 : index
    %c0_29 = arith.constant 0 : index
    %c0_30 = arith.constant 0 : index
    %56 = vector.load %arg6[%c0_28, %c0_29, %c0_30] : memref<3x16x32xbf16, #tpu.memory_space<vmem>>, vector<1x16x32xbf16>
    %57 = vector.shape_cast %56 : vector<1x16x32xbf16> to vector<16x32xbf16>
    %cst_31 = arith.constant dense<0.000000e+00> : vector<16x64xf32>
    %58 = tpu.matmul %57, %55, %cst_31 {dimension_numbers = #tpu.dot_dimension_numbers<[1], [0], [0], [1], [0, 0, 1, 1], [], []>} : vector<16x32xbf16>, vector<32x64xbf16>, vector<16x64xf32> -> vector<16x64xf32>
    %59 = arith.truncf %58 : vector<16x64xf32> to vector<16x64xbf16>
    %c1_32 = arith.constant 1 : index
    %c0_33 = arith.constant 0 : index
    %c0_34 = arith.constant 0 : index
    %60 = vector.load %arg6[%c1_32, %c0_33, %c0_34] : memref<3x16x32xbf16, #tpu.memory_space<vmem>>, vector<1x16x32xbf16>
    %61 = vector.shape_cast %60 : vector<1x16x32xbf16> to vector<16x32xbf16>
    %cst_35 = arith.constant dense<0.000000e+00> : vector<16x64xf32>
    %62 = tpu.matmul %61, %55, %cst_35 {dimension_numbers = #tpu.dot_dimension_numbers<[1], [0], [0], [1], [0, 0, 1, 1], [], []>} : vector<16x32xbf16>, vector<32x64xbf16>, vector<16x64xf32> -> vector<16x64xf32>
    %63 = arith.truncf %62 : vector<16x64xf32> to vector<16x64xbf16>
    %c2_36 = arith.constant 2 : index
    %c0_37 = arith.constant 0 : index
    %c0_38 = arith.constant 0 : index
    %64 = vector.load %arg6[%c2_36, %c0_37, %c0_38] : memref<3x16x32xbf16, #tpu.memory_space<vmem>>, vector<1x16x32xbf16>
    %65 = vector.shape_cast %64 : vector<1x16x32xbf16> to vector<16x32xbf16>
    %cst_39 = arith.constant dense<0.000000e+00> : vector<16x64xf32>
    %66 = tpu.matmul %65, %55, %cst_39 {dimension_numbers = #tpu.dot_dimension_numbers<[1], [0], [0], [1], [0, 0, 1, 1], [], []>} : vector<16x32xbf16>, vector<32x64xbf16>, vector<16x64xf32> -> vector<16x64xf32>
    %67 = arith.truncf %66 : vector<16x64xf32> to vector<16x64xbf16>
    %68 = tpu.concatenate %59, %63, %67 in 1 : vector<16x64xbf16>, vector<16x64xbf16>, vector<16x64xbf16> -> vector<16x192xbf16>
    %c0_40 = arith.constant 0 : index
    %c0_41 = arith.constant 0 : index
    %69 = vector.load %arg7[%c0_40, %c0_41] : memref<192x128xbf16, #tpu.memory_space<vmem>>, vector<192x128xbf16>
    %cst_42 = arith.constant dense<0.000000e+00> : vector<16x128xf32>
    %70 = tpu.matmul %68, %69, %cst_42 {dimension_numbers = #tpu.dot_dimension_numbers<[1], [0], [0], [1], [0, 0, 1, 1], [], []>} : vector<16x192xbf16>, vector<192x128xbf16>, vector<16x128xf32> -> vector<16x128xf32>
    %cst_43 = arith.constant dense<0.000000e+00> : vector<128xf32>
    %71 = vector.multi_reduction <add>, %70, %cst_43 [0] : vector<16x128xf32> to vector<128xf32>
    %72 = vector.shape_cast %71 : vector<128xf32> to vector<1x128xf32>
    %73 = arith.mulf %70, %70 : vector<16x128xf32>
    %cst_44 = arith.constant dense<0.000000e+00> : vector<128xf32>
    %74 = vector.multi_reduction <add>, %73, %cst_44 [0] : vector<16x128xf32> to vector<128xf32>
    %75 = vector.shape_cast %74 : vector<128xf32> to vector<1x128xf32>
    %76 = tpu.concatenate %72, %75 in 0 : vector<1x128xf32>, vector<1x128xf32> -> vector<2x128xf32>
    %c0_45 = arith.constant 0 : index
    %c0_46 = arith.constant 0 : index
    %77 = vector.load %arg8[%c0_45, %c0_46] : memref<128x16xf32, #tpu.memory_space<vmem>>, vector<128x16xf32>
    %cst_47 = arith.constant dense<0.000000e+00> : vector<2x16xf32>
    %78 = tpu.matmul %76, %77, %cst_47 {dimension_numbers = #tpu.dot_dimension_numbers<[1], [0], [0], [1], [0, 0, 1, 1], [], []>} : vector<2x128xf32>, vector<128x16xf32>, vector<2x16xf32> -> vector<2x16xf32>
    %79 = vector.extract_strided_slice %78 {offsets = [0, 0], sizes = [1, 16], strides = [1, 1]} : vector<2x16xf32> to vector<1x16xf32>
    %cst_48 = arith.constant 7.812500e-03 : f32
    %80 = vector.broadcast %cst_48 : f32 to vector<1x16xf32>
    %81 = arith.mulf %79, %80 : vector<1x16xf32>
    %82 = vector.extract_strided_slice %78 {offsets = [1, 0], sizes = [1, 16], strides = [1, 1]} : vector<2x16xf32> to vector<1x16xf32>
    %cst_49 = arith.constant 7.812500e-03 : f32
    %83 = vector.broadcast %cst_49 : f32 to vector<1x16xf32>
    %84 = arith.mulf %82, %83 : vector<1x16xf32>
    %85 = arith.mulf %81, %81 : vector<1x16xf32>
    %86 = arith.subf %84, %85 : vector<1x16xf32>
    %cst_50 = arith.constant 0.000000e+00 : f32
    %87 = vector.broadcast %cst_50 : f32 to vector<1x16xf32>
    %88 = arith.maximumf %86, %87 : vector<1x16xf32>
    %c0_51 = arith.constant 0 : index
    %c0_52 = arith.constant 0 : index
    %89 = vector.load %arg10[%c0_51, %c0_52] : memref<2x16xf32, #tpu.memory_space<vmem>>, vector<2x16xf32>
    %90 = vector.extract_strided_slice %89 {offsets = [0, 0], sizes = [1, 16], strides = [1, 1]} : vector<2x16xf32> to vector<1x16xf32>
    %cst_53 = arith.constant 9.99999974E-6 : f32
    %91 = vector.broadcast %cst_53 : f32 to vector<1x16xf32>
    %92 = arith.addf %88, %91 : vector<1x16xf32>
    %93 = math.rsqrt %92 : vector<1x16xf32>
    %94 = arith.mulf %90, %93 : vector<1x16xf32>
    %95 = vector.extract_strided_slice %89 {offsets = [1, 0], sizes = [1, 16], strides = [1, 1]} : vector<2x16xf32> to vector<1x16xf32>
    %96 = arith.mulf %81, %94 : vector<1x16xf32>
    %97 = arith.subf %95, %96 : vector<1x16xf32>
    %98 = tpu.concatenate %94, %97 in 0 : vector<1x16xf32>, vector<1x16xf32> -> vector<2x16xf32>
    %c0_54 = arith.constant 0 : index
    %c0_55 = arith.constant 0 : index
    %99 = vector.load %arg9[%c0_54, %c0_55] : memref<16x128xf32, #tpu.memory_space<vmem>>, vector<16x128xf32>
    %cst_56 = arith.constant dense<0.000000e+00> : vector<2x128xf32>
    %100 = tpu.matmul %98, %99, %cst_56 {dimension_numbers = #tpu.dot_dimension_numbers<[1], [0], [0], [1], [0, 0, 1, 1], [], []>} : vector<2x16xf32>, vector<16x128xf32>, vector<2x128xf32> -> vector<2x128xf32>
    %101 = vector.extract_strided_slice %100 {offsets = [0, 0], sizes = [1, 128], strides = [1, 1]} : vector<2x128xf32> to vector<1x128xf32>
    %102 = vector.broadcast %101 : vector<1x128xf32> to vector<16x128xf32>
    %103 = arith.mulf %70, %102 : vector<16x128xf32>
    %104 = vector.extract_strided_slice %100 {offsets = [1, 0], sizes = [1, 128], strides = [1, 1]} : vector<2x128xf32> to vector<1x128xf32>
    %105 = vector.broadcast %104 : vector<1x128xf32> to vector<16x128xf32>
    %106 = arith.addf %103, %105 : vector<16x128xf32>
    %cst_57 = arith.constant 0.000000e+00 : f32
    %107 = vector.broadcast %cst_57 : f32 to vector<16x128xf32>
    %108 = arith.maximumf %106, %107 : vector<16x128xf32>
    %109 = arith.truncf %108 : vector<16x128xf32> to vector<16x128xbf16>
    %c0_58 = arith.constant 0 : index
    %c0_59 = arith.constant 0 : index
    %c0_60 = arith.constant 0 : index
    %110 = vector.load %arg11[%c0_58, %c0_59, %c0_60] : memref<3x8x16xbf16, #tpu.memory_space<vmem>>, vector<1x8x16xbf16>
    %111 = vector.shape_cast %110 : vector<1x8x16xbf16> to vector<8x16xbf16>
    %cst_61 = arith.constant dense<0.000000e+00> : vector<8x128xf32>
    %112 = tpu.matmul %111, %109, %cst_61 {dimension_numbers = #tpu.dot_dimension_numbers<[1], [0], [0], [1], [0, 0, 1, 1], [], []>} : vector<8x16xbf16>, vector<16x128xbf16>, vector<8x128xf32> -> vector<8x128xf32>
    %113 = arith.truncf %112 : vector<8x128xf32> to vector<8x128xbf16>
    %c1_62 = arith.constant 1 : index
    %c0_63 = arith.constant 0 : index
    %c0_64 = arith.constant 0 : index
    %114 = vector.load %arg11[%c1_62, %c0_63, %c0_64] : memref<3x8x16xbf16, #tpu.memory_space<vmem>>, vector<1x8x16xbf16>
    %115 = vector.shape_cast %114 : vector<1x8x16xbf16> to vector<8x16xbf16>
    %cst_65 = arith.constant dense<0.000000e+00> : vector<8x128xf32>
    %116 = tpu.matmul %115, %109, %cst_65 {dimension_numbers = #tpu.dot_dimension_numbers<[1], [0], [0], [1], [0, 0, 1, 1], [], []>} : vector<8x16xbf16>, vector<16x128xbf16>, vector<8x128xf32> -> vector<8x128xf32>
    %117 = arith.truncf %116 : vector<8x128xf32> to vector<8x128xbf16>
    %c2_66 = arith.constant 2 : index
    %c0_67 = arith.constant 0 : index
    %c0_68 = arith.constant 0 : index
    %118 = vector.load %arg11[%c2_66, %c0_67, %c0_68] : memref<3x8x16xbf16, #tpu.memory_space<vmem>>, vector<1x8x16xbf16>
    %119 = vector.shape_cast %118 : vector<1x8x16xbf16> to vector<8x16xbf16>
    %cst_69 = arith.constant dense<0.000000e+00> : vector<8x128xf32>
    %120 = tpu.matmul %119, %109, %cst_69 {dimension_numbers = #tpu.dot_dimension_numbers<[1], [0], [0], [1], [0, 0, 1, 1], [], []>} : vector<8x16xbf16>, vector<16x128xbf16>, vector<8x128xf32> -> vector<8x128xf32>
    %121 = arith.truncf %120 : vector<8x128xf32> to vector<8x128xbf16>
    %122 = tpu.concatenate %113, %117, %121 in 1 : vector<8x128xbf16>, vector<8x128xbf16>, vector<8x128xbf16> -> vector<8x384xbf16>
    %c0_70 = arith.constant 0 : index
    %c0_71 = arith.constant 0 : index
    %123 = vector.load %arg12[%c0_70, %c0_71] : memref<384x128xbf16, #tpu.memory_space<vmem>>, vector<384x128xbf16>
    %cst_72 = arith.constant dense<0.000000e+00> : vector<8x128xf32>
    %124 = tpu.matmul %122, %123, %cst_72 {dimension_numbers = #tpu.dot_dimension_numbers<[1], [0], [0], [1], [0, 0, 1, 1], [], []>} : vector<8x384xbf16>, vector<384x128xbf16>, vector<8x128xf32> -> vector<8x128xf32>
    %cst_73 = arith.constant dense<0.000000e+00> : vector<128xf32>
    %125 = vector.multi_reduction <add>, %124, %cst_73 [0] : vector<8x128xf32> to vector<128xf32>
    %126 = vector.shape_cast %125 : vector<128xf32> to vector<1x128xf32>
    %127 = arith.mulf %124, %124 : vector<8x128xf32>
    %cst_74 = arith.constant dense<0.000000e+00> : vector<128xf32>
    %128 = vector.multi_reduction <add>, %127, %cst_74 [0] : vector<8x128xf32> to vector<128xf32>
    %129 = vector.shape_cast %128 : vector<128xf32> to vector<1x128xf32>
    %130 = tpu.concatenate %126, %129 in 0 : vector<1x128xf32>, vector<1x128xf32> -> vector<2x128xf32>
    %c0_75 = arith.constant 0 : index
    %c0_76 = arith.constant 0 : index
    %131 = vector.load %arg13[%c0_75, %c0_76] : memref<128x32xf32, #tpu.memory_space<vmem>>, vector<128x32xf32>
    %cst_77 = arith.constant dense<0.000000e+00> : vector<2x32xf32>
    %132 = tpu.matmul %130, %131, %cst_77 {dimension_numbers = #tpu.dot_dimension_numbers<[1], [0], [0], [1], [0, 0, 1, 1], [], []>} : vector<2x128xf32>, vector<128x32xf32>, vector<2x32xf32> -> vector<2x32xf32>
    %133 = vector.extract_strided_slice %132 {offsets = [0, 0], sizes = [1, 32], strides = [1, 1]} : vector<2x32xf32> to vector<1x32xf32>
    %cst_78 = arith.constant 3.125000e-02 : f32
    %134 = vector.broadcast %cst_78 : f32 to vector<1x32xf32>
    %135 = arith.mulf %133, %134 : vector<1x32xf32>
    %136 = vector.extract_strided_slice %132 {offsets = [1, 0], sizes = [1, 32], strides = [1, 1]} : vector<2x32xf32> to vector<1x32xf32>
    %cst_79 = arith.constant 3.125000e-02 : f32
    %137 = vector.broadcast %cst_79 : f32 to vector<1x32xf32>
    %138 = arith.mulf %136, %137 : vector<1x32xf32>
    %139 = arith.mulf %135, %135 : vector<1x32xf32>
    %140 = arith.subf %138, %139 : vector<1x32xf32>
    %cst_80 = arith.constant 0.000000e+00 : f32
    %141 = vector.broadcast %cst_80 : f32 to vector<1x32xf32>
    %142 = arith.maximumf %140, %141 : vector<1x32xf32>
    %c0_81 = arith.constant 0 : index
    %c0_82 = arith.constant 0 : index
    %143 = vector.load %arg15[%c0_81, %c0_82] : memref<2x32xf32, #tpu.memory_space<vmem>>, vector<2x32xf32>
    %144 = vector.extract_strided_slice %143 {offsets = [0, 0], sizes = [1, 32], strides = [1, 1]} : vector<2x32xf32> to vector<1x32xf32>
    %cst_83 = arith.constant 9.99999974E-6 : f32
    %145 = vector.broadcast %cst_83 : f32 to vector<1x32xf32>
    %146 = arith.addf %142, %145 : vector<1x32xf32>
    %147 = math.rsqrt %146 : vector<1x32xf32>
    %148 = arith.mulf %144, %147 : vector<1x32xf32>
    %149 = vector.extract_strided_slice %143 {offsets = [1, 0], sizes = [1, 32], strides = [1, 1]} : vector<2x32xf32> to vector<1x32xf32>
    %150 = arith.mulf %135, %148 : vector<1x32xf32>
    %151 = arith.subf %149, %150 : vector<1x32xf32>
    %152 = tpu.concatenate %148, %151 in 0 : vector<1x32xf32>, vector<1x32xf32> -> vector<2x32xf32>
    %c0_84 = arith.constant 0 : index
    %c0_85 = arith.constant 0 : index
    %153 = vector.load %arg14[%c0_84, %c0_85] : memref<32x128xf32, #tpu.memory_space<vmem>>, vector<32x128xf32>
    %cst_86 = arith.constant dense<0.000000e+00> : vector<2x128xf32>
    %154 = tpu.matmul %152, %153, %cst_86 {dimension_numbers = #tpu.dot_dimension_numbers<[1], [0], [0], [1], [0, 0, 1, 1], [], []>} : vector<2x32xf32>, vector<32x128xf32>, vector<2x128xf32> -> vector<2x128xf32>
    %155 = vector.extract_strided_slice %154 {offsets = [0, 0], sizes = [1, 128], strides = [1, 1]} : vector<2x128xf32> to vector<1x128xf32>
    %156 = vector.broadcast %155 : vector<1x128xf32> to vector<8x128xf32>
    %157 = arith.mulf %124, %156 : vector<8x128xf32>
    %158 = vector.extract_strided_slice %154 {offsets = [1, 0], sizes = [1, 128], strides = [1, 1]} : vector<2x128xf32> to vector<1x128xf32>
    %159 = vector.broadcast %158 : vector<1x128xf32> to vector<8x128xf32>
    %160 = arith.addf %157, %159 : vector<8x128xf32>
    %cst_87 = arith.constant 0.000000e+00 : f32
    %161 = vector.broadcast %cst_87 : f32 to vector<8x128xf32>
    %162 = arith.maximumf %160, %161 : vector<8x128xf32>
    %163 = arith.truncf %162 : vector<8x128xf32> to vector<8x128xbf16>
    %c0_88 = arith.constant 0 : index
    %c0_89 = arith.constant 0 : index
    %c0_90 = arith.constant 0 : index
    %164 = vector.load %arg16[%c0_88, %c0_89, %c0_90] : memref<3x4x8xbf16, #tpu.memory_space<vmem>>, vector<1x4x8xbf16>
    %165 = vector.shape_cast %164 : vector<1x4x8xbf16> to vector<4x8xbf16>
    %cst_91 = arith.constant dense<0.000000e+00> : vector<4x128xf32>
    %166 = tpu.matmul %165, %163, %cst_91 {dimension_numbers = #tpu.dot_dimension_numbers<[1], [0], [0], [1], [0, 0, 1, 1], [], []>} : vector<4x8xbf16>, vector<8x128xbf16>, vector<4x128xf32> -> vector<4x128xf32>
    %167 = arith.truncf %166 : vector<4x128xf32> to vector<4x128xbf16>
    %c1_92 = arith.constant 1 : index
    %c0_93 = arith.constant 0 : index
    %c0_94 = arith.constant 0 : index
    %168 = vector.load %arg16[%c1_92, %c0_93, %c0_94] : memref<3x4x8xbf16, #tpu.memory_space<vmem>>, vector<1x4x8xbf16>
    %169 = vector.shape_cast %168 : vector<1x4x8xbf16> to vector<4x8xbf16>
    %cst_95 = arith.constant dense<0.000000e+00> : vector<4x128xf32>
    %170 = tpu.matmul %169, %163, %cst_95 {dimension_numbers = #tpu.dot_dimension_numbers<[1], [0], [0], [1], [0, 0, 1, 1], [], []>} : vector<4x8xbf16>, vector<8x128xbf16>, vector<4x128xf32> -> vector<4x128xf32>
    %171 = arith.truncf %170 : vector<4x128xf32> to vector<4x128xbf16>
    %c2_96 = arith.constant 2 : index
    %c0_97 = arith.constant 0 : index
    %c0_98 = arith.constant 0 : index
    %172 = vector.load %arg16[%c2_96, %c0_97, %c0_98] : memref<3x4x8xbf16, #tpu.memory_space<vmem>>, vector<1x4x8xbf16>
    %173 = vector.shape_cast %172 : vector<1x4x8xbf16> to vector<4x8xbf16>
    %cst_99 = arith.constant dense<0.000000e+00> : vector<4x128xf32>
    %174 = tpu.matmul %173, %163, %cst_99 {dimension_numbers = #tpu.dot_dimension_numbers<[1], [0], [0], [1], [0, 0, 1, 1], [], []>} : vector<4x8xbf16>, vector<8x128xbf16>, vector<4x128xf32> -> vector<4x128xf32>
    %175 = arith.truncf %174 : vector<4x128xf32> to vector<4x128xbf16>
    %176 = tpu.concatenate %167, %171, %175 in 1 : vector<4x128xbf16>, vector<4x128xbf16>, vector<4x128xbf16> -> vector<4x384xbf16>
    %c0_100 = arith.constant 0 : index
    %c0_101 = arith.constant 0 : index
    %177 = vector.load %arg17[%c0_100, %c0_101] : memref<384x128xbf16, #tpu.memory_space<vmem>>, vector<384x128xbf16>
    %cst_102 = arith.constant dense<0.000000e+00> : vector<4x128xf32>
    %178 = tpu.matmul %176, %177, %cst_102 {dimension_numbers = #tpu.dot_dimension_numbers<[1], [0], [0], [1], [0, 0, 1, 1], [], []>} : vector<4x384xbf16>, vector<384x128xbf16>, vector<4x128xf32> -> vector<4x128xf32>
    %cst_103 = arith.constant dense<0.000000e+00> : vector<128xf32>
    %179 = vector.multi_reduction <add>, %178, %cst_103 [0] : vector<4x128xf32> to vector<128xf32>
    %180 = vector.shape_cast %179 : vector<128xf32> to vector<1x128xf32>
    %181 = arith.mulf %178, %178 : vector<4x128xf32>
    %cst_104 = arith.constant dense<0.000000e+00> : vector<128xf32>
    %182 = vector.multi_reduction <add>, %181, %cst_104 [0] : vector<4x128xf32> to vector<128xf32>
    %183 = vector.shape_cast %182 : vector<128xf32> to vector<1x128xf32>
    %184 = tpu.concatenate %180, %183 in 0 : vector<1x128xf32>, vector<1x128xf32> -> vector<2x128xf32>
    %c0_105 = arith.constant 0 : index
    %c0_106 = arith.constant 0 : index
    %185 = vector.load %arg18[%c0_105, %c0_106] : memref<128x64xf32, #tpu.memory_space<vmem>>, vector<128x64xf32>
    %cst_107 = arith.constant dense<0.000000e+00> : vector<2x64xf32>
    %186 = tpu.matmul %184, %185, %cst_107 {dimension_numbers = #tpu.dot_dimension_numbers<[1], [0], [0], [1], [0, 0, 1, 1], [], []>} : vector<2x128xf32>, vector<128x64xf32>, vector<2x64xf32> -> vector<2x64xf32>
    %187 = vector.extract_strided_slice %186 {offsets = [0, 0], sizes = [1, 64], strides = [1, 1]} : vector<2x64xf32> to vector<1x64xf32>
    %cst_108 = arith.constant 1.250000e-01 : f32
    %188 = vector.broadcast %cst_108 : f32 to vector<1x64xf32>
    %189 = arith.mulf %187, %188 : vector<1x64xf32>
    %190 = vector.extract_strided_slice %186 {offsets = [1, 0], sizes = [1, 64], strides = [1, 1]} : vector<2x64xf32> to vector<1x64xf32>
    %cst_109 = arith.constant 1.250000e-01 : f32
    %191 = vector.broadcast %cst_109 : f32 to vector<1x64xf32>
    %192 = arith.mulf %190, %191 : vector<1x64xf32>
    %193 = arith.mulf %189, %189 : vector<1x64xf32>
    %194 = arith.subf %192, %193 : vector<1x64xf32>
    %cst_110 = arith.constant 0.000000e+00 : f32
    %195 = vector.broadcast %cst_110 : f32 to vector<1x64xf32>
    %196 = arith.maximumf %194, %195 : vector<1x64xf32>
    %c0_111 = arith.constant 0 : index
    %c0_112 = arith.constant 0 : index
    %197 = vector.load %arg20[%c0_111, %c0_112] : memref<2x64xf32, #tpu.memory_space<vmem>>, vector<2x64xf32>
    %198 = vector.extract_strided_slice %197 {offsets = [0, 0], sizes = [1, 64], strides = [1, 1]} : vector<2x64xf32> to vector<1x64xf32>
    %cst_113 = arith.constant 9.99999974E-6 : f32
    %199 = vector.broadcast %cst_113 : f32 to vector<1x64xf32>
    %200 = arith.addf %196, %199 : vector<1x64xf32>
    %201 = math.rsqrt %200 : vector<1x64xf32>
    %202 = arith.mulf %198, %201 : vector<1x64xf32>
    %203 = vector.extract_strided_slice %197 {offsets = [1, 0], sizes = [1, 64], strides = [1, 1]} : vector<2x64xf32> to vector<1x64xf32>
    %204 = arith.mulf %189, %202 : vector<1x64xf32>
    %205 = arith.subf %203, %204 : vector<1x64xf32>
    %206 = tpu.concatenate %202, %205 in 0 : vector<1x64xf32>, vector<1x64xf32> -> vector<2x64xf32>
    %c0_114 = arith.constant 0 : index
    %c0_115 = arith.constant 0 : index
    %207 = vector.load %arg19[%c0_114, %c0_115] : memref<64x128xf32, #tpu.memory_space<vmem>>, vector<64x128xf32>
    %cst_116 = arith.constant dense<0.000000e+00> : vector<2x128xf32>
    %208 = tpu.matmul %206, %207, %cst_116 {dimension_numbers = #tpu.dot_dimension_numbers<[1], [0], [0], [1], [0, 0, 1, 1], [], []>} : vector<2x64xf32>, vector<64x128xf32>, vector<2x128xf32> -> vector<2x128xf32>
    %209 = vector.extract_strided_slice %208 {offsets = [0, 0], sizes = [1, 128], strides = [1, 1]} : vector<2x128xf32> to vector<1x128xf32>
    %210 = vector.broadcast %209 : vector<1x128xf32> to vector<4x128xf32>
    %211 = arith.mulf %178, %210 : vector<4x128xf32>
    %212 = vector.extract_strided_slice %208 {offsets = [1, 0], sizes = [1, 128], strides = [1, 1]} : vector<2x128xf32> to vector<1x128xf32>
    %213 = vector.broadcast %212 : vector<1x128xf32> to vector<4x128xf32>
    %214 = arith.addf %211, %213 : vector<4x128xf32>
    %cst_117 = arith.constant 0.000000e+00 : f32
    %215 = vector.broadcast %cst_117 : f32 to vector<4x128xf32>
    %216 = arith.maximumf %214, %215 : vector<4x128xf32>
    %217 = arith.truncf %216 : vector<4x128xf32> to vector<4x128xbf16>
    %c0_118 = arith.constant 0 : index
    %c0_119 = arith.constant 0 : index
    %218 = vector.load %arg22[%c0_118, %c0_119] : memref<128x256xbf16, #tpu.memory_space<vmem>>, vector<128x256xbf16>
    %cst_120 = arith.constant dense<0.000000e+00> : vector<4x256xf32>
    %219 = tpu.matmul %217, %218, %cst_120 {dimension_numbers = #tpu.dot_dimension_numbers<[1], [0], [0], [1], [0, 0, 1, 1], [], []>} : vector<4x128xbf16>, vector<128x256xbf16>, vector<4x256xf32> -> vector<4x256xf32>
    %220 = vector.extract_strided_slice %219 {offsets = [0, 0], sizes = [4, 128], strides = [1, 1]} : vector<4x256xf32> to vector<4x128xf32>
    %221 = arith.truncf %220 : vector<4x128xf32> to vector<4x128xbf16>
    %222 = vector.extract_strided_slice %219 {offsets = [0, 128], sizes = [4, 128], strides = [1, 1]} : vector<4x256xf32> to vector<4x128xf32>
    %223 = arith.truncf %222 : vector<4x128xf32> to vector<4x128xbf16>
    %c0_121 = arith.constant 0 : index
    %c0_122 = arith.constant 0 : index
    %c0_123 = arith.constant 0 : index
    %224 = vector.load %arg21[%c0_121, %c0_122, %c0_123] : memref<2x8x4xbf16, #tpu.memory_space<vmem>>, vector<1x8x4xbf16>
    %225 = vector.shape_cast %224 : vector<1x8x4xbf16> to vector<8x4xbf16>
    %cst_124 = arith.constant dense<0.000000e+00> : vector<8x128xf32>
    %226 = tpu.matmul %225, %221, %cst_124 {dimension_numbers = #tpu.dot_dimension_numbers<[1], [0], [0], [1], [0, 0, 1, 1], [], []>} : vector<8x4xbf16>, vector<4x128xbf16>, vector<8x128xf32> -> vector<8x128xf32>
    %c1_125 = arith.constant 1 : index
    %c0_126 = arith.constant 0 : index
    %c0_127 = arith.constant 0 : index
    %227 = vector.load %arg21[%c1_125, %c0_126, %c0_127] : memref<2x8x4xbf16, #tpu.memory_space<vmem>>, vector<1x8x4xbf16>
    %228 = vector.shape_cast %227 : vector<1x8x4xbf16> to vector<8x4xbf16>
    %cst_128 = arith.constant dense<0.000000e+00> : vector<8x128xf32>
    %229 = tpu.matmul %228, %223, %cst_128 {dimension_numbers = #tpu.dot_dimension_numbers<[1], [0], [0], [1], [0, 0, 1, 1], [], []>} : vector<8x4xbf16>, vector<4x128xbf16>, vector<8x128xf32> -> vector<8x128xf32>
    %230 = arith.addf %226, %229 : vector<8x128xf32>
    %cst_129 = arith.constant dense<0.000000e+00> : vector<128xf32>
    %231 = vector.multi_reduction <add>, %230, %cst_129 [0] : vector<8x128xf32> to vector<128xf32>
    %232 = vector.shape_cast %231 : vector<128xf32> to vector<1x128xf32>
    %233 = arith.mulf %230, %230 : vector<8x128xf32>
    %cst_130 = arith.constant dense<0.000000e+00> : vector<128xf32>
    %234 = vector.multi_reduction <add>, %233, %cst_130 [0] : vector<8x128xf32> to vector<128xf32>
    %235 = vector.shape_cast %234 : vector<128xf32> to vector<1x128xf32>
    %236 = tpu.concatenate %232, %235 in 0 : vector<1x128xf32>, vector<1x128xf32> -> vector<2x128xf32>
    %c0_131 = arith.constant 0 : index
    %c0_132 = arith.constant 0 : index
    %237 = vector.load %arg23[%c0_131, %c0_132] : memref<128x32xf32, #tpu.memory_space<vmem>>, vector<128x32xf32>
    %cst_133 = arith.constant dense<0.000000e+00> : vector<2x32xf32>
    %238 = tpu.matmul %236, %237, %cst_133 {dimension_numbers = #tpu.dot_dimension_numbers<[1], [0], [0], [1], [0, 0, 1, 1], [], []>} : vector<2x128xf32>, vector<128x32xf32>, vector<2x32xf32> -> vector<2x32xf32>
    %239 = vector.extract_strided_slice %238 {offsets = [0, 0], sizes = [1, 32], strides = [1, 1]} : vector<2x32xf32> to vector<1x32xf32>
    %cst_134 = arith.constant 3.125000e-02 : f32
    %240 = vector.broadcast %cst_134 : f32 to vector<1x32xf32>
    %241 = arith.mulf %239, %240 : vector<1x32xf32>
    %242 = vector.extract_strided_slice %238 {offsets = [1, 0], sizes = [1, 32], strides = [1, 1]} : vector<2x32xf32> to vector<1x32xf32>
    %cst_135 = arith.constant 3.125000e-02 : f32
    %243 = vector.broadcast %cst_135 : f32 to vector<1x32xf32>
    %244 = arith.mulf %242, %243 : vector<1x32xf32>
    %245 = arith.mulf %241, %241 : vector<1x32xf32>
    %246 = arith.subf %244, %245 : vector<1x32xf32>
    %cst_136 = arith.constant 0.000000e+00 : f32
    %247 = vector.broadcast %cst_136 : f32 to vector<1x32xf32>
    %248 = arith.maximumf %246, %247 : vector<1x32xf32>
    %c0_137 = arith.constant 0 : index
    %c0_138 = arith.constant 0 : index
    %249 = vector.load %arg25[%c0_137, %c0_138] : memref<2x32xf32, #tpu.memory_space<vmem>>, vector<2x32xf32>
    %250 = vector.extract_strided_slice %249 {offsets = [0, 0], sizes = [1, 32], strides = [1, 1]} : vector<2x32xf32> to vector<1x32xf32>
    %cst_139 = arith.constant 9.99999974E-6 : f32
    %251 = vector.broadcast %cst_139 : f32 to vector<1x32xf32>
    %252 = arith.addf %248, %251 : vector<1x32xf32>
    %253 = math.rsqrt %252 : vector<1x32xf32>
    %254 = arith.mulf %250, %253 : vector<1x32xf32>
    %255 = vector.extract_strided_slice %249 {offsets = [1, 0], sizes = [1, 32], strides = [1, 1]} : vector<2x32xf32> to vector<1x32xf32>
    %256 = arith.mulf %241, %254 : vector<1x32xf32>
    %257 = arith.subf %255, %256 : vector<1x32xf32>
    %258 = tpu.concatenate %254, %257 in 0 : vector<1x32xf32>, vector<1x32xf32> -> vector<2x32xf32>
    %c0_140 = arith.constant 0 : index
    %c0_141 = arith.constant 0 : index
    %259 = vector.load %arg24[%c0_140, %c0_141] : memref<32x128xf32, #tpu.memory_space<vmem>>, vector<32x128xf32>
    %cst_142 = arith.constant dense<0.000000e+00> : vector<2x128xf32>
    %260 = tpu.matmul %258, %259, %cst_142 {dimension_numbers = #tpu.dot_dimension_numbers<[1], [0], [0], [1], [0, 0, 1, 1], [], []>} : vector<2x32xf32>, vector<32x128xf32>, vector<2x128xf32> -> vector<2x128xf32>
    %261 = vector.extract_strided_slice %260 {offsets = [0, 0], sizes = [1, 128], strides = [1, 1]} : vector<2x128xf32> to vector<1x128xf32>
    %262 = vector.broadcast %261 : vector<1x128xf32> to vector<8x128xf32>
    %263 = arith.mulf %230, %262 : vector<8x128xf32>
    %264 = vector.extract_strided_slice %260 {offsets = [1, 0], sizes = [1, 128], strides = [1, 1]} : vector<2x128xf32> to vector<1x128xf32>
    %265 = vector.broadcast %264 : vector<1x128xf32> to vector<8x128xf32>
    %266 = arith.addf %263, %265 : vector<8x128xf32>
    %cst_143 = arith.constant 0.000000e+00 : f32
    %267 = vector.broadcast %cst_143 : f32 to vector<8x128xf32>
    %268 = arith.maximumf %266, %267 : vector<8x128xf32>
    %269 = arith.truncf %268 : vector<8x128xf32> to vector<8x128xbf16>
    %c0_144 = arith.constant 0 : index
    %c0_145 = arith.constant 0 : index
    %270 = vector.load %arg27[%c0_144, %c0_145] : memref<128x256xbf16, #tpu.memory_space<vmem>>, vector<128x256xbf16>
    %cst_146 = arith.constant dense<0.000000e+00> : vector<8x256xf32>
    %271 = tpu.matmul %269, %270, %cst_146 {dimension_numbers = #tpu.dot_dimension_numbers<[1], [0], [0], [1], [0, 0, 1, 1], [], []>} : vector<8x128xbf16>, vector<128x256xbf16>, vector<8x256xf32> -> vector<8x256xf32>
    %272 = vector.extract_strided_slice %271 {offsets = [0, 0], sizes = [8, 128], strides = [1, 1]} : vector<8x256xf32> to vector<8x128xf32>
    %273 = arith.truncf %272 : vector<8x128xf32> to vector<8x128xbf16>
    %274 = vector.extract_strided_slice %271 {offsets = [0, 128], sizes = [8, 128], strides = [1, 1]} : vector<8x256xf32> to vector<8x128xf32>
    %275 = arith.truncf %274 : vector<8x128xf32> to vector<8x128xbf16>
    %c0_147 = arith.constant 0 : index
    %c0_148 = arith.constant 0 : index
    %c0_149 = arith.constant 0 : index
    %276 = vector.load %arg26[%c0_147, %c0_148, %c0_149] : memref<2x16x8xbf16, #tpu.memory_space<vmem>>, vector<1x16x8xbf16>
    %277 = vector.shape_cast %276 : vector<1x16x8xbf16> to vector<16x8xbf16>
    %cst_150 = arith.constant dense<0.000000e+00> : vector<16x128xf32>
    %278 = tpu.matmul %277, %273, %cst_150 {dimension_numbers = #tpu.dot_dimension_numbers<[1], [0], [0], [1], [0, 0, 1, 1], [], []>} : vector<16x8xbf16>, vector<8x128xbf16>, vector<16x128xf32> -> vector<16x128xf32>
    %c1_151 = arith.constant 1 : index
    %c0_152 = arith.constant 0 : index
    %c0_153 = arith.constant 0 : index
    %279 = vector.load %arg26[%c1_151, %c0_152, %c0_153] : memref<2x16x8xbf16, #tpu.memory_space<vmem>>, vector<1x16x8xbf16>
    %280 = vector.shape_cast %279 : vector<1x16x8xbf16> to vector<16x8xbf16>
    %cst_154 = arith.constant dense<0.000000e+00> : vector<16x128xf32>
    %281 = tpu.matmul %280, %275, %cst_154 {dimension_numbers = #tpu.dot_dimension_numbers<[1], [0], [0], [1], [0, 0, 1, 1], [], []>} : vector<16x8xbf16>, vector<8x128xbf16>, vector<16x128xf32> -> vector<16x128xf32>
    %282 = arith.addf %278, %281 : vector<16x128xf32>
    %cst_155 = arith.constant dense<0.000000e+00> : vector<128xf32>
    %283 = vector.multi_reduction <add>, %282, %cst_155 [0] : vector<16x128xf32> to vector<128xf32>
    %284 = vector.shape_cast %283 : vector<128xf32> to vector<1x128xf32>
    %285 = arith.mulf %282, %282 : vector<16x128xf32>
    %cst_156 = arith.constant dense<0.000000e+00> : vector<128xf32>
    %286 = vector.multi_reduction <add>, %285, %cst_156 [0] : vector<16x128xf32> to vector<128xf32>
    %287 = vector.shape_cast %286 : vector<128xf32> to vector<1x128xf32>
    %288 = tpu.concatenate %284, %287 in 0 : vector<1x128xf32>, vector<1x128xf32> -> vector<2x128xf32>
    %c0_157 = arith.constant 0 : index
    %c0_158 = arith.constant 0 : index
    %289 = vector.load %arg28[%c0_157, %c0_158] : memref<128x16xf32, #tpu.memory_space<vmem>>, vector<128x16xf32>
    %cst_159 = arith.constant dense<0.000000e+00> : vector<2x16xf32>
    %290 = tpu.matmul %288, %289, %cst_159 {dimension_numbers = #tpu.dot_dimension_numbers<[1], [0], [0], [1], [0, 0, 1, 1], [], []>} : vector<2x128xf32>, vector<128x16xf32>, vector<2x16xf32> -> vector<2x16xf32>
    %291 = vector.extract_strided_slice %290 {offsets = [0, 0], sizes = [1, 16], strides = [1, 1]} : vector<2x16xf32> to vector<1x16xf32>
    %cst_160 = arith.constant 7.812500e-03 : f32
    %292 = vector.broadcast %cst_160 : f32 to vector<1x16xf32>
    %293 = arith.mulf %291, %292 : vector<1x16xf32>
    %294 = vector.extract_strided_slice %290 {offsets = [1, 0], sizes = [1, 16], strides = [1, 1]} : vector<2x16xf32> to vector<1x16xf32>
    %cst_161 = arith.constant 7.812500e-03 : f32
    %295 = vector.broadcast %cst_161 : f32 to vector<1x16xf32>
    %296 = arith.mulf %294, %295 : vector<1x16xf32>
    %297 = arith.mulf %293, %293 : vector<1x16xf32>
    %298 = arith.subf %296, %297 : vector<1x16xf32>
    %cst_162 = arith.constant 0.000000e+00 : f32
    %299 = vector.broadcast %cst_162 : f32 to vector<1x16xf32>
    %300 = arith.maximumf %298, %299 : vector<1x16xf32>
    %c0_163 = arith.constant 0 : index
    %c0_164 = arith.constant 0 : index
    %301 = vector.load %arg30[%c0_163, %c0_164] : memref<2x16xf32, #tpu.memory_space<vmem>>, vector<2x16xf32>
    %302 = vector.extract_strided_slice %301 {offsets = [0, 0], sizes = [1, 16], strides = [1, 1]} : vector<2x16xf32> to vector<1x16xf32>
    %cst_165 = arith.constant 9.99999974E-6 : f32
    %303 = vector.broadcast %cst_165 : f32 to vector<1x16xf32>
    %304 = arith.addf %300, %303 : vector<1x16xf32>
    %305 = math.rsqrt %304 : vector<1x16xf32>
    %306 = arith.mulf %302, %305 : vector<1x16xf32>
    %307 = vector.extract_strided_slice %301 {offsets = [1, 0], sizes = [1, 16], strides = [1, 1]} : vector<2x16xf32> to vector<1x16xf32>
    %308 = arith.mulf %293, %306 : vector<1x16xf32>
    %309 = arith.subf %307, %308 : vector<1x16xf32>
    %310 = tpu.concatenate %306, %309 in 0 : vector<1x16xf32>, vector<1x16xf32> -> vector<2x16xf32>
    %c0_166 = arith.constant 0 : index
    %c0_167 = arith.constant 0 : index
    %311 = vector.load %arg29[%c0_166, %c0_167] : memref<16x128xf32, #tpu.memory_space<vmem>>, vector<16x128xf32>
    %cst_168 = arith.constant dense<0.000000e+00> : vector<2x128xf32>
    %312 = tpu.matmul %310, %311, %cst_168 {dimension_numbers = #tpu.dot_dimension_numbers<[1], [0], [0], [1], [0, 0, 1, 1], [], []>} : vector<2x16xf32>, vector<16x128xf32>, vector<2x128xf32> -> vector<2x128xf32>
    %313 = vector.extract_strided_slice %312 {offsets = [0, 0], sizes = [1, 128], strides = [1, 1]} : vector<2x128xf32> to vector<1x128xf32>
    %314 = vector.broadcast %313 : vector<1x128xf32> to vector<16x128xf32>
    %315 = arith.mulf %282, %314 : vector<16x128xf32>
    %316 = vector.extract_strided_slice %312 {offsets = [1, 0], sizes = [1, 128], strides = [1, 1]} : vector<2x128xf32> to vector<1x128xf32>
    %317 = vector.broadcast %316 : vector<1x128xf32> to vector<16x128xf32>
    %318 = arith.addf %315, %317 : vector<16x128xf32>
    %cst_169 = arith.constant 0.000000e+00 : f32
    %319 = vector.broadcast %cst_169 : f32 to vector<16x128xf32>
    %320 = arith.maximumf %318, %319 : vector<16x128xf32>
    %321 = arith.truncf %320 : vector<16x128xf32> to vector<16x128xbf16>
    %c0_170 = arith.constant 0 : index
    %c0_171 = arith.constant 0 : index
    %322 = vector.load %arg32[%c0_170, %c0_171] : memref<128x128xbf16, #tpu.memory_space<vmem>>, vector<128x128xbf16>
    %cst_172 = arith.constant dense<0.000000e+00> : vector<16x128xf32>
    %323 = tpu.matmul %321, %322, %cst_172 {dimension_numbers = #tpu.dot_dimension_numbers<[1], [0], [0], [1], [0, 0, 1, 1], [], []>} : vector<16x128xbf16>, vector<128x128xbf16>, vector<16x128xf32> -> vector<16x128xf32>
    %324 = vector.extract_strided_slice %323 {offsets = [0, 0], sizes = [16, 64], strides = [1, 1]} : vector<16x128xf32> to vector<16x64xf32>
    %325 = arith.truncf %324 : vector<16x64xf32> to vector<16x64xbf16>
    %326 = vector.extract_strided_slice %323 {offsets = [0, 64], sizes = [16, 64], strides = [1, 1]} : vector<16x128xf32> to vector<16x64xf32>
    %327 = arith.truncf %326 : vector<16x64xf32> to vector<16x64xbf16>
    %c0_173 = arith.constant 0 : index
    %c0_174 = arith.constant 0 : index
    %c0_175 = arith.constant 0 : index
    %328 = vector.load %arg31[%c0_173, %c0_174, %c0_175] : memref<2x32x16xbf16, #tpu.memory_space<vmem>>, vector<1x32x16xbf16>
    %329 = vector.shape_cast %328 : vector<1x32x16xbf16> to vector<32x16xbf16>
    %cst_176 = arith.constant dense<0.000000e+00> : vector<32x64xf32>
    %330 = tpu.matmul %329, %325, %cst_176 {dimension_numbers = #tpu.dot_dimension_numbers<[1], [0], [0], [1], [0, 0, 1, 1], [], []>} : vector<32x16xbf16>, vector<16x64xbf16>, vector<32x64xf32> -> vector<32x64xf32>
    %c1_177 = arith.constant 1 : index
    %c0_178 = arith.constant 0 : index
    %c0_179 = arith.constant 0 : index
    %331 = vector.load %arg31[%c1_177, %c0_178, %c0_179] : memref<2x32x16xbf16, #tpu.memory_space<vmem>>, vector<1x32x16xbf16>
    %332 = vector.shape_cast %331 : vector<1x32x16xbf16> to vector<32x16xbf16>
    %cst_180 = arith.constant dense<0.000000e+00> : vector<32x64xf32>
    %333 = tpu.matmul %332, %327, %cst_180 {dimension_numbers = #tpu.dot_dimension_numbers<[1], [0], [0], [1], [0, 0, 1, 1], [], []>} : vector<32x16xbf16>, vector<16x64xbf16>, vector<32x64xf32> -> vector<32x64xf32>
    %334 = arith.addf %330, %333 : vector<32x64xf32>
    %cst_181 = arith.constant dense<0.000000e+00> : vector<64xf32>
    %335 = vector.multi_reduction <add>, %334, %cst_181 [0] : vector<32x64xf32> to vector<64xf32>
    %336 = vector.shape_cast %335 : vector<64xf32> to vector<1x64xf32>
    %337 = arith.mulf %334, %334 : vector<32x64xf32>
    %cst_182 = arith.constant dense<0.000000e+00> : vector<64xf32>
    %338 = vector.multi_reduction <add>, %337, %cst_182 [0] : vector<32x64xf32> to vector<64xf32>
    %339 = vector.shape_cast %338 : vector<64xf32> to vector<1x64xf32>
    %340 = tpu.concatenate %336, %339 in 0 : vector<1x64xf32>, vector<1x64xf32> -> vector<2x64xf32>
    %c0_183 = arith.constant 0 : index
    %c0_184 = arith.constant 0 : index
    %341 = vector.load %arg33[%c0_183, %c0_184] : memref<64x4xf32, #tpu.memory_space<vmem>>, vector<64x4xf32>
    %cst_185 = arith.constant dense<0.000000e+00> : vector<2x4xf32>
    %342 = tpu.matmul %340, %341, %cst_185 {dimension_numbers = #tpu.dot_dimension_numbers<[1], [0], [0], [1], [0, 0, 1, 1], [], []>} : vector<2x64xf32>, vector<64x4xf32>, vector<2x4xf32> -> vector<2x4xf32>
    %343 = vector.extract_strided_slice %342 {offsets = [0, 0], sizes = [1, 4], strides = [1, 1]} : vector<2x4xf32> to vector<1x4xf32>
    %cst_186 = arith.constant 0.001953125 : f32
    %344 = vector.broadcast %cst_186 : f32 to vector<1x4xf32>
    %345 = arith.mulf %343, %344 : vector<1x4xf32>
    %346 = vector.extract_strided_slice %342 {offsets = [1, 0], sizes = [1, 4], strides = [1, 1]} : vector<2x4xf32> to vector<1x4xf32>
    %cst_187 = arith.constant 0.001953125 : f32
    %347 = vector.broadcast %cst_187 : f32 to vector<1x4xf32>
    %348 = arith.mulf %346, %347 : vector<1x4xf32>
    %349 = arith.mulf %345, %345 : vector<1x4xf32>
    %350 = arith.subf %348, %349 : vector<1x4xf32>
    %cst_188 = arith.constant 0.000000e+00 : f32
    %351 = vector.broadcast %cst_188 : f32 to vector<1x4xf32>
    %352 = arith.maximumf %350, %351 : vector<1x4xf32>
    %c0_189 = arith.constant 0 : index
    %c0_190 = arith.constant 0 : index
    %353 = vector.load %arg35[%c0_189, %c0_190] : memref<2x4xf32, #tpu.memory_space<vmem>>, vector<2x4xf32>
    %354 = vector.extract_strided_slice %353 {offsets = [0, 0], sizes = [1, 4], strides = [1, 1]} : vector<2x4xf32> to vector<1x4xf32>
    %cst_191 = arith.constant 9.99999974E-6 : f32
    %355 = vector.broadcast %cst_191 : f32 to vector<1x4xf32>
    %356 = arith.addf %352, %355 : vector<1x4xf32>
    %357 = math.rsqrt %356 : vector<1x4xf32>
    %358 = arith.mulf %354, %357 : vector<1x4xf32>
    %359 = vector.extract_strided_slice %353 {offsets = [1, 0], sizes = [1, 4], strides = [1, 1]} : vector<2x4xf32> to vector<1x4xf32>
    %360 = arith.mulf %345, %358 : vector<1x4xf32>
    %361 = arith.subf %359, %360 : vector<1x4xf32>
    %362 = tpu.concatenate %358, %361 in 0 : vector<1x4xf32>, vector<1x4xf32> -> vector<2x4xf32>
    %c0_192 = arith.constant 0 : index
    %c0_193 = arith.constant 0 : index
    %363 = vector.load %arg34[%c0_192, %c0_193] : memref<4x64xf32, #tpu.memory_space<vmem>>, vector<4x64xf32>
    %cst_194 = arith.constant dense<0.000000e+00> : vector<2x64xf32>
    %364 = tpu.matmul %362, %363, %cst_194 {dimension_numbers = #tpu.dot_dimension_numbers<[1], [0], [0], [1], [0, 0, 1, 1], [], []>} : vector<2x4xf32>, vector<4x64xf32>, vector<2x64xf32> -> vector<2x64xf32>
    %365 = vector.extract_strided_slice %364 {offsets = [0, 0], sizes = [1, 64], strides = [1, 1]} : vector<2x64xf32> to vector<1x64xf32>
    %366 = vector.broadcast %365 : vector<1x64xf32> to vector<32x64xf32>
    %367 = arith.mulf %334, %366 : vector<32x64xf32>
    %368 = vector.extract_strided_slice %364 {offsets = [1, 0], sizes = [1, 64], strides = [1, 1]} : vector<2x64xf32> to vector<1x64xf32>
    %369 = vector.broadcast %368 : vector<1x64xf32> to vector<32x64xf32>
    %370 = arith.addf %367, %369 : vector<32x64xf32>
    %cst_195 = arith.constant 0.000000e+00 : f32
    %371 = vector.broadcast %cst_195 : f32 to vector<32x64xf32>
    %372 = arith.maximumf %370, %371 : vector<32x64xf32>
    %373 = arith.truncf %372 : vector<32x64xf32> to vector<32x64xbf16>
    %c0_196 = arith.constant 0 : index
    %c0_197 = arith.constant 0 : index
    %374 = vector.load %arg37[%c0_196, %c0_197] : memref<64x256xbf16, #tpu.memory_space<vmem>>, vector<64x256xbf16>
    %cst_198 = arith.constant dense<0.000000e+00> : vector<32x256xf32>
    %375 = tpu.matmul %373, %374, %cst_198 {dimension_numbers = #tpu.dot_dimension_numbers<[1], [0], [0], [1], [0, 0, 1, 1], [], []>} : vector<32x64xbf16>, vector<64x256xbf16>, vector<32x256xf32> -> vector<32x256xf32>
    %376 = vector.extract_strided_slice %375 {offsets = [0, 0], sizes = [32, 128], strides = [1, 1]} : vector<32x256xf32> to vector<32x128xf32>
    %377 = arith.truncf %376 : vector<32x128xf32> to vector<32x128xbf16>
    %378 = vector.extract_strided_slice %375 {offsets = [0, 128], sizes = [32, 128], strides = [1, 1]} : vector<32x256xf32> to vector<32x128xf32>
    %379 = arith.truncf %378 : vector<32x128xf32> to vector<32x128xbf16>
    %c0_199 = arith.constant 0 : index
    %c0_200 = arith.constant 0 : index
    %c0_201 = arith.constant 0 : index
    %380 = vector.load %arg36[%c0_199, %c0_200, %c0_201] : memref<2x64x32xbf16, #tpu.memory_space<vmem>>, vector<1x64x32xbf16>
    %381 = vector.shape_cast %380 : vector<1x64x32xbf16> to vector<64x32xbf16>
    %cst_202 = arith.constant dense<0.000000e+00> : vector<64x128xf32>
    %382 = tpu.matmul %381, %377, %cst_202 {dimension_numbers = #tpu.dot_dimension_numbers<[1], [0], [0], [1], [0, 0, 1, 1], [], []>} : vector<64x32xbf16>, vector<32x128xbf16>, vector<64x128xf32> -> vector<64x128xf32>
    %c1_203 = arith.constant 1 : index
    %c0_204 = arith.constant 0 : index
    %c0_205 = arith.constant 0 : index
    %383 = vector.load %arg36[%c1_203, %c0_204, %c0_205] : memref<2x64x32xbf16, #tpu.memory_space<vmem>>, vector<1x64x32xbf16>
    %384 = vector.shape_cast %383 : vector<1x64x32xbf16> to vector<64x32xbf16>
    %cst_206 = arith.constant dense<0.000000e+00> : vector<64x128xf32>
    %385 = tpu.matmul %384, %379, %cst_206 {dimension_numbers = #tpu.dot_dimension_numbers<[1], [0], [0], [1], [0, 0, 1, 1], [], []>} : vector<64x32xbf16>, vector<32x128xbf16>, vector<64x128xf32> -> vector<64x128xf32>
    %386 = arith.addf %382, %385 : vector<64x128xf32>
    %cst_207 = arith.constant dense<0.000000e+00> : vector<128xf32>
    %387 = vector.multi_reduction <add>, %386, %cst_207 [0] : vector<64x128xf32> to vector<128xf32>
    %388 = vector.shape_cast %387 : vector<128xf32> to vector<1x128xf32>
    %389 = arith.mulf %386, %386 : vector<64x128xf32>
    %cst_208 = arith.constant dense<0.000000e+00> : vector<128xf32>
    %390 = vector.multi_reduction <add>, %389, %cst_208 [0] : vector<64x128xf32> to vector<128xf32>
    %391 = vector.shape_cast %390 : vector<128xf32> to vector<1x128xf32>
    %392 = tpu.concatenate %388, %391 in 0 : vector<1x128xf32>, vector<1x128xf32> -> vector<2x128xf32>
    %c0_209 = arith.constant 0 : index
    %c0_210 = arith.constant 0 : index
    %393 = vector.load %arg38[%c0_209, %c0_210] : memref<128x4xf32, #tpu.memory_space<vmem>>, vector<128x4xf32>
    %cst_211 = arith.constant dense<0.000000e+00> : vector<2x4xf32>
    %394 = tpu.matmul %392, %393, %cst_211 {dimension_numbers = #tpu.dot_dimension_numbers<[1], [0], [0], [1], [0, 0, 1, 1], [], []>} : vector<2x128xf32>, vector<128x4xf32>, vector<2x4xf32> -> vector<2x4xf32>
    %395 = vector.extract_strided_slice %394 {offsets = [0, 0], sizes = [1, 4], strides = [1, 1]} : vector<2x4xf32> to vector<1x4xf32>
    %cst_212 = arith.constant 4.8828125E-4 : f32
    %396 = vector.broadcast %cst_212 : f32 to vector<1x4xf32>
    %397 = arith.mulf %395, %396 : vector<1x4xf32>
    %398 = vector.extract_strided_slice %394 {offsets = [1, 0], sizes = [1, 4], strides = [1, 1]} : vector<2x4xf32> to vector<1x4xf32>
    %cst_213 = arith.constant 4.8828125E-4 : f32
    %399 = vector.broadcast %cst_213 : f32 to vector<1x4xf32>
    %400 = arith.mulf %398, %399 : vector<1x4xf32>
    %401 = arith.mulf %397, %397 : vector<1x4xf32>
    %402 = arith.subf %400, %401 : vector<1x4xf32>
    %cst_214 = arith.constant 0.000000e+00 : f32
    %403 = vector.broadcast %cst_214 : f32 to vector<1x4xf32>
    %404 = arith.maximumf %402, %403 : vector<1x4xf32>
    %c0_215 = arith.constant 0 : index
    %c0_216 = arith.constant 0 : index
    %405 = vector.load %arg40[%c0_215, %c0_216] : memref<2x4xf32, #tpu.memory_space<vmem>>, vector<2x4xf32>
    %406 = vector.extract_strided_slice %405 {offsets = [0, 0], sizes = [1, 4], strides = [1, 1]} : vector<2x4xf32> to vector<1x4xf32>
    %cst_217 = arith.constant 9.99999974E-6 : f32
    %407 = vector.broadcast %cst_217 : f32 to vector<1x4xf32>
    %408 = arith.addf %404, %407 : vector<1x4xf32>
    %409 = math.rsqrt %408 : vector<1x4xf32>
    %410 = arith.mulf %406, %409 : vector<1x4xf32>
    %411 = vector.extract_strided_slice %405 {offsets = [1, 0], sizes = [1, 4], strides = [1, 1]} : vector<2x4xf32> to vector<1x4xf32>
    %412 = arith.mulf %397, %410 : vector<1x4xf32>
    %413 = arith.subf %411, %412 : vector<1x4xf32>
    %414 = tpu.concatenate %410, %413 in 0 : vector<1x4xf32>, vector<1x4xf32> -> vector<2x4xf32>
    %c0_218 = arith.constant 0 : index
    %c0_219 = arith.constant 0 : index
    %415 = vector.load %arg39[%c0_218, %c0_219] : memref<4x128xf32, #tpu.memory_space<vmem>>, vector<4x128xf32>
    %cst_220 = arith.constant dense<0.000000e+00> : vector<2x128xf32>
    %416 = tpu.matmul %414, %415, %cst_220 {dimension_numbers = #tpu.dot_dimension_numbers<[1], [0], [0], [1], [0, 0, 1, 1], [], []>} : vector<2x4xf32>, vector<4x128xf32>, vector<2x128xf32> -> vector<2x128xf32>
    %417 = vector.extract_strided_slice %416 {offsets = [0, 0], sizes = [1, 128], strides = [1, 1]} : vector<2x128xf32> to vector<1x128xf32>
    %418 = vector.broadcast %417 : vector<1x128xf32> to vector<64x128xf32>
    %419 = arith.mulf %386, %418 : vector<64x128xf32>
    %420 = vector.extract_strided_slice %416 {offsets = [1, 0], sizes = [1, 128], strides = [1, 1]} : vector<2x128xf32> to vector<1x128xf32>
    %421 = vector.broadcast %420 : vector<1x128xf32> to vector<64x128xf32>
    %422 = arith.addf %419, %421 : vector<64x128xf32>
    %cst_221 = arith.constant 0.000000e+00 : f32
    %423 = vector.broadcast %cst_221 : f32 to vector<64x128xf32>
    %424 = arith.maximumf %422, %423 : vector<64x128xf32>
    %425 = arith.truncf %424 : vector<64x128xf32> to vector<64x128xbf16>
    %c0_222 = arith.constant 0 : index
    %c0_223 = arith.constant 0 : index
    %426 = vector.load %arg41[%c0_222, %c0_223] : memref<128x32xbf16, #tpu.memory_space<vmem>>, vector<128x32xbf16>
    %cst_224 = arith.constant dense<0.000000e+00> : vector<64x32xf32>
    %427 = tpu.matmul %425, %426, %cst_224 {dimension_numbers = #tpu.dot_dimension_numbers<[1], [0], [0], [1], [0, 0, 1, 1], [], []>} : vector<64x128xbf16>, vector<128x32xbf16>, vector<64x32xf32> -> vector<64x32xf32>
    %c0_225 = arith.constant 0 : index
    %c0_226 = arith.constant 0 : index
    %428 = vector.load %arg42[%c0_225, %c0_226] : memref<1x32xf32, #tpu.memory_space<vmem>>, vector<1x32xf32>
    %429 = vector.broadcast %428 : vector<1x32xf32> to vector<64x32xf32>
    %430 = arith.addf %427, %429 : vector<64x32xf32>
    %c0_227 = arith.constant 0 : index
    %c0_228 = arith.constant 0 : index
    %431 = vector.load %arg43[%c0_227, %c0_228] : memref<64x32xf32, #tpu.memory_space<vmem>>, vector<64x32xf32>
    tpu.vector_store %arg43[%c0_227, %c0_228], %430 {strides = array<i32>} : memref<64x32xf32, #tpu.memory_space<vmem>>, vector<64x32xf32>,
    return
  }
}

</mosaic_0001>

<bundles_post_ra>
// kernel: _lambda_.1
= control target key start
LH: loop header
LB: loop body
LE: loop exit
PB: predicated region body
PF: predicated region fallthrough
CT: control target
= control target key end

     0   :  { %s6388_s6 = smov 1   ;;  %s6389_s10 = smov 2   ;;  %s7417_s0 = inlined_call_operand.smem [shape: u32[44], index: -1, kind: input, shape index: {}] }
   0x1   :  { %s6451_s5 = sld [smem:[%s7417_s0]]   ;;  %s6390_s14 = smov 3  }
   0x2   :  { %s6456_s9 = sld [smem:[%s7417_s0 + %s6388_s6]]   ;;  %s6391_s18 = smov 4  }
   0x3   :  { %s6461_s13 = sld [smem:[%s7417_s0 + %s6389_s10]]   ;;  %s6392_s22 = smov 5  }
   0x4   :  { %s6466_s17 = sld [smem:[%s7417_s0 + %s6390_s14]]   ;;  %s6393_s26 = smov 6  }
   0x5   :  { %s6471_s21 = sld [smem:[%s7417_s0 + %s6391_s18]]   ;;  %s6394_s30 = smov 7  }
   0x6   :  { %s6476_s25 = sld [smem:[%s7417_s0 + %s6392_s22]]   ;;  %s6395_s4 = smov 8  }
   0x7   :  { %s6481_s29 = sld [smem:[%s7417_s0 + %s6393_s26]]   ;;  %s6396_s10 = smov 9  }
   0x8   :  { %s6486_s3 = sld [smem:[%s7417_s0 + %s6394_s30]]   ;;  %s6397_s15 = smov 10  }
   0x9   :  { %s6491_s8 = sld [smem:[%s7417_s0 + %s6395_s4]]   ;;  %s6398_s20 = smov 11  }
   0xa   :  { %s6496_s14 = sld [smem:[%s7417_s0 + %s6396_s10]]   ;;  %s6399_s26 = smov 12  }
   0xb   :  { %s6501_s19 = sld [smem:[%s7417_s0 + %s6397_s15]]   ;;  %s6400_s1 = smov 13  }
   0xc   :  { %s6506_s24 = sld [smem:[%s7417_s0 + %s6398_s20]]   ;;  %s6401_s7 = smov 14  }
   0xd   :  { %s6511_s30 = sld [smem:[%s7417_s0 + %s6399_s26]]   ;;  %s6402_s15 = smov 15  }
   0xe   :  { %s6516_s6 = sld [smem:[%s7417_s0 + %s6400_s1]]   ;;  %s6403_s22 = smov 16  }
   0xf   :  { %s6521_s12 = sld [smem:[%s7417_s0 + %s6401_s7]]   ;;  %s6404_s28 = smov 17  }
  0x10   :  { %s6526_s20 = sld [smem:[%s7417_s0 + %s6402_s15]]   ;;  %s6405_s7 = smov 18  }
  0x11   :  { %s6531_s27 = sld [smem:[%s7417_s0 + %s6403_s22]]   ;;  %s6406_s15 = smov 19  }
  0x12   :  { %s6536_s4 = sld [smem:[%s7417_s0 + %s6404_s28]]   ;;  %s6407_s22 = smov 20  }
  0x13   :  { %s6408_s28 = smov 21  }
  0x15   :  { %7437 = sst [smem:[#allocation12_spill]] %s6521_s12 }
  0x16   :  { %7438 = sst [smem:[#allocation13_spill]] %s6526_s20 }
  0x17   :  { %7439 = sst [smem:[#allocation14_spill]] %s6531_s27 }
  0x18   :  { %7440 = sst [smem:[#allocation15_spill]] %s6536_s4 }
  0x19   :  { %s6541_s12 = sld [smem:[%s7417_s0 + %s6405_s7]]   ;;  %s6409_s7 = smov 22  }
  0x1a   :  { %s6546_s20 = sld [smem:[%s7417_s0 + %s6406_s15]]   ;;  %s6410_s15 = smov 23  }
  0x1b   :  { %s6551_s27 = sld [smem:[%s7417_s0 + %s6407_s22]]   ;;  %s6411_s22 = smov 24  }
  0x1c   :  { %s6556_s4 = sld [smem:[%s7417_s0 + %s6408_s28]]   ;;  %s6412_s28 = smov 25  }
  0x1f   :  { %7441 = sst [smem:[#allocation16_spill]] %s6541_s12 }
  0x20   :  { %7442 = sst [smem:[#allocation17_spill]] %s6546_s20 }
  0x21   :  { %7443 = sst [smem:[#allocation18_spill]] %s6551_s27 }
  0x22   :  { %7444 = sst [smem:[#allocation19_spill]] %s6556_s4 }
  0x23   :  { %s6561_s12 = sld [smem:[%s7417_s0 + %s6409_s7]]   ;;  %s6413_s7 = smov 26  }
  0x24   :  { %s6566_s20 = sld [smem:[%s7417_s0 + %s6410_s15]]   ;;  %s6414_s15 = smov 27  }
  0x25   :  { %s6571_s27 = sld [smem:[%s7417_s0 + %s6411_s22]]   ;;  %s6415_s22 = smov 28  }
  0x26   :  { %s6576_s4 = sld [smem:[%s7417_s0 + %s6412_s28]]   ;;  %s6416_s28 = smov 29  }
  0x29   :  { %7445 = sst [smem:[#allocation20_spill]] %s6561_s12 }
  0x2a   :  { %7446 = sst [smem:[#allocation21_spill]] %s6566_s20 }
  0x2b   :  { %7447 = sst [smem:[#allocation22_spill]] %s6571_s27 }
  0x2c   :  { %7448 = sst [smem:[#allocation23_spill]] %s6576_s4 }
  0x2d   :  { %s6581_s12 = sld [smem:[%s7417_s0 + %s6413_s7]]   ;;  %s6417_s7 = smov 30  }
  0x2e   :  { %s6586_s20 = sld [smem:[%s7417_s0 + %s6414_s15]]   ;;  %s6418_s15 = smov 31  }
  0x2f   :  { %s6591_s27 = sld [smem:[%s7417_s0 + %s6415_s22]]   ;;  %s6419_s22 = smov 32  }
  0x30   :  { %s6596_s4 = sld [smem:[%s7417_s0 + %s6416_s28]]   ;;  %s6420_s28 = smov 33  }
  0x33   :  { %7449 = sst [smem:[#allocation24_spill]] %s6581_s12 }
  0x34   :  { %7450 = sst [smem:[#allocation25_spill]] %s6586_s20 }
  0x35   :  { %7451 = sst [smem:[#allocation26_spill]] %s6591_s27 }
  0x36   :  { %7452 = sst [smem:[#allocation27_spill]] %s6596_s4 }
  0x37   :  { %s6601_s12 = sld [smem:[%s7417_s0 + %s6417_s7]]   ;;  %s6421_s7 = smov 34  }
  0x38   :  { %s6606_s20 = sld [smem:[%s7417_s0 + %s6418_s15]]   ;;  %s6422_s15 = smov 35  }
  0x39   :  { %s6611_s27 = sld [smem:[%s7417_s0 + %s6419_s22]]   ;;  %s6423_s22 = smov 36  }
  0x3a   :  { %s6616_s4 = sld [smem:[%s7417_s0 + %s6420_s28]]   ;;  %s6424_s28 = smov 37  }
  0x3d   :  { %7453 = sst [smem:[#allocation28_spill]] %s6601_s12 }
  0x3e   :  { %7454 = sst [smem:[#allocation29_spill]] %s6606_s20 }
  0x3f   :  { %7455 = sst [smem:[#allocation30_spill]] %s6611_s27 }
  0x40   :  { %7456 = sst [smem:[#allocation31_spill]] %s6616_s4 }
  0x41   :  { %s6621_s12 = sld [smem:[%s7417_s0 + %s6421_s7]]   ;;  %s6425_s7 = smov 38  }
  0x42   :  { %s6626_s20 = sld [smem:[%s7417_s0 + %s6422_s15]]   ;;  %s6426_s15 = smov 39  }
  0x43   :  { %s6631_s27 = sld [smem:[%s7417_s0 + %s6423_s22]]   ;;  %s6427_s22 = smov 40  }
  0x44   :  { %s6636_s4 = sld [smem:[%s7417_s0 + %s6424_s28]]   ;;  %s6428_s28 = smov 41  }
  0x47   :  { %7457 = sst [smem:[#allocation32_spill]] %s6621_s12 }
  0x48   :  { %7458 = sst [smem:[#allocation33_spill]] %s6626_s20 }
  0x49   :  { %7459 = sst [smem:[#allocation34_spill]] %s6631_s27 }
  0x4a   :  { %7460 = sst [smem:[#allocation35_spill]] %s6636_s4 }
  0x4b   :  { %s6641_s12 = sld [smem:[%s7417_s0 + %s6425_s7]]   ;;  %s6429_s7 = smov 42  }
  0x4c   :  { %s6646_s20 = sld [smem:[%s7417_s0 + %s6426_s15]]   ;;  %s6430_s15 = smov 43  }
  0x4d   :  { %s6651_s27 = sld [smem:[%s7417_s0 + %s6427_s22]]  }
  0x4e   :  { %s6656_s4 = sld [smem:[%s7417_s0 + %s6428_s28]]  }
  0x51   :  { %7461 = sst [smem:[#allocation36_spill]] %s6641_s12 }
  0x52   :  { %7462 = sst [smem:[#allocation37_spill]] %s6646_s20 }
  0x53   :  { %s6661_s12 = sld [smem:[%s7417_s0 + %s6429_s7]]  }
  0x54   :  { %s6666_s20 = sld [smem:[%s7417_s0 + %s6430_s15]]  }
  0x55   :  { %92 = vsyncpa [#allocation3], 0 }
  0x56   :  { %93 = vsyncpa [#allocation6], 0 }
  0x57   :  { %94 = vsyncpa [#allocation4], 0  ;;  %s6431_s22 = smov [#allocation5]   ;;  %s6432_s26 = smov [#allocation2]  }
  0x58   :  { %s119_s23 = sshll.u32 %s6431_s22, 4  ;;  %s109_s28 = sshll.u32 %s6432_s26, 4  ;;  %s120_s23 = int_to_ptr.vmem [resolvable:$true] %s119_s23  ;;  %s110_s28 = int_to_ptr.vmem [resolvable:$true] %s109_s28 }
  0x59   :  { %s6294_s1 = scalar_lea.hbm %s6476_s25, 32 }
  0x5a   :  { %p6295_p0 = scmp.ne.s32.totalorder %s6476_s25, %s6294_s1  ;;  %p6298_p1 = scmp.lt.u32.totalorder %s6294_s1, %s6476_s25 }
  0x5c   :  { %p6300_p2 = pnand %p6298_p1, %p6295_p0 }
  0x5e   :  { %6303 = shalt.err (!%p6300_p2)
}
  0x5f   :  { %s6304_s2 = scalar_lea.vmem %s120_s23, 32  ;;  %p6309_p4 = scmp.lt.s32.totalorder %s120_s23, %s120_s23 }
  0x60   :  { %p6305_p3 = scmp.ne.s32.totalorder %s120_s23, %s6304_s2  ;;  %p6310_p5 = scmp.lt.s32.totalorder %s6304_s2, %s6304_s2 }
  0x62   :  { %p6311_p6 = por %p6310_p5, %p6309_p4 }
  0x64   :  { %p6312_p7 = pnand %p6311_p6, %p6305_p3 }
  0x66   :  { %6315 = shalt.err (!%p6312_p7)
}
  0x67   :  { %122 = dma.hbm_to_vmem [thread:$0]  %s6476_s25, 32, %s120_s23, [#allocation6]  }
  0x68   :  { %s6316_s0 = scalar_lea.hbm %s6471_s21, 64 }
  0x69   :  { %p6317_p8 = scmp.ne.s32.totalorder %s6471_s21, %s6316_s0  ;;  %p6320_p9 = scmp.lt.u32.totalorder %s6316_s0, %s6471_s21 }
  0x6b   :  { %p6322_p10 = pnand %p6320_p9, %p6317_p8 }
  0x6d   :  { %6325 = shalt.err (!%p6322_p10)
}
  0x6e   :  { %s6326_s7 = scalar_lea.vmem %s110_s28, 64  ;;  %p6331_p12 = scmp.lt.s32.totalorder %s110_s28, %s110_s28 }
  0x6f   :  { %p6327_p11 = scmp.ne.s32.totalorder %s110_s28, %s6326_s7  ;;  %p6332_p13 = scmp.lt.s32.totalorder %s6326_s7, %s6326_s7 }
  0x71   :  { %p6333_p0 = por %p6332_p13, %p6331_p12 }
  0x73   :  { %p6334_p1 = pnand %p6333_p0, %p6327_p11 }
  0x75   :  { %6337 = shalt.err (!%p6334_p1)
}
  0x76   :  { %112 = dma.hbm_to_vmem [thread:$0]  %s6471_s21, 64, %s110_s28, [#allocation3]  }
  0x77   :  { %s6433_s10 = smov [#allocation7]   ;;  %s6338_s25 = scalar_lea.hbm %s6501_s19, 32 }
  0x78   :  { %s137_s11 = sshll.u32 %s6433_s10, 4  ;;  %p6339_p2 = scmp.ne.s32.totalorder %s6501_s19, %s6338_s25  ;;  %s138_s11 = int_to_ptr.vmem [resolvable:$true] %s137_s11 }
  0x79   :  { %p6342_p3 = scmp.lt.u32.totalorder %s6338_s25, %s6501_s19 }
  0x7b   :  { %p6344_p4 = pnand %p6342_p3, %p6339_p2 }
  0x7d   :  { %6347 = shalt.err (!%p6344_p4)
}
  0x7e   :  { %s6348_s15 = scalar_lea.vmem %s138_s11, 32  ;;  %p6353_p6 = scmp.lt.s32.totalorder %s138_s11, %s138_s11 }
  0x7f   :  { %p6349_p5 = scmp.ne.s32.totalorder %s138_s11, %s6348_s15  ;;  %p6354_p7 = scmp.lt.s32.totalorder %s6348_s15, %s6348_s15 }
  0x81   :  { %p6355_p8 = por %p6354_p7, %p6353_p6 }
  0x83   :  { %p6356_p9 = pnand %p6355_p8, %p6349_p5 }
  0x85   :  { %6359 = shalt.err (!%p6356_p9)
}
  0x86   :  { %140 = dma.hbm_to_vmem [thread:$0]  %s6501_s19, 32, %s138_s11, [#allocation6]  }
  0x87   :  { %6382 = dma.done.wait [#allocation3], 64  }
  0x88   :  { %6383 = vsyncadd [#allocation3], 4294967232 }
  0x89   :  { %6384 = dma.done.wait [#allocation6], 64  }
  0x8a   :  { %6385 = vsyncadd [#allocation6], 4294967232  ;;  %v215_v0 = vld [vmem:[%s6451_s5] sm:$0xff]  ;;  %v216_v1 = vld [vmem:[%s6451_s5 + $0x8] sm:$0xff]  ;;  %vm241_vm0 = vcmask 523264   ;;  %vm455_vm1 = vcmask 261120  }
  0x8b   :  { %v217_v2 = vld [vmem:[%s6451_s5 + $0x10] sm:$0xff]  ;;  %v223_v3 = vpack.c.bf16 %v216_v1, %v215_v0  ;;  %v218_v4 = vld [vmem:[%s6451_s5 + $0x18] sm:$0xff]  ;;  %v219_v6 = vld [vmem:[%s6451_s5 + $0x20] sm:$0xff]  ;;  %vm514_vm2 = vcmask 785408   ;;  %v6436_v53 = vmov 0.0|0.0   ;;  %vm6437_vm3 = vmmov 0  }
  0x8c   :  { %v224_v5 = vpack.c.bf16 %v218_v4, %v217_v2  ;;  %v220_v7 = vld [vmem:[%s6451_s5 + $0x28] sm:$0xff]  ;;  %v6113_v8 = vld [vmem:[%s6456_s9] sm:$0xff]   ;;  %v221_v9 = vld [vmem:[%s6451_s5 + $0x30] sm:$0xff]  ;;  %v6438_v62 = vmov 0.0   ;;  %vm598_vm4 = vcmask 1040384   ;;  %vm706_vm5 = vcmask 1043456  }
  0x8d   :  { %5266 = vmatprep.subr.bf16.mxu1 %v223_v3  ;;  %5290 = vmatprep.subr.bf16.mxu0 %v223_v3  ;;  %v225_v10 = vpack.c.bf16 %v220_v7, %v219_v6  ;;  %v6115_v11 = vld [vmem:[%s6456_s9 + $0x20] sm:$0xff]   ;;  %v222_v12 = vld [vmem:[%s6451_s5 + $0x38] sm:$0xff]  ;;  %v6114_v14 = vld [vmem:[%s6456_s9 + $0x8] sm:$0xff]   ;;  %s6434_s5 = smov 64   ;;  %vm702_vm6 = vcmask 31744   ;;  %vm1232_vm7 = vcmask 130048  }
  0x8e   :  { %5267 = vmatpush3.bf16.msra.mxu1 %v223_v3  ;;  %5291 = vmatpush3.bf16.msra.mxu0 %v223_v3  ;;  %v226_v13 = vpack.c.bf16 %v222_v12, %v221_v9  ;;  %v6116_v15 = vld [vmem:[%s6456_s9 + $0x28] sm:$0xff]   ;;  %v6117_v16 = vld [vmem:[%s6456_s9 + $0x10] sm:$0xff]   ;;  %v6118_v17 = vld [vmem:[%s6456_s9 + $0x18] sm:$0xff]   ;;  %s6435_s9 = smov 32   ;;  %s7465_s21 = sld [smem:[#allocation15_spill]]  ;;  %vm1940_vm8 = vcmask 64512  }
  0x8f   :  { %5268 = vmatprep.subr.bf16.mxu1 %v224_v5  ;;  %5292 = vmatprep.subr.bf16.mxu0 %v224_v5  ;;  %v6119_v18 = vld [vmem:[%s6461_s13] sm:$0xff]   ;;  %v6120_v19 = vld [vmem:[%s6461_s13 + $0x8] sm:$0xff]   ;;  %v6121_v20 = vld [vmem:[%s6461_s13 + $0x10] sm:$0xff]   ;;  %s7470_s19 = sld [smem:[#allocation18_spill]]  ;;  %vm2712_vm9 = vcmask 1041408   ;;  %s7474_s16 = sld [smem:[#allocation25_spill]] }
  0x90   :  { %5274 = vmatprep.mubr.msk.bf16.mxu1 %vm241_vm0, %v6113_v8  ;;  %5298 = vmatprep.mubr.msk.bf16.mxu0 %vm241_vm0, %v6115_v11  ;;  %v6122_v21 = vld [vmem:[%s6461_s13 + $0x18] sm:$0xff]   ;;  %v6123_v22 = vld [vmem:[%s6461_s13 + $0x20] sm:$0xff]   ;;  %v6124_v35 = vld [vmem:[%s6461_s13 + $0x28] sm:$0xff]   ;;  %s7463_s13 = sld [smem:[#allocation12_spill]]  ;;  %s7475_s18 = sld [smem:[#allocation23_spill]] }
  0x91   :  { %v600_v50 = vld [vmem:[%s6466_s17] sm:$0xff]  ;;  %v601_v51 = vld [vmem:[%s6466_s17 + $0x8] sm:$0xff]  ;;  %v602_v54 = vld [vmem:[%s6466_s17 + $0x10] sm:$0xff]  ;;  %s7476_s22 = sld [smem:[#allocation24_spill]]  ;;  %s7477_s23 = sld [smem:[#allocation26_spill]] }
  0x92   :  { %5269 = vmatpush3.bf16.msra.mxu1 %v224_v5  ;;  %5293 = vmatpush3.bf16.msra.mxu0 %v224_v5  ;;  %v5841_v52 = vpack.c.bf16 %v601_v51, %v600_v50  ;;  %v603_v55 = vld [vmem:[%s6466_s17 + $0x18] sm:$0xff]  ;;  %v604_v57 = vld [vmem:[%s6466_s17 + $0x20] sm:$0xff]  ;;  %v605_v58 = vld [vmem:[%s6466_s17 + $0x28] sm:$0xff]  ;;  %s7478_s26 = sld [smem:[#allocation27_spill]]  ;;  %s7479_s28 = sld [smem:[#allocation30_spill]] }
  0x93   :  { %5270 = vmatprep.subr.bf16.mxu1 %v225_v10  ;;  %5294 = vmatprep.subr.bf16.mxu0 %v225_v10  ;;  %v5844_v56 = vpack.c.bf16 %v603_v55, %v602_v54  ;;  %v5847_v59 = vpack.c.bf16 %v605_v58, %v604_v57  ;;  %v606_v60 = vld [vmem:[%s6466_s17 + $0x30] sm:$0xff]  ;;  %v607_v61 = vld [vmem:[%s6466_s17 + $0x38] sm:$0xff]  ;;  %s7464_s17 = sld [smem:[#allocation13_spill]]  ;;  %s7480_s1 = sld [smem:[#allocation28_spill]] }
  0x94   :  { %v5850_v63 = vpack.c.bf16 %v607_v61, %v606_v60  ;;  %s7481_s2 = sld [smem:[#allocation29_spill]]  ;;  %s7482_s0 = sld [smem:[#allocation31_spill]] }
  0x95   :  { %s7483_s7 = sld [smem:[#allocation32_spill]]  ;;  %s7484_s10 = sld [smem:[#allocation35_spill]] }
  0x96   :  { %5271 = vmatpush3.bf16.msra.mxu1 %v225_v10  ;;  %5295 = vmatpush3.bf16.msra.mxu0 %v225_v10  ;;  %s7485_s11 = sld [smem:[#allocation33_spill]]  ;;  %s7486_s25 = sld [smem:[#allocation34_spill]] }
  0x97   :  { %5272 = vmatprep.subr.bf16.mxu1 %v226_v13  ;;  %5296 = vmatprep.subr.bf16.mxu0 %v226_v13  ;;  %s7487_s15 = sld [smem:[#allocation36_spill]] }
  0x9a   :  { %5273 = vmatpush3.bf16.msra.mxu1 %v226_v13  ;;  %5297 = vmatpush3.bf16.msra.mxu0 %v226_v13 }
  0x9b   :  { %5278 = vmatprep.subr.bf16.mxu1 %v223_v3  ;;  %5840 = vmatprep.subr.bf16.mxu0 %v6436_v53 }
  0x9d   :  { %5275 = vmatmul.mubr.msk.bf16.vlgmr.msra.gmra.mrb[0].mxu1 %vm241_vm0, %v6114_v14  ;;  %5299 = vmatmul.mubr.msk.bf16.vlgmr.msra.gmra.mrb[0].mxu0 %vm241_vm0, %v6116_v15 }
  0x9e   :  { %5279 = vmatpush3.bf16.msra.mxu1 %v223_v3  ;;  %5286 = vmatprep.mubr.msk.bf16.mxu1 %vm241_vm0, %v6117_v16 }
  0x9f   :  { %5280 = vmatprep.subr.bf16.mxu1 %v224_v5  ;;  %5842 = vmatpush3.bf16.msra.mxu0 %v5841_v52  ;;  %v780_v52 = vlaneseq }
  0xa0   :  { %5843 = vmatprep.subr.bf16.mxu0 %v6436_v53  ;;  %5334 = vmatprep.mubr.msk.f32.mxu0 %vm6437_vm3, %v6438_v62 }
  0xa1   :  { %v781_v54 = vshrl.u32 %v780_v52, 7 }
  0xa2   :  { %5281 = vmatpush3.bf16.msra.mxu1 %v224_v5 }
  0xa3   :  { %5282 = vmatprep.subr.bf16.mxu1 %v225_v10  ;;  %5845 = vmatpush3.bf16.msra.mxu0 %v5844_v56  ;;  %v6768_v55 = vsub.s32 0, %v781_v54  ;;  %v6770_v56 = vsub.s32 1, %v781_v54 }
  0xa4   :  { %5846 = vmatprep.subr.bf16.mxu0 %v6436_v53 }
  0xa6   :  { %5283 = vmatpush3.bf16.msra.mxu1 %v225_v10 }
  0xa7   :  { %5284 = vmatprep.subr.bf16.mxu1 %v226_v13  ;;  %5848 = vmatpush3.bf16.msra.mxu0 %v5847_v59 }
  0xa8   :  { %5849 = vmatprep.subr.bf16.mxu0 %v6436_v53 }
  0xaa   :  { %5285 = vmatpush3.bf16.msra.mxu1 %v226_v13 }
  0xab   :  { %5302 = vmatprep.subr.bf16.mxu1 %v6119_v18  ;;  %5851 = vmatpush3.bf16.msra.mxu0 %v5850_v63 }
  0xac   :  { %5342 = vmatprep.subr.bf16.mxu0 %v6438_v62 }
  0xad   :  { %5287 = vmatmul.mubr.msk.bf16.vlgmr.msra.gmra.mrb[4].mxu1 %vm241_vm0, %v6118_v17 }
  0xae   :  { %5303 = vmatpush3.bf16.msra.mxu1 %v6119_v18 }
  0xaf   :  { %5304 = vmatprep.subr.bf16.mxu1 %v6120_v19 }
  0xb2   :  { %5305 = vmatpush3.bf16.msra.mxu1 %v6120_v19 }
  0xb3   :  { %5306 = vmatprep.subr.bf16.mxu1 %v6121_v20 }
  0xb6   :  { %5307 = vmatpush3.bf16.msra.mxu1 %v6121_v20 }
  0xb7   :  { %5308 = vmatprep.subr.bf16.mxu1 %v6122_v21 }
  0xba   :  { %5309 = vmatpush3.bf16.msra.mxu1 %v6122_v21 }
  0xbb   :  { %5310 = vmatprep.subr.bf16.mxu1 %v6123_v22 }
  0xbe   :  { %5311 = vmatpush3.bf16.msra.mxu1 %v6123_v22 }
  0xbf   :  { %5312 = vmatprep.subr.bf16.mxu1 %v6124_v35 }
  0xc2   :  { %5313 = vmatpush3.bf16.msra.mxu1 %v6124_v35  ;;  %v701_v35 = vld [vmem:[#allocation2] sm:$0xf] }
  0xc3   :  { %5337 = vmatprep.subr.mxu1 %v6438_v62 }
 0x170   :  { %v5276_v23 = vpop.f32.mrb[0].mxu1  ;;  %v5300_v24 = vpop.f32.mrb[0].mxu0 }
 0x171   :  { %v282_v25 = vpop.f32.mrb[1].mxu1  ;;  %v426_v26 = vpop.f32.mrb[1].mxu0 }
 0x172   :  { %v5277_v27 = vpop.f32.mrb[2].mxu1  ;;  %v5301_v28 = vpop.f32.mrb[2].mxu0 }
 0x173   :  { %v298_v29 = vpack.c.bf16 %v5277_v27, %v5276_v23  ;;  %v285_v30 = vpop.f32.mrb[3].mxu1  ;;  %v442_v31 = vpack.c.bf16 %v5301_v28, %v5300_v24  ;;  %v429_v32 = vpop.f32.mrb[3].mxu0 }
 0x174   :  { %v297_v33 = vpack.c.bf16 %v285_v30, %v282_v25  ;;  %v441_v34 = vpack.c.bf16 %v429_v32, %v426_v26 }
 0x176   :  { %451 = vrot.lane.b32.xlu1 %v441_v34, %s6434_s5 }
 0x17a   :  { %453 = vrot.lane.b32.xlu1 %v442_v31, %s6434_s5 }
 0x180   :  { %v5288_v36 = vpop.f32.mrb[4].mxu1 }
 0x181   :  { %v354_v37 = vpop.f32.mrb[5].mxu1 }
 0x182   :  { %v5289_v38 = vpop.f32.mrb[6].mxu1 }
 0x183   :  { %v370_v39 = vpack.c.bf16 %v5289_v38, %v5288_v36  ;;  %v357_v40 = vpop.f32.mrb[7].mxu1 }
 0x184   :  { %v369_v41 = vpack.c.bf16 %v357_v40, %v354_v37 }
 0x186   :  { %445 = vrot.lane.b32.xlu0 %v369_v41, %s6435_s9 }
 0x18a   :  { %447 = vrot.lane.b32.xlu0 %v370_v39, %s6435_s9 }
 0x1e8   :  { %v452_v42 = vpop.permute.xlu1 %451 }
 0x1ec   :  { %v454_v47 = vpop.permute.xlu1 %453 }
 0x1f8   :  { %v446_v43 = vpop.permute.xlu0 %445 }
 0x1f9   :  { %v458_v44 = vsel %vm455_vm1, %v297_v33, %v446_v43 }
 0x1fa   :  { %v463_v45 = vsel %vm241_vm0, %v458_v44, %v452_v42 }
 0x1fb   :  { %5314 = vmatprep.mubr.msk.bf16.mxu1 %vm514_vm2, %v463_v45  ;;  %v688_v45 = vld [vmem:[#allocation5] sm:$0x3] }
 0x1fc   :  { %v448_v46 = vpop.permute.xlu0 %447 }
 0x1fd   :  { %v461_v48 = vsel %vm455_vm1, %v298_v29, %v448_v46 }
 0x1fe   :  { %v465_v49 = vsel %vm241_vm0, %v461_v48, %v454_v47 }
 0x1ff   :  { %5315 = vmatmul.mubr.msk.bf16.vlgmr.msra.gmra.mrb[8].mxu1 %vm514_vm2, %v465_v49 }
 0x200   :  { %5339 = vmatprep.mubr.msk.f32.mxu1 %vm6437_vm3, %v6438_v62  ;;  %5338 = vmatpush3.msk.msra.mxu1 %vm706_vm5, %v701_v35  ;;  %v1129_v35 = vld [vmem:[%s6491_s8 + $0x28] sm:$0xff] }
 0x201   :  { %5350 = vmatprep.subr.bf16.mxu1 %v6438_v62 }
 0x2d2   :  { %v6730_v0 = vpop.f32.mrb[8].mxu1 }
 0x2d3   :  { %v6732_v1 = vpop.f32.mrb[9].mxu1  ;;  %v583_v5 = vmul.f32 %v6730_v0, %v6730_v0  ;;  %v571_v10 = vsel %vm241_vm0, %v6730_v0, 0.0 }
 0x2d4   :  { %v581_v2 = vmul.f32 %v6732_v1, %v6732_v1  ;;  %v6736_v3 = vpop.f32.mrb[10].mxu1  ;;  %v568_v6 = vsel %vm241_vm0, %v6732_v1, 0.0 }
 0x2d5   :  { %v6738_v4 = vpop.f32.mrb[11].mxu1  ;;  %v584_v12 = vmul.f32 %v6736_v3, %v6736_v3  ;;  %v588_v16 = vsel %vm241_vm0, %v583_v5, 0.0  ;;  %v573_v17 = vsel %vm241_vm0, %v6736_v3, 0.0 }
 0x2d6   :  { %v569_v7 = vsel %vm241_vm0, %v6738_v4, 0.0  ;;  %v582_v8 = vmul.f32 %v6738_v4, %v6738_v4  ;;  %v585_v11 = vsel %vm241_vm0, %v581_v2, 0.0 }
 0x2d7   :  { %v570_v9 = vadd.f32 %v569_v7, %v568_v6  ;;  %v590_v20 = vsel %vm241_vm0, %v584_v12, 0.0 }
 0x2d8   :  { %v586_v13 = vsel %vm241_vm0, %v582_v8, 0.0 }
 0x2d9   :  { %v572_v14 = vadd.f32 %v571_v10, %v570_v9  ;;  %v587_v15 = vadd.f32 %v586_v13, %v585_v11 }
 0x2db   :  { %v574_v18 = vadd.f32 %v573_v17, %v572_v14  ;;  %v589_v19 = vadd.f32 %v588_v16, %v587_v15  ;;  %v6439_v16 = vmov 0   ;;  %v6129_v17 = vld [vmem:[%s6486_s3 + $0x8] sm:$0xff]  }
 0x2dd   :  { %v575_v21 = vrot.slane %v574_v18, 4  ;;  %v591_v22 = vadd.f32 %v590_v20, %v589_v19  ;;  %v6131_v19 = vld [vmem:[%s6486_s3 + $0x18] sm:$0xff]   ;;  %v6132_v20 = vld [vmem:[%s6486_s3 + $0x20] sm:$0xff]  }
 0x2df   :  { %v576_v23 = vadd.f32 %v575_v21, %v574_v18  ;;  %v592_v24 = vrot.slane %v591_v22, 4  ;;  %v6130_v18 = vld [vmem:[%s6486_s3 + $0x10] sm:$0xff]   ;;  %v6133_v21 = vld [vmem:[%s6486_s3 + $0x28] sm:$0xff]  }
 0x2e1   :  { %v577_v25 = vrot.slane %v576_v23, 2  ;;  %v593_v26 = vadd.f32 %v592_v24, %v591_v22  ;;  %v6134_v22 = vld [vmem:[%s6486_s3 + $0x30] sm:$0xff]   ;;  %v6136_v24 = vld [vmem:[%s6486_s3 + $0x40] sm:$0xff]  }
 0x2e3   :  { %v578_v27 = vadd.f32 %v577_v25, %v576_v23  ;;  %v594_v28 = vrot.slane %v593_v26, 2  ;;  %v6135_v23 = vld [vmem:[%s6486_s3 + $0x38] sm:$0xff]   ;;  %v6137_v25 = vld [vmem:[%s6486_s3 + $0x48] sm:$0xff]  }
 0x2e5   :  { %v579_v29 = vrot.slane %v578_v27, 1  ;;  %v595_v30 = vadd.f32 %v594_v28, %v593_v26  ;;  %v6138_v26 = vld [vmem:[%s6486_s3 + $0x50] sm:$0xff]   ;;  %v1124_v28 = vld [vmem:[%s6491_s8] sm:$0xff] }
 0x2e7   :  { %v596_v31 = vrot.slane %v595_v30, 1  ;;  %v580_v32 = vadd.f32 %v579_v29, %v578_v27  ;;  %v6139_v27 = vld [vmem:[%s6486_s3 + $0x58] sm:$0xff]   ;;  %v1125_v29 = vld [vmem:[%s6491_s8 + $0x8] sm:$0xff] }
 0x2e9   :  { %v597_v33 = vadd.f32 %v596_v31, %v595_v30  ;;  %v1126_v30 = vld [vmem:[%s6491_s8 + $0x10] sm:$0xff]  ;;  %v5853_v31 = vpack.c.bf16 %v1125_v29, %v1124_v28 }
 0x2eb   :  { %v599_v34 = vsel %vm598_vm4, %v580_v32, %v597_v33  ;;  %v1127_v32 = vld [vmem:[%s6491_s8 + $0x18] sm:$0xff] }
 0x2ec   :  { %5335 = vmatmul.mubr.msk.f32.vlgmr.msra.gmra.mrb[4].mxu0 %vm241_vm0, %v599_v34  ;;  %v5856_v33 = vpack.c.bf16 %v1127_v32, %v1126_v30  ;;  %v1128_v34 = vld [vmem:[%s6491_s8 + $0x20] sm:$0xff]  ;;  %v1231_v32 = vld [vmem:[%s6496_s14 + $0x8] sm:$0xff] }
 0x2ed   :  { %5346 = vmatprep.mubr.msk.bf16.mxu0 %vm6437_vm3, %v6438_v62 }
 0x3bf   :  { %v677_v36 = vpop.f32.mrb[4].mxu0 }
 0x3c0   :  { %v681_v37 = vmul.f32 0.001953125, %v677_v36  ;;  %v5336_v38 = vpop.f32.mrb[5].mxu0 }
 0x3c1   :  { %v5859_v38 = vpack.c.bf16 %v1129_v35, %v1128_v34 }
 0x3c2   :  { %v682_v39 = vmul.f32 %v681_v37, %v681_v37 }
 0x3c4   :  { %v684_v40 = vrot.slane %v682_v39, 7 }
 0x3c6   :  { %v686_v41 = vsub.f32 %v681_v37, %v684_v40 }
 0x3c8   :  { %v687_v42 = vmax.f32 %v686_v41, 0.0 }
 0x3ca   :  { %v689_v43 = vadd.f32 1e-05, %v687_v42 }
 0x3cc   :  { %6278 = vrsqrt.f32 %v689_v43 }
 0x3d6   :  { %v6279_v44 = vpop.eup %6278 }
 0x3d7   :  { %v692_v46 = vrot.slane %v6279_v44, 1 }
 0x3d9   :  { %v694_v47 = vmul.f32 %v692_v46, %v688_v45 }
 0x3db   :  { %v695_v48 = vmul.f32 %v694_v47, %v681_v37 }
 0x3dd   :  { %v697_v49 = vrot.slane %v695_v48, 7 }
 0x3df   :  { %v699_v50 = vsub.f32 %v688_v45, %v697_v49 }
 0x3e1   :  { %v700_v51 = vsel %vm598_vm4, %v694_v47, %v699_v50 }
 0x3e2   :  { %5340 = vmatmul.mubr.msk.f32.vlgmr.msra.gmra.mrb[12].mxu1 %vm702_vm6, %v700_v51 }
 0x3e3   :  { %5354 = vmatprep.mubr.msk.bf16.mxu1 %vm6437_vm3, %v6438_v62 }
 0x4b5   :  { %v776_v57 = vpop.f32.mrb[12].mxu1 }
 0x4b6   :  { %v783_v58 = vrot.slane %v776_v57, %v6768_v55  ;;  %v5341_v59 = vpop.f32.mrb[13].mxu1  ;;  %v791_v60 = vrot.slane %v776_v57, %v6770_v56  ;;  %v1130_v57 = vld [vmem:[%s6491_s8 + $0x30] sm:$0xff] }
 0x4b8   :  { %v784_v61 = vmul.f32 %v783_v58, %v6732_v1  ;;  %v785_v63 = vmul.f32 %v783_v58, %v6738_v4  ;;  %v786_v2 = vmul.f32 %v6730_v0, %v783_v58  ;;  %v787_v5 = vmul.f32 %v6736_v3, %v783_v58  ;;  %v6125_v0 = vld [vmem:[%s6481_s29 + $0x8] sm:$0xff]   ;;  %v6126_v1 = vld [vmem:[%s6481_s29] sm:$0xff]   ;;  %v6127_v3 = vld [vmem:[%s6481_s29 + $0x10] sm:$0xff]   ;;  %s7466_s29 = sld [smem:[#allocation14_spill]] }
 0x4b9   :  { %v6128_v4 = vld [vmem:[%s6486_s3] sm:$0xff]   ;;  %v1131_v58 = vld [vmem:[%s6491_s8 + $0x38] sm:$0xff]  ;;  %s7467_s3 = sld [smem:[#allocation16_spill]] }
 0x4ba   :  { %v792_v6 = vadd.f32 %v791_v60, %v784_v61  ;;  %v793_v7 = vadd.f32 %v791_v60, %v785_v63  ;;  %v794_v8 = vadd.f32 %v791_v60, %v786_v2  ;;  %v795_v9 = vadd.f32 %v791_v60, %v787_v5  ;;  %v1132_v60 = vld [vmem:[%s6491_s8 + $0x40] sm:$0xff]  ;;  %v1133_v61 = vld [vmem:[%s6491_s8 + $0x48] sm:$0xff]  ;;  %v1134_v2 = vld [vmem:[%s6491_s8 + $0x50] sm:$0xff] }
 0x4bb   :  { %v5862_v59 = vpack.c.bf16 %v1131_v58, %v1130_v57  ;;  %v5865_v63 = vpack.c.bf16 %v1133_v61, %v1132_v60  ;;  %v1135_v5 = vld [vmem:[%s6491_s8 + $0x58] sm:$0xff] }
 0x4bc   :  { %v796_v10 = vmax.f32 %v792_v6, 0.0  ;;  %v797_v11 = vmax.f32 %v793_v7, 0.0  ;;  %v798_v12 = vmax.f32 %v794_v8, 0.0  ;;  %v799_v13 = vmax.f32 %v795_v9, 0.0  ;;  %v1136_v7 = vld [vmem:[%s6491_s8 + $0x60] sm:$0xff]  ;;  %v1137_v8 = vld [vmem:[%s6491_s8 + $0x68] sm:$0xff] }
 0x4bd   :  { %v5868_v6 = vpack.c.bf16 %v1135_v5, %v1134_v2  ;;  %v5871_v9 = vpack.c.bf16 %v1137_v8, %v1136_v7  ;;  %v1321_v5 = vld [vmem:[%s6506_s24] sm:$0xf] }
 0x4be   :  { %v800_v14 = vpack.c.bf16 %v797_v11, %v796_v10  ;;  %v801_v15 = vpack.c.bf16 %v799_v13, %v798_v12  ;;  %v1138_v10 = vld [vmem:[%s6491_s8 + $0x70] sm:$0xff]  ;;  %v1139_v11 = vld [vmem:[%s6491_s8 + $0x78] sm:$0xff]  ;;  %v6140_v7 = vld [vmem:[%s6511_s30 + $0x40] sm:$0xff]   ;;  %s7468_s8 = sld [smem:[#allocation17_spill]] }
 0x4bf   :  { %v5874_v12 = vpack.c.bf16 %v1139_v11, %v1138_v10  ;;  %v6142_v8 = vld [vmem:[%s6511_s30 + $0x80] sm:$0xff]  }
 0x4c0   :  { %5343 = vmatpush3.bf16.msra.mxu0 %v800_v14  ;;  %5351 = vmatpush3.bf16.msra.mxu1 %v800_v14  ;;  %v4789_v10 = vld [vmem:[%s6506_s24 + $0x4] sm:$0xf] }
 0x4c1   :  { %5344 = vmatprep.subr.bf16.mxu0 %v6438_v62  ;;  %5352 = vmatprep.subr.bf16.mxu1 %v6438_v62  ;;  %v6141_v11 = vld [vmem:[%s6511_s30] sm:$0xff]  }
 0x4c4   :  { %5345 = vmatpush3.bf16.msra.mxu0 %v801_v15  ;;  %5353 = vmatpush3.bf16.msra.mxu1 %v801_v15 }
 0x4c5   :  { %5358 = vmatprep.subr.bf16.mxu0 %v6438_v62  ;;  %1066 = vmatprep.subr.bf16.mxu1 %v6439_v16 }
 0x4c7   :  { %5355 = vmatmul.mubr.msk.bf16.vlgmr.msra.gmra.mrb[16].mxu1 %vm455_vm1, %v6125_v0  ;;  %5347 = vmatmul.mubr.msk.bf16.vlgmr.msra.gmra.mrb[8].mxu0 %vm455_vm1, %v6126_v1 }
 0x4c8   :  { %5359 = vmatpush3.bf16.msra.mxu0 %v800_v14  ;;  %5362 = vmatprep.mubr.msk.bf16.mxu0 %vm6437_vm3, %v6438_v62 }
 0x4c9   :  { %5360 = vmatprep.subr.bf16.mxu0 %v6438_v62  ;;  %1067 = vmatpush1.bf16.msra.mxu1 %v6128_v4 }
 0x4ca   :  { %1068 = vmatprep.subr.bf16.mxu1 %v6439_v16 }
 0x4cc   :  { %5361 = vmatpush3.bf16.msra.mxu0 %v801_v15 }
 0x4cd   :  { %5852 = vmatprep.subr.bf16.mxu0 %v6436_v53  ;;  %1069 = vmatpush1.bf16.msra.mxu1 %v6129_v17 }
 0x4ce   :  { %1070 = vmatprep.subr.bf16.mxu1 %v6439_v16 }
 0x4cf   :  { %5363 = vmatmul.mubr.msk.bf16.vlgmr.msra.gmra.mrb[12].mxu0 %vm455_vm1, %v6127_v3 }
 0x4d0   :  { %5398 = vmatprep.mubr.msk.f32.mxu0 %vm6437_vm3, %v6438_v62  ;;  %5854 = vmatpush3.bf16.msra.mxu0 %v5853_v31  ;;  %v1230_v31 = vld [vmem:[%s6496_s14] sm:$0xff]  ;;  %s7469_s14 = sld [smem:[#allocation20_spill]] }
 0x4d1   :  { %1071 = vmatpush1.bf16.msra.mxu1 %v6130_v18  ;;  %5855 = vmatprep.subr.bf16.mxu0 %v6436_v53 }
 0x4d2   :  { %1072 = vmatprep.subr.bf16.mxu1 %v6439_v16 }
 0x4d4   :  { %5857 = vmatpush3.bf16.msra.mxu0 %v5856_v33  ;;  %v5877_v33 = vpack.c.bf16 %v1231_v32, %v1230_v31 }
 0x4d5   :  { %1073 = vmatpush1.bf16.msra.mxu1 %v6131_v19  ;;  %5858 = vmatprep.subr.bf16.mxu0 %v6436_v53 }
 0x4d6   :  { %1074 = vmatprep.subr.bf16.mxu1 %v6439_v16 }
 0x4d8   :  { %5860 = vmatpush3.bf16.msra.mxu0 %v5859_v38 }
 0x4d9   :  { %1075 = vmatpush1.bf16.msra.mxu1 %v6132_v20  ;;  %5861 = vmatprep.subr.bf16.mxu0 %v6436_v53 }
 0x4da   :  { %1076 = vmatprep.subr.bf16.mxu1 %v6439_v16 }
 0x4dc   :  { %5863 = vmatpush3.bf16.msra.mxu0 %v5862_v59 }
 0x4dd   :  { %1077 = vmatpush1.bf16.msra.mxu1 %v6133_v21  ;;  %5864 = vmatprep.subr.bf16.mxu0 %v6436_v53 }
 0x4de   :  { %1078 = vmatprep.subr.bf16.mxu1 %v6439_v16 }
 0x4e0   :  { %5866 = vmatpush3.bf16.msra.mxu0 %v5865_v63 }
 0x4e1   :  { %1079 = vmatpush1.bf16.msra.mxu1 %v6134_v22  ;;  %5867 = vmatprep.subr.bf16.mxu0 %v6436_v53 }
 0x4e2   :  { %1080 = vmatprep.subr.bf16.mxu1 %v6439_v16 }
 0x4e4   :  { %5869 = vmatpush3.bf16.msra.mxu0 %v5868_v6  ;;  %v4791_v6 = vld [vmem:[%s6506_s24 + $0x8] sm:$0xf]  ;;  %s7471_s24 = sld [smem:[#allocation19_spill]] }
 0x4e5   :  { %1081 = vmatpush1.bf16.msra.mxu1 %v6135_v23  ;;  %5870 = vmatprep.subr.bf16.mxu0 %v6436_v53 }
 0x4e6   :  { %1082 = vmatprep.subr.bf16.mxu1 %v6439_v16 }
 0x4e8   :  { %5872 = vmatpush3.bf16.msra.mxu0 %v5871_v9  ;;  %v6145_v9 = vld [vmem:[%s6511_s30 + $0x88] sm:$0xff]  }
 0x4e9   :  { %1083 = vmatpush1.bf16.msra.mxu1 %v6136_v24  ;;  %5873 = vmatprep.subr.bf16.mxu0 %v6436_v53 }
 0x4ea   :  { %1084 = vmatprep.subr.bf16.mxu1 %v6439_v16 }
 0x4ec   :  { %5875 = vmatpush3.bf16.msra.mxu0 %v5874_v12  ;;  %v6143_v12 = vld [vmem:[%s6511_s30 + $0x48] sm:$0xff]  }
 0x4ed   :  { %1085 = vmatpush1.bf16.msra.mxu1 %v6137_v25  ;;  %5876 = vmatprep.subr.bf16.mxu0 %v6436_v53 }
 0x4ee   :  { %1086 = vmatprep.subr.bf16.mxu1 %v6439_v16 }
 0x4f1   :  { %1087 = vmatpush1.bf16.msra.mxu1 %v6138_v26 }
 0x4f2   :  { %1088 = vmatprep.subr.bf16.mxu1 %v6439_v16 }
 0x4f5   :  { %1089 = vmatpush1.bf16.msra.mxu1 %v6139_v27 }
 0x4f6   :  { %5420 = vmatprep.subr.bf16.mxu1 %v6438_v62 }
 0x59a   :  { %v899_v36 = vpop.f32.mrb[16].mxu1  ;;  %v846_v37 = vpop.f32.mrb[8].mxu0 }
 0x59b   :  { %v5356_v39 = vpop.f32.mrb[17].mxu1  ;;  %v5348_v40 = vpop.f32.mrb[9].mxu0 }
 0x59c   :  { %v902_v41 = vpop.f32.mrb[18].mxu1  ;;  %v849_v42 = vpop.f32.mrb[10].mxu0 }
 0x59d   :  { %v906_v43 = vpack.c.bf16 %v902_v41, %v899_v36  ;;  %v5357_v44 = vpop.f32.mrb[19].mxu1  ;;  %v853_v45 = vpack.c.bf16 %v849_v42, %v846_v37  ;;  %v5349_v46 = vpop.f32.mrb[11].mxu0 }
 0x59f   :  { %961 = vrot.lane.b32.xlu0 %v906_v43, %s6434_s5  ;;  %v1217_v43 = vld [vmem:[#allocation7] sm:$0x3] }
 0x5a2   :  { %v952_v47 = vpop.f32.mrb[12].mxu0 }
 0x5a3   :  { %v5364_v48 = vpop.f32.mrb[13].mxu0 }
 0x5a4   :  { %v955_v49 = vpop.f32.mrb[14].mxu0 }
 0x5a5   :  { %v959_v50 = vpack.c.bf16 %v955_v49, %v952_v47  ;;  %v5365_v51 = vpop.f32.mrb[15].mxu0 }
 0x5a7   :  { %4786 = vmatprep.mubr.msk.bf16.mxu1 %vm241_vm0, %v959_v50 }
 0x611   :  { %v962_v52 = vpop.permute.xlu0 %961 }
 0x612   :  { %v965_v54 = vsel %vm241_vm0, %v853_v45, %v962_v52 }
 0x613   :  { %1099 = vmatmul.mubr.bf16.vlgmr.msra.gmra.mrb[20].mxu1 %v965_v54 }
 0x614   :  { %5422 = vmatprep.mubr.msk.bf16.mxu1 %vm6437_vm3, %v6438_v62 }
 0x6e6   :  { %v1100_v13 = vpop.f32.mrb[20].mxu1 }
 0x6e7   :  { %v1102_v14 = vpop.f32.mrb[21].mxu1  ;;  %v1114_v0 = vmul.f32 %v1100_v13, %v1100_v13 }
 0x6e8   :  { %v1103_v15 = vpop.f32.mrb[22].mxu1  ;;  %v6144_v14 = vld [vmem:[%s6511_s30 + $0x8] sm:$0xff]  }
 0x6e9   :  { %v1107_v1 = vadd.f32 %v1103_v15, %v1100_v13  ;;  %v1115_v3 = vmul.f32 %v1103_v15, %v1103_v15  ;;  %v1105_v4 = vpop.f32.mrb[23].mxu1 }
 0x6ea   :  { %v6154_v4 = vld [vmem:[%s6511_s30 + $0xa0] sm:$0xff]  }
 0x6eb   :  { %v1108_v17 = vrot.slane %v1107_v1, 4  ;;  %v1116_v18 = vadd.f32 %v1115_v3, %v1114_v0  ;;  %v6151_v0 = vld [vmem:[%s6511_s30 + $0x98] sm:$0xff]  }
 0x6ec   :  { %v6149_v3 = vld [vmem:[%s6511_s30 + $0x58] sm:$0xff]  }
 0x6ed   :  { %v1109_v19 = vadd.f32 %v1108_v17, %v1107_v1  ;;  %v1117_v20 = vrot.slane %v1116_v18, 4  ;;  %v6147_v1 = vld [vmem:[%s6511_s30 + $0x10] sm:$0xff]   ;;  %v6150_v17 = vld [vmem:[%s6511_s30 + $0x18] sm:$0xff]  }
 0x6ef   :  { %v1110_v21 = vrot.slane %v1109_v19, 2  ;;  %v1118_v22 = vadd.f32 %v1117_v20, %v1116_v18  ;;  %v6152_v18 = vld [vmem:[%s6511_s30 + $0x60] sm:$0xff]   ;;  %v6155_v20 = vld [vmem:[%s6511_s30 + $0x68] sm:$0xff]  }
 0x6f1   :  { %v1111_v23 = vadd.f32 %v1110_v21, %v1109_v19  ;;  %v1119_v24 = vrot.slane %v1118_v22, 2  ;;  %v6153_v19 = vld [vmem:[%s6511_s30 + $0x20] sm:$0xff]   ;;  %v6156_v21 = vld [vmem:[%s6511_s30 + $0x28] sm:$0xff]  }
 0x6f3   :  { %v1112_v25 = vrot.slane %v1111_v23, 1  ;;  %v1120_v26 = vadd.f32 %v1119_v24, %v1118_v22  ;;  %v6157_v22 = vld [vmem:[%s6511_s30 + $0xa8] sm:$0xff]   ;;  %v6159_v24 = vld [vmem:[%s6511_s30 + $0x30] sm:$0xff]  }
 0x6f5   :  { %v1121_v27 = vrot.slane %v1120_v26, 1  ;;  %v1113_v28 = vadd.f32 %v1112_v25, %v1111_v23  ;;  %v6158_v23 = vld [vmem:[%s6511_s30 + $0x70] sm:$0xff]  }
 0x6f6   :  { %v6160_v25 = vld [vmem:[%s6511_s30 + $0xb0] sm:$0xff]  }
 0x6f7   :  { %v1122_v29 = vadd.f32 %v1121_v27, %v1120_v26  ;;  %v6161_v26 = vld [vmem:[%s6511_s30 + $0x78] sm:$0xff]  }
 0x6f8   :  { %v6162_v27 = vld [vmem:[%s6511_s30 + $0x38] sm:$0xff]  }
 0x6f9   :  { %v1123_v30 = vsel %vm598_vm4, %v1113_v28, %v1122_v29  ;;  %v6163_v28 = vld [vmem:[%s6511_s30 + $0xb8] sm:$0xff]  }
 0x6fa   :  { %5399 = vmatmul.mubr.f32.vlgmr.msra.gmra.mrb[6].mxu0 %v1123_v30 }
 0x6fb   :  { %5405 = vmatprep.mubr.msk.f32.mxu0 %vm6437_vm3, %v6438_v62  ;;  %5878 = vmatpush3.bf16.msra.mxu0 %v5877_v33 }
 0x6fc   :  { %5408 = vmatprep.subr.bf16.mxu0 %v6438_v62 }
 0x7cd   :  { %v1206_v34 = vpop.f32.mrb[6].mxu0 }
 0x7ce   :  { %v1210_v35 = vmul.f32 0.0078125, %v1206_v34  ;;  %v5400_v36 = vpop.f32.mrb[7].mxu0 }
 0x7d0   :  { %v1211_v37 = vmul.f32 %v1210_v35, %v1210_v35 }
 0x7d2   :  { %v1213_v38 = vrot.slane %v1211_v37, 7 }
 0x7d4   :  { %v1215_v39 = vsub.f32 %v1210_v35, %v1213_v38  ;;  %v1744_v38 = vld [vmem:[%s6516_s6] sm:$0xff] }
 0x7d6   :  { %v1216_v40 = vmax.f32 %v1215_v39, 0.0  ;;  %v1745_v39 = vld [vmem:[%s6516_s6 + $0x8] sm:$0xff] }
 0x7d8   :  { %v1218_v41 = vadd.f32 1e-05, %v1216_v40 }
 0x7da   :  { %6280 = vrsqrt.f32 %v1218_v41 }
 0x7e4   :  { %v6281_v42 = vpop.eup %6280 }
 0x7e5   :  { %v1221_v44 = vrot.slane %v6281_v42, 1 }
 0x7e7   :  { %v1223_v45 = vmul.f32 %v1221_v44, %v1217_v43 }
 0x7e9   :  { %v1224_v46 = vmul.f32 %v1223_v45, %v1210_v35 }
 0x7eb   :  { %v1226_v47 = vrot.slane %v1224_v46, 7  ;;  %v1746_v46 = vld [vmem:[%s6516_s6 + $0x10] sm:$0xff] }
 0x7ed   :  { %v1228_v48 = vsub.f32 %v1217_v43, %v1226_v47  ;;  %v5880_v43 = vpack.c.bf16 %v1745_v39, %v1744_v38  ;;  %v1747_v47 = vld [vmem:[%s6516_s6 + $0x18] sm:$0xff] }
 0x7ef   :  { %v1229_v49 = vsel %vm598_vm4, %v1223_v45, %v1228_v48 }
 0x7f0   :  { %5406 = vmatmul.mubr.msk.f32.vlgmr.msra.gmra.mrb[16].mxu0 %vm1232_vm7, %v1229_v49  ;;  %v5883_v49 = vpack.c.bf16 %v1747_v47, %v1746_v46 }
 0x7f1   :  { %5410 = vmatprep.mubr.msk.bf16.mxu0 %vm6437_vm3, %v6438_v62 }
 0x8c3   :  { %v1302_v50 = vpop.f32.mrb[16].mxu0 }
 0x8c4   :  { %v1309_v51 = vrot.slane %v1302_v50, %v6768_v55  ;;  %v5407_v52 = vpop.f32.mrb[17].mxu0  ;;  %v1315_v58 = vrot.slane %v1302_v50, %v6770_v56  ;;  %v1748_v50 = vld [vmem:[%s6516_s6 + $0x20] sm:$0xff] }
 0x8c6   :  { %v1310_v54 = vmul.f32 %v1309_v51, %v1100_v13  ;;  %v1311_v57 = vmul.f32 %v1309_v51, %v1103_v15  ;;  %v6148_v13 = vld [vmem:[%s6511_s30 + $0x90] sm:$0xff]   ;;  %v1749_v51 = vld [vmem:[%s6516_s6 + $0x28] sm:$0xff] }
 0x8c7   :  { %v6146_v15 = vld [vmem:[%s6511_s30 + $0x50] sm:$0xff]   ;;  %v5886_v52 = vpack.c.bf16 %v1749_v51, %v1748_v50  ;;  %s7472_s30 = sld [smem:[#allocation21_spill]] }
 0x8c8   :  { %v1316_v59 = vadd.f32 %v1315_v58, %v1310_v54  ;;  %v1317_v60 = vadd.f32 %v1315_v58, %v1311_v57  ;;  %v1750_v54 = vld [vmem:[%s6516_s6 + $0x30] sm:$0xff]  ;;  %v1751_v57 = vld [vmem:[%s6516_s6 + $0x38] sm:$0xff] }
 0x8c9   :  { %v5889_v58 = vpack.c.bf16 %v1751_v57, %v1750_v54 }
 0x8ca   :  { %v1318_v61 = vmax.f32 %v1316_v59, 0.0  ;;  %v1319_v63 = vmax.f32 %v1317_v60, 0.0  ;;  %v1752_v59 = vld [vmem:[%s6516_s6 + $0x40] sm:$0xff]  ;;  %v1753_v60 = vld [vmem:[%s6516_s6 + $0x48] sm:$0xff] }
 0x8cc   :  { %v1320_v2 = vpack.c.bf16 %v1319_v63, %v1318_v61  ;;  %v5892_v61 = vpack.c.bf16 %v1753_v60, %v1752_v59  ;;  %v1754_v63 = vld [vmem:[%s6516_s6 + $0x50] sm:$0xff]  ;;  %v6172_v59 = vld [vmem:[%s7465_s21 + $0x88] sm:$0xff]  }
 0x8cd   :  { %v6175_v60 = vld [vmem:[%s7465_s21 + $0x90] sm:$0xff]  }
 0x8ce   :  { %5409 = vmatpush3.bf16.msra.mxu0 %v1320_v2  ;;  %5421 = vmatpush3.bf16.msra.mxu1 %v1320_v2 }
 0x8cf   :  { %5414 = vmatprep.subr.bf16.mxu0 %v6438_v62  ;;  %5426 = vmatprep.subr.bf16.mxu1 %v6438_v62 }
 0x8d1   :  { %5411 = vmatmul.mubr.msk.bf16.vlgmr.msra.gmra.mrb[20].mxu0 %vm1232_vm7, %v1321_v5  ;;  %5423 = vmatmul.mubr.msk.bf16.vlgmr.msra.gmra.mrb[24].mxu1 %vm1232_vm7, %v4791_v6  ;;  %v1756_v6 = vld [vmem:[%s6516_s6 + $0x60] sm:$0xff] }
 0x8d2   :  { %5415 = vmatpush3.bf16.msra.mxu0 %v1320_v2  ;;  %5416 = vmatprep.mubr.msk.bf16.mxu0 %vm6437_vm3, %v6438_v62  ;;  %v1755_v2 = vld [vmem:[%s6516_s6 + $0x58] sm:$0xff] }
 0x8d3   :  { %5031 = vmatprep.subr.bf16.mxu0 %v6140_v7  ;;  %5427 = vmatpush3.bf16.msra.mxu1 %v6142_v8  ;;  %v5895_v5 = vpack.c.bf16 %v1755_v2, %v1754_v63  ;;  %v1757_v7 = vld [vmem:[%s6516_s6 + $0x68] sm:$0xff] }
 0x8d4   :  { %5428 = vmatprep.subr.bf16.mxu1 %v6438_v62  ;;  %5442 = vmatprep.mubr.msk.bf16.mxu1 %vm6437_vm3, %v6438_v62  ;;  %v5898_v8 = vpack.c.bf16 %v1757_v7, %v1756_v6 }
 0x8d7   :  { %5429 = vmatpush3.bf16.msra.mxu1 %v6145_v9  ;;  %v1758_v9 = vld [vmem:[%s6516_s6 + $0x70] sm:$0xff] }
 0x8d8   :  { %5430 = vmatprep.subr.bf16.mxu1 %v6438_v62 }
 0x8d9   :  { %5417 = vmatmul.mubr.msk.bf16.vlgmr.msra.gmra.mrb[24].mxu0 %vm1232_vm7, %v4789_v10  ;;  %v1759_v10 = vld [vmem:[%s6516_s6 + $0x78] sm:$0xff]  ;;  %s7473_s6 = sld [smem:[#allocation22_spill]] }
 0x8da   :  { %5032 = vmatpush3.bf16.msra.mxu0 %v6141_v11  ;;  %v5901_v11 = vpack.c.bf16 %v1759_v10, %v1758_v9 }
 0x8db   :  { %5033 = vmatprep.subr.bf16.mxu0 %v6143_v12  ;;  %5431 = vmatpush3.bf16.msra.mxu1 %v6148_v13 }
 0x8dc   :  { %5432 = vmatprep.subr.bf16.mxu1 %v6438_v62 }
 0x8de   :  { %5034 = vmatpush3.bf16.msra.mxu0 %v6144_v14 }
 0x8df   :  { %5035 = vmatprep.subr.bf16.mxu0 %v6146_v15  ;;  %5433 = vmatpush3.bf16.msra.mxu1 %v6151_v0 }
 0x8e0   :  { %5434 = vmatprep.subr.bf16.mxu1 %v6438_v62 }
 0x8e2   :  { %5036 = vmatpush3.bf16.msra.mxu0 %v6147_v1 }
 0x8e3   :  { %5037 = vmatprep.subr.bf16.mxu0 %v6149_v3  ;;  %5435 = vmatpush3.bf16.msra.mxu1 %v6154_v4 }
 0x8e4   :  { %5436 = vmatprep.subr.bf16.mxu1 %v6438_v62 }
 0x8e6   :  { %5038 = vmatpush3.bf16.msra.mxu0 %v6150_v17 }
 0x8e7   :  { %5039 = vmatprep.subr.bf16.mxu0 %v6152_v18  ;;  %5437 = vmatpush3.bf16.msra.mxu1 %v6157_v22 }
 0x8e8   :  { %5438 = vmatprep.subr.bf16.mxu1 %v6438_v62 }
 0x8ea   :  { %5040 = vmatpush3.bf16.msra.mxu0 %v6153_v19 }
 0x8eb   :  { %5041 = vmatprep.subr.bf16.mxu0 %v6155_v20  ;;  %5439 = vmatpush3.bf16.msra.mxu1 %v6160_v25 }
 0x8ec   :  { %5440 = vmatprep.subr.bf16.mxu1 %v6438_v62 }
 0x8ee   :  { %5042 = vmatpush3.bf16.msra.mxu0 %v6156_v21 }
 0x8ef   :  { %5043 = vmatprep.subr.bf16.mxu0 %v6158_v23  ;;  %5441 = vmatpush3.bf16.msra.mxu1 %v6163_v28 }
 0x8f0   :  { %5903 = vmatprep.subr.bf16.mxu1 %v6436_v53 }
 0x8f2   :  { %5044 = vmatpush3.bf16.msra.mxu0 %v6159_v24 }
 0x8f3   :  { %5045 = vmatprep.subr.bf16.mxu0 %v6161_v26 }
 0x8f6   :  { %5046 = vmatpush3.bf16.msra.mxu0 %v6162_v27 }
 0x8f7   :  { %5879 = vmatprep.subr.bf16.mxu0 %v6436_v53 }
 0x9a4   :  { %v1359_v29 = vpop.f32.mrb[20].mxu0  ;;  %v1451_v30 = vpop.f32.mrb[24].mxu1 }
 0x9a5   :  { %v5412_v31 = vpop.f32.mrb[21].mxu0  ;;  %v1457_v32 = vpack.c.bf16 %v1451_v30, %v1451_v30  ;;  %v5424_v33 = vpop.f32.mrb[25].mxu1  ;;  %v1365_v44 = vpack.c.bf16 %v1359_v29, %v1359_v29 }
 0x9a6   :  { %v1362_v34 = vpop.f32.mrb[22].mxu0  ;;  %v1454_v35 = vpop.f32.mrb[26].mxu1  ;;  %v1850_v33 = vld [vmem:[%s7463_s13] sm:$0xff] }
 0x9a7   :  { %v5413_v36 = vpop.f32.mrb[23].mxu0  ;;  %v5425_v37 = vpop.f32.mrb[27].mxu1  ;;  %5443 = vmatmul.mubr.bf16.vlgmr.msra.gmra.mrb[28].mxu1 %v1457_v32  ;;  %v1851_v34 = vld [vmem:[%s7463_s13 + $0x8] sm:$0xff] }
 0x9a8   :  { %5489 = vmatprep.mubr.msk.f32.mxu1 %vm6437_vm3, %v6438_v62  ;;  %v5904_v35 = vpack.c.bf16 %v1851_v34, %v1850_v33  ;;  %v1852_v36 = vld [vmem:[%s7463_s13 + $0x10] sm:$0xff]  ;;  %v1853_v37 = vld [vmem:[%s7463_s13 + $0x18] sm:$0xff] }
 0x9a9   :  { %v5907_v38 = vpack.c.bf16 %v1853_v37, %v1852_v36  ;;  %v2368_v36 = vld [vmem:[%s7467_s3] sm:$0xff]  ;;  %v2369_v37 = vld [vmem:[%s7467_s3 + $0x8] sm:$0xff] }
 0x9aa   :  { %5905 = vmatpush3.bf16.msra.mxu1 %v5904_v35 }
 0x9ab   :  { %5906 = vmatprep.subr.bf16.mxu1 %v6436_v53 }
 0x9ac   :  { %v1405_v40 = vpop.f32.mrb[24].mxu0 }
 0x9ad   :  { %v1411_v41 = vpack.c.bf16 %v1405_v40, %v1405_v40  ;;  %v5418_v42 = vpop.f32.mrb[25].mxu0 }
 0x9ae   :  { %v1408_v45 = vpop.f32.mrb[26].mxu0  ;;  %5908 = vmatpush3.bf16.msra.mxu1 %v5907_v38 }
 0x9af   :  { %v5419_v48 = vpop.f32.mrb[27].mxu0  ;;  %1682 = vmatprep.mubr.bf16.mxu0 %v1411_v41  ;;  %5492 = vmatprep.subr.bf16.mxu1 %v6438_v62 }
 0x9b0   :  { %1683 = vmatmul.mubr.bf16.vlgmr.msra.gmra.mrb[28].mxu0 %v1365_v44  ;;  %v1837_v48 = vld [vmem:[%s7464_s17] sm:$0x3] }
 0x9b1   :  { %5881 = vmatpush3.bf16.msra.mxu0 %v5880_v43  ;;  %5478 = vmatprep.mubr.msk.f32.mxu0 %vm6437_vm3, %v6438_v62 }
 0x9b2   :  { %5882 = vmatprep.subr.bf16.mxu0 %v6436_v53 }
 0x9b5   :  { %5884 = vmatpush3.bf16.msra.mxu0 %v5883_v49 }
 0x9b6   :  { %5885 = vmatprep.subr.bf16.mxu0 %v6436_v53 }
 0x9b9   :  { %5887 = vmatpush3.bf16.msra.mxu0 %v5886_v52 }
 0x9ba   :  { %5888 = vmatprep.subr.bf16.mxu0 %v6436_v53 }
 0x9bd   :  { %5890 = vmatpush3.bf16.msra.mxu0 %v5889_v58  ;;  %v6169_v58 = vld [vmem:[%s7465_s21 + $0x80] sm:$0xff]  }
 0x9be   :  { %5891 = vmatprep.subr.bf16.mxu0 %v6436_v53 }
 0x9c1   :  { %5893 = vmatpush3.bf16.msra.mxu0 %v5892_v61 }
 0x9c2   :  { %5894 = vmatprep.subr.bf16.mxu0 %v6436_v53 }
 0x9c5   :  { %5896 = vmatpush3.bf16.msra.mxu0 %v5895_v5 }
 0x9c6   :  { %5897 = vmatprep.subr.bf16.mxu0 %v6436_v53 }
 0x9c9   :  { %5899 = vmatpush3.bf16.msra.mxu0 %v5898_v8 }
 0x9ca   :  { %5900 = vmatprep.subr.bf16.mxu0 %v6436_v53 }
 0x9cd   :  { %5902 = vmatpush3.bf16.msra.mxu0 %v5901_v11  ;;  %v1939_v11 = vld [vmem:[%s7466_s29] sm:$0x3] }
 0x9ce   :  { %5510 = vmatprep.subr.bf16.mxu0 %v6438_v62 }
 0xa7a   :  { %v1724_v12 = vpop.f32.mrb[28].mxu1 }
 0xa7b   :  { %v5444_v13 = vpop.f32.mrb[29].mxu1 }
 0xa7c   :  { %v1727_v14 = vpop.f32.mrb[30].mxu1  ;;  %v6164_v13 = vld [vmem:[%s7465_s21 + $0x40] sm:$0xff]  }
 0xa7d   :  { %v5445_v15 = vpop.f32.mrb[31].mxu1  ;;  %v4821_v14 = vld [vmem:[%s7466_s29 + $0x4] sm:$0x3] }
 0xa7e   :  { %v6165_v15 = vld [vmem:[%s7465_s21] sm:$0xff]  }
 0xa83   :  { %v5047_v0 = vpop.f32.mrb[28].mxu0 }
 0xa84   :  { %v5048_v1 = vpop.f32.mrb[29].mxu0 }
 0xa85   :  { %v5049_v3 = vadd.f32 %v5048_v1, %v5047_v0  ;;  %v5050_v4 = vpop.f32.mrb[30].mxu0  ;;  %v6166_v0 = vld [vmem:[%s7465_s21 + $0x48] sm:$0xff]  }
 0xa86   :  { %v5051_v17 = vpop.f32.mrb[31].mxu0  ;;  %v6167_v1 = vld [vmem:[%s7465_s21 + $0x8] sm:$0xff]   ;;  %v6170_v4 = vld [vmem:[%s7465_s21 + $0x10] sm:$0xff]  }
 0xa87   :  { %v1725_v18 = vadd.f32 %v5049_v3, %v1724_v12  ;;  %v4819_v12 = vld [vmem:[%s7466_s29 + $0x2] sm:$0x3]  ;;  %v6168_v3 = vld [vmem:[%s7465_s21 + $0x50] sm:$0xff]   ;;  %v6171_v17 = vld [vmem:[%s7465_s21 + $0x58] sm:$0xff]  }
 0xa89   :  { %v1730_v19 = vrot.slane %v1725_v18, 4  ;;  %v1736_v20 = vmul.f32 %v1725_v18, %v1725_v18 }
 0xa8b   :  { %v1731_v21 = vadd.f32 %v1730_v19, %v1725_v18  ;;  %v1737_v22 = vrot.slane %v1736_v20, 4  ;;  %v6174_v19 = vld [vmem:[%s7465_s21 + $0x60] sm:$0xff]  }
 0xa8d   :  { %v1732_v23 = vrot.slane %v1731_v21, 2  ;;  %v1738_v24 = vadd.f32 %v1737_v22, %v1736_v20  ;;  %v6176_v20 = vld [vmem:[%s7465_s21 + $0x20] sm:$0xff]   ;;  %v6178_v22 = vld [vmem:[%s7465_s21 + $0x98] sm:$0xff]  }
 0xa8f   :  { %v1733_v25 = vadd.f32 %v1732_v23, %v1731_v21  ;;  %v1739_v26 = vrot.slane %v1738_v24, 2  ;;  %v6177_v21 = vld [vmem:[%s7465_s21 + $0x68] sm:$0xff]  }
 0xa90   :  { %v6179_v23 = vld [vmem:[%s7465_s21 + $0x28] sm:$0xff]  }
 0xa91   :  { %v1734_v27 = vrot.slane %v1733_v25, 1  ;;  %v1740_v28 = vadd.f32 %v1739_v26, %v1738_v24  ;;  %v6180_v24 = vld [vmem:[%s7465_s21 + $0x70] sm:$0xff]  }
 0xa92   :  { %v6182_v26 = vld [vmem:[%s7465_s21 + $0x30] sm:$0xff]  }
 0xa93   :  { %v1741_v29 = vrot.slane %v1740_v28, 1  ;;  %v1735_v30 = vadd.f32 %v1734_v27, %v1733_v25  ;;  %v6181_v25 = vld [vmem:[%s7465_s21 + $0xa0] sm:$0xff]   ;;  %v6183_v27 = vld [vmem:[%s7465_s21 + $0x78] sm:$0xff]  }
 0xa95   :  { %v1742_v31 = vadd.f32 %v1741_v29, %v1740_v28  ;;  %v6184_v28 = vld [vmem:[%s7465_s21 + $0xa8] sm:$0xff]   ;;  %v6185_v29 = vld [vmem:[%s7465_s21 + $0x38] sm:$0xff]  }
 0xa97   :  { %v1743_v32 = vsel %vm598_vm4, %v1735_v30, %v1742_v31  ;;  %v6186_v30 = vld [vmem:[%s7465_s21 + $0xb0] sm:$0xff]   ;;  %v6187_v31 = vld [vmem:[%s7465_s21 + $0xb8] sm:$0xff]  }
 0xa98   :  { %5479 = vmatmul.mubr.f32.vlgmr.msra.gmra.mrb[18].mxu0 %v1743_v32 }
 0xa99   :  { %5526 = vmatprep.mubr.msk.bf16.mxu0 %vm6437_vm3, %v6438_v62  ;;  %5511 = vmatpush3.bf16.msra.mxu0 %v6169_v58 }
 0xa9a   :  { %5512 = vmatprep.subr.bf16.mxu0 %v6438_v62 }
 0xa9d   :  { %5513 = vmatpush3.bf16.msra.mxu0 %v6172_v59  ;;  %v2374_v59 = vld [vmem:[%s7467_s3 + $0x30] sm:$0xff] }
 0xa9e   :  { %5514 = vmatprep.subr.bf16.mxu0 %v6438_v62 }
 0xaa1   :  { %5515 = vmatpush3.bf16.msra.mxu0 %v6175_v60  ;;  %v2375_v60 = vld [vmem:[%s7467_s3 + $0x38] sm:$0xff] }
 0xaa2   :  { %5516 = vmatprep.subr.bf16.mxu0 %v6438_v62 }
 0xaa5   :  { %5517 = vmatpush3.bf16.msra.mxu0 %v6178_v22 }
 0xaa6   :  { %5518 = vmatprep.subr.bf16.mxu0 %v6438_v62 }
 0xaa9   :  { %5519 = vmatpush3.bf16.msra.mxu0 %v6181_v25 }
 0xaaa   :  { %5520 = vmatprep.subr.bf16.mxu0 %v6438_v62 }
 0xaad   :  { %5521 = vmatpush3.bf16.msra.mxu0 %v6184_v28 }
 0xaae   :  { %5522 = vmatprep.subr.bf16.mxu0 %v6438_v62 }
 0xab1   :  { %5523 = vmatpush3.bf16.msra.mxu0 %v6186_v30 }
 0xab2   :  { %5524 = vmatprep.subr.bf16.mxu0 %v6438_v62 }
 0xab5   :  { %5525 = vmatpush3.bf16.msra.mxu0 %v6187_v31 }
 0xab6   :  { %5933 = vmatprep.subr.bf16.mxu0 %v6436_v53 }
 0xb6b   :  { %v1826_v39 = vpop.f32.mrb[18].mxu0 }
 0xb6c   :  { %v1830_v40 = vmul.f32 0.03125, %v1826_v39  ;;  %v5480_v41 = vpop.f32.mrb[19].mxu0 }
 0xb6d   :  { %v5910_v41 = vpack.c.bf16 %v2369_v37, %v2368_v36 }
 0xb6e   :  { %v1831_v42 = vmul.f32 %v1830_v40, %v1830_v40 }
 0xb70   :  { %v1833_v43 = vrot.slane %v1831_v42, 7 }
 0xb72   :  { %v1835_v44 = vsub.f32 %v1830_v40, %v1833_v43 }
 0xb74   :  { %v1836_v45 = vmax.f32 %v1835_v44, 0.0  ;;  %v2370_v44 = vld [vmem:[%s7467_s3 + $0x10] sm:$0xff] }
 0xb76   :  { %v1838_v46 = vadd.f32 1e-05, %v1836_v45  ;;  %v2371_v45 = vld [vmem:[%s7467_s3 + $0x18] sm:$0xff] }
 0xb78   :  { %6282 = vrsqrt.f32 %v1838_v46 }
 0xb82   :  { %v6283_v47 = vpop.eup %6282 }
 0xb83   :  { %v1841_v49 = vrot.slane %v6283_v47, 1  ;;  %v5913_v47 = vpack.c.bf16 %v2371_v45, %v2370_v44  ;;  %v2478_v44 = vld [vmem:[%s7468_s8 + $0x20] sm:$0xff]  ;;  %v2479_v45 = vld [vmem:[%s7468_s8 + $0x28] sm:$0xff] }
 0xb85   :  { %v1843_v50 = vmul.f32 %v1841_v49, %v1837_v48 }
 0xb87   :  { %v1844_v51 = vmul.f32 %v1843_v50, %v1830_v40 }
 0xb89   :  { %v1846_v52 = vrot.slane %v1844_v51, 7 }
 0xb8b   :  { %v1848_v54 = vsub.f32 %v1837_v48, %v1846_v52 }
 0xb8d   :  { %v1849_v57 = vsel %vm598_vm4, %v1843_v50, %v1848_v54  ;;  %v2372_v54 = vld [vmem:[%s7467_s3 + $0x20] sm:$0xff] }
 0xb8e   :  { %5490 = vmatmul.mubr.msk.f32.vlgmr.msra.gmra.mrb[14].mxu1 %vm455_vm1, %v1849_v57  ;;  %v2373_v57 = vld [vmem:[%s7467_s3 + $0x28] sm:$0xff] }
 0xb8f   :  { %5494 = vmatprep.mubr.msk.bf16.mxu1 %vm6437_vm3, %v6438_v62  ;;  %v5916_v58 = vpack.c.bf16 %v2373_v57, %v2372_v54 }
 0xc61   :  { %v1923_v61 = vpop.f32.mrb[14].mxu1 }
 0xc62   :  { %v1930_v63 = vrot.slane %v1923_v61, %v6768_v55  ;;  %v5491_v2 = vpop.f32.mrb[15].mxu1  ;;  %v1935_v6 = vrot.slane %v1923_v61, %v6770_v56  ;;  %v5919_v61 = vpack.c.bf16 %v2375_v60, %v2374_v59 }
 0xc63   :  { %v2377_v2 = vld [vmem:[%s7467_s3 + $0x48] sm:$0xff] }
 0xc64   :  { %v1931_v5 = vmul.f32 %v1930_v63, %v1725_v18  ;;  %v6173_v18 = vld [vmem:[%s7465_s21 + $0x18] sm:$0xff]   ;;  %v2376_v63 = vld [vmem:[%s7467_s3 + $0x40] sm:$0xff] }
 0xc66   :  { %v1936_v7 = vadd.f32 %v1935_v6, %v1931_v5  ;;  %v5922_v5 = vpack.c.bf16 %v2377_v2, %v2376_v63  ;;  %v2378_v6 = vld [vmem:[%s7467_s3 + $0x50] sm:$0xff]  ;;  %v2461_v2 = vld [vmem:[%s7470_s19] sm:$0x3] }
 0xc68   :  { %v1937_v8 = vmax.f32 %v1936_v7, 0.0  ;;  %v2379_v7 = vld [vmem:[%s7467_s3 + $0x58] sm:$0xff] }
 0xc6a   :  { %v1938_v9 = vpack.c.bf16 %v1937_v8, %v1937_v8  ;;  %v5925_v8 = vpack.c.bf16 %v2379_v7, %v2378_v6 }
 0xc6c   :  { %v1945_v10 = vsel %vm706_vm5, %v1938_v9, 0  ;;  %v2380_v9 = vld [vmem:[%s7467_s3 + $0x60] sm:$0xff] }
 0xc6d   :  { %5493 = vmatpush3.bf16.msra.mxu1 %v1945_v10 }
 0xc6e   :  { %5498 = vmatprep.subr.bf16.mxu1 %v6438_v62 }
 0xc70   :  { %5495 = vmatmul.mubr.msk.bf16.vlgmr.msra.gmra.mrb[32].mxu1 %vm1940_vm8, %v1939_v11  ;;  %v2382_v11 = vld [vmem:[%s7467_s3 + $0x70] sm:$0xff] }
 0xc71   :  { %5499 = vmatpush3.bf16.msra.mxu1 %v1945_v10  ;;  %5500 = vmatprep.mubr.msk.bf16.mxu1 %vm6437_vm3, %v6438_v62 }
 0xc72   :  { %5504 = vmatprep.subr.bf16.mxu1 %v6438_v62 }
 0xc78   :  { %5501 = vmatmul.mubr.msk.bf16.vlgmr.msra.gmra.mrb[36].mxu1 %vm1940_vm8, %v4819_v12 }
 0xc79   :  { %5505 = vmatpush3.bf16.msra.mxu1 %v1945_v10  ;;  %5506 = vmatprep.mubr.msk.bf16.mxu1 %vm6437_vm3, %v6438_v62  ;;  %v2381_v10 = vld [vmem:[%s7467_s3 + $0x68] sm:$0xff] }
 0xc7a   :  { %5090 = vmatprep.subr.bf16.mxu1 %v6164_v13  ;;  %v5928_v12 = vpack.c.bf16 %v2381_v10, %v2380_v9  ;;  %v2383_v13 = vld [vmem:[%s7467_s3 + $0x78] sm:$0xff]  ;;  %v6188_v10 = vld [vmem:[%s7469_s14] ss:$8 sps:$4 sm:$0xff]  }
 0xc80   :  { %5507 = vmatmul.mubr.msk.bf16.vlgmr.msra.gmra.mrb[40].mxu1 %vm1940_vm8, %v4821_v14  ;;  %v5931_v14 = vpack.c.bf16 %v2383_v13, %v2382_v11  ;;  %v6193_v11 = vld [vmem:[%s7469_s14 + $0x14] ss:$8 sps:$4 sm:$0xff]   ;;  %v6191_v13 = vld [vmem:[%s7469_s14 + $0x10] ss:$8 sps:$4 sm:$0xff]  }
 0xc81   :  { %5091 = vmatpush3.bf16.msra.mxu1 %v6165_v15 }
 0xc82   :  { %5092 = vmatprep.subr.bf16.mxu1 %v6166_v0 }
 0xc85   :  { %5093 = vmatpush3.bf16.msra.mxu1 %v6167_v1 }
 0xc86   :  { %5094 = vmatprep.subr.bf16.mxu1 %v6168_v3 }
 0xc89   :  { %5095 = vmatpush3.bf16.msra.mxu1 %v6170_v4 }
 0xc8a   :  { %5096 = vmatprep.subr.bf16.mxu1 %v6171_v17 }
 0xc8d   :  { %5097 = vmatpush3.bf16.msra.mxu1 %v6173_v18 }
 0xc8e   :  { %5098 = vmatprep.subr.bf16.mxu1 %v6174_v19 }
 0xc91   :  { %5099 = vmatpush3.bf16.msra.mxu1 %v6176_v20 }
 0xc92   :  { %5100 = vmatprep.subr.bf16.mxu1 %v6177_v21 }
 0xc95   :  { %5101 = vmatpush3.bf16.msra.mxu1 %v6179_v23 }
 0xc96   :  { %5102 = vmatprep.subr.bf16.mxu1 %v6180_v24 }
 0xc99   :  { %5103 = vmatpush3.bf16.msra.mxu1 %v6182_v26 }
 0xc9a   :  { %5104 = vmatprep.subr.bf16.mxu1 %v6183_v27 }
 0xc9d   :  { %5105 = vmatpush3.bf16.msra.mxu1 %v6185_v29 }
 0xc9e   :  { %5909 = vmatprep.subr.bf16.mxu1 %v6436_v53 }
 0xd43   :  { %v1981_v32 = vpop.f32.mrb[32].mxu1 }
 0xd44   :  { %v5496_v33 = vpop.f32.mrb[33].mxu1  ;;  %v1987_v42 = vpack.c.bf16 %v1981_v32, %v1981_v32 }
 0xd45   :  { %v1984_v34 = vpop.f32.mrb[34].mxu1 }
 0xd46   :  { %v5497_v35 = vpop.f32.mrb[35].mxu1 }
 0xd4b   :  { %v2027_v38 = vpop.f32.mrb[36].mxu1 }
 0xd4c   :  { %v2033_v39 = vpack.c.bf16 %v2027_v38, %v2027_v38  ;;  %v5502_v40 = vpop.f32.mrb[37].mxu1  ;;  %v2474_v38 = vld [vmem:[%s7468_s8] sm:$0xff] }
 0xd4d   :  { %v2030_v43 = vpop.f32.mrb[38].mxu1 }
 0xd4e   :  { %v5503_v46 = vpop.f32.mrb[39].mxu1  ;;  %2304 = vmatprep.mubr.bf16.mxu1 %v2033_v39  ;;  %v2475_v39 = vld [vmem:[%s7468_s8 + $0x8] sm:$0xff] }
 0xd4f   :  { %2305 = vmatmul.mubr.bf16.vlgmr.msra.gmra.mrb[44].mxu1 %v1987_v42  ;;  %v5934_v40 = vpack.c.bf16 %v2475_v39, %v2474_v38  ;;  %v2477_v42 = vld [vmem:[%s7468_s8 + $0x18] sm:$0xff]  ;;  %v5940_v46 = vpack.c.bf16 %v2479_v45, %v2478_v44  ;;  %v4864_v38 = vld [vmem:[%s7471_s24 + $0x4] sm:$0xf]  ;;  %v2818_v44 = vld [vmem:[%s7472_s30 + $0x10] sm:$0xff] }
 0xd50   :  { %5911 = vmatpush3.bf16.msra.mxu1 %v5910_v41  ;;  %5562 = vmatprep.mubr.msk.f32.mxu1 %vm6437_vm3, %v6438_v62  ;;  %v2476_v41 = vld [vmem:[%s7468_s8 + $0x10] sm:$0xff]  ;;  %v2819_v45 = vld [vmem:[%s7472_s30 + $0x18] sm:$0xff] }
 0xd51   :  { %5912 = vmatprep.subr.bf16.mxu1 %v6436_v53  ;;  %v5937_v43 = vpack.c.bf16 %v2477_v42, %v2476_v41  ;;  %v2817_v41 = vld [vmem:[%s7472_s30 + $0x8] sm:$0xff]  ;;  %v2706_v42 = vld [vmem:[%s7471_s24] sm:$0xf] }
 0xd53   :  { %v2073_v48 = vpop.f32.mrb[40].mxu1 }
 0xd54   :  { %v2079_v49 = vpack.c.bf16 %v2073_v48, %v2073_v48  ;;  %v5508_v50 = vpop.f32.mrb[41].mxu1  ;;  %5914 = vmatpush3.bf16.msra.mxu1 %v5913_v47  ;;  %v2480_v47 = vld [vmem:[%s7468_s8 + $0x30] sm:$0xff]  ;;  %v2481_v48 = vld [vmem:[%s7468_s8 + $0x38] sm:$0xff] }
 0xd55   :  { %v2076_v51 = vpop.f32.mrb[42].mxu1  ;;  %5915 = vmatprep.subr.bf16.mxu1 %v6436_v53  ;;  %v6190_v50 = vld [vmem:[%s7469_s14 + $0x4] ss:$8 sps:$4 sm:$0xff]  }
 0xd56   :  { %v5509_v52 = vpop.f32.mrb[43].mxu1  ;;  %5527 = vmatmul.mubr.bf16.vlgmr.msra.gmra.mrb[32].mxu0 %v2079_v49  ;;  %v5943_v49 = vpack.c.bf16 %v2481_v48, %v2480_v47  ;;  %v2820_v47 = vld [vmem:[%s7472_s30 + $0x20] sm:$0xff]  ;;  %v2821_v48 = vld [vmem:[%s7472_s30 + $0x28] sm:$0xff] }
 0xd57   :  { %5581 = vmatprep.mubr.msk.f32.mxu0 %vm6437_vm3, %v6438_v62  ;;  %5935 = vmatpush3.bf16.msra.mxu0 %v5934_v40  ;;  %v2816_v40 = vld [vmem:[%s7472_s30] sm:$0xff] }
 0xd58   :  { %5917 = vmatpush3.bf16.msra.mxu1 %v5916_v58  ;;  %5936 = vmatprep.subr.bf16.mxu0 %v6436_v53 }
 0xd59   :  { %5918 = vmatprep.subr.bf16.mxu1 %v6436_v53 }
 0xd5b   :  { %5938 = vmatpush3.bf16.msra.mxu0 %v5937_v43  ;;  %v5946_v43 = vpack.c.bf16 %v2817_v41, %v2816_v40  ;;  %v2909_v40 = vld [vmem:[%s7475_s18] sm:$0x3] }
 0xd5c   :  { %5920 = vmatpush3.bf16.msra.mxu1 %v5919_v61  ;;  %5939 = vmatprep.subr.bf16.mxu0 %v6436_v53 }
 0xd5d   :  { %5921 = vmatprep.subr.bf16.mxu1 %v6436_v53 }
 0xd5f   :  { %5941 = vmatpush3.bf16.msra.mxu0 %v5940_v46  ;;  %v5949_v46 = vpack.c.bf16 %v2819_v45, %v2818_v44 }
 0xd60   :  { %5923 = vmatpush3.bf16.msra.mxu1 %v5922_v5  ;;  %5942 = vmatprep.subr.bf16.mxu0 %v6436_v53 }
 0xd61   :  { %5924 = vmatprep.subr.bf16.mxu1 %v6436_v53 }
 0xd63   :  { %5944 = vmatpush3.bf16.msra.mxu0 %v5943_v49  ;;  %v5952_v49 = vpack.c.bf16 %v2821_v48, %v2820_v47  ;;  %v6217_v47 = vld [vmem:[%s7474_s16 + $0x14] ss:$8 sps:$4 sm:$0xff]  }
 0xd64   :  { %5926 = vmatpush3.bf16.msra.mxu1 %v5925_v8  ;;  %2663 = vmatprep.subr.bf16.mxu0 %v6190_v50  ;;  %v2822_v50 = vld [vmem:[%s7472_s30 + $0x30] sm:$0xff] }
 0xd65   :  { %5927 = vmatprep.subr.bf16.mxu1 %v6436_v53 }
 0xd68   :  { %5929 = vmatpush3.bf16.msra.mxu1 %v5928_v12 }
 0xd69   :  { %5930 = vmatprep.subr.bf16.mxu1 %v6436_v53 }
 0xd6c   :  { %5932 = vmatpush3.bf16.msra.mxu1 %v5931_v14  ;;  %v6196_v14 = vld [vmem:[%s7469_s14 + $0x24] ss:$8 sps:$4 sm:$0xff]  }
 0xd6d   :  { %5584 = vmatprep.subr.bf16.mxu1 %v6438_v62 }
 0xe22   :  { %v5106_v15 = vpop.f32.mrb[44].mxu1 }
 0xe23   :  { %v5107_v0 = vpop.f32.mrb[45].mxu1 }
 0xe24   :  { %v5108_v1 = vadd.f32 %v5107_v0, %v5106_v15  ;;  %v5109_v3 = vpop.f32.mrb[46].mxu1  ;;  %v6194_v15 = vld [vmem:[%s7469_s14 + $0x20] ss:$8 sps:$4 sm:$0xff]   ;;  %v6199_v0 = vld [vmem:[%s7469_s14 + $0x34] ss:$8 sps:$4 sm:$0xff]  }
 0xe25   :  { %v5110_v4 = vpop.f32.mrb[47].mxu1  ;;  %v6202_v3 = vld [vmem:[%s7469_s14 + $0x44] ss:$8 sps:$4 sm:$0xff]  }
 0xe26   :  { %v6200_v4 = vld [vmem:[%s7469_s14 + $0x40] ss:$8 sps:$4 sm:$0xff]  }
 0xe29   :  { %v2346_v17 = vpop.f32.mrb[32].mxu0 }
 0xe2a   :  { %v7022_v18 = vadd.f32 %v5108_v1, %v2346_v17  ;;  %v5528_v19 = vpop.f32.mrb[33].mxu0  ;;  %v6197_v1 = vld [vmem:[%s7469_s14 + $0x30] ss:$8 sps:$4 sm:$0xff]   ;;  %v6205_v17 = vld [vmem:[%s7469_s14 + $0x54] ss:$8 sps:$4 sm:$0xff]  }
 0xe2b   :  { %v2349_v20 = vpop.f32.mrb[34].mxu0  ;;  %v6203_v19 = vld [vmem:[%s7469_s14 + $0x50] ss:$8 sps:$4 sm:$0xff]  }
 0xe2c   :  { %v2352_v21 = vsel %vm706_vm5, %v7022_v18, 0.0  ;;  %v2359_v22 = vmul.f32 %v7022_v18, %v7022_v18  ;;  %v5529_v23 = vpop.f32.mrb[35].mxu0  ;;  %v6208_v20 = vld [vmem:[%s7469_s14 + $0x64] ss:$8 sps:$4 sm:$0xff]  }
 0xe2d   :  { %v2353_v24 = vrot.slane %v2352_v21, 4  ;;  %v6209_v23 = vld [vmem:[%s7469_s14 + $0x70] ss:$8 sps:$4 sm:$0xff]  }
 0xe2e   :  { %v2360_v25 = vsel %vm706_vm5, %v2359_v22, 0.0  ;;  %v6211_v22 = vld [vmem:[%s7469_s14 + $0x74] ss:$8 sps:$4 sm:$0xff]  }
 0xe2f   :  { %v2354_v26 = vadd.f32 %v2353_v24, %v2352_v21  ;;  %v2361_v27 = vrot.slane %v2360_v25, 4  ;;  %v6206_v21 = vld [vmem:[%s7469_s14 + $0x60] ss:$8 sps:$4 sm:$0xff]  }
 0xe31   :  { %v2355_v28 = vrot.slane %v2354_v26, 2  ;;  %v2362_v29 = vadd.f32 %v2361_v27, %v2360_v25 }
 0xe33   :  { %v2356_v30 = vadd.f32 %v2355_v28, %v2354_v26  ;;  %v2363_v31 = vrot.slane %v2362_v29, 2 }
 0xe35   :  { %v2357_v32 = vrot.slane %v2356_v30, 1  ;;  %v2364_v33 = vadd.f32 %v2363_v31, %v2362_v29 }
 0xe37   :  { %v2365_v34 = vrot.slane %v2364_v33, 1  ;;  %v2358_v35 = vadd.f32 %v2357_v32, %v2356_v30 }
 0xe39   :  { %v2366_v36 = vadd.f32 %v2365_v34, %v2364_v33 }
 0xe3b   :  { %v2367_v37 = vsel %vm598_vm4, %v2358_v35, %v2366_v36 }
 0xe3c   :  { %5563 = vmatmul.mubr.f32.vlgmr.msra.gmra.mrb[48].mxu1 %v2367_v37 }
 0xe3d   :  { %5586 = vmatprep.mubr.msk.bf16.mxu1 %vm6437_vm3, %v6438_v62 }
 0xf0f   :  { %v2450_v51 = vpop.f32.mrb[48].mxu1 }
 0xf10   :  { %v2454_v52 = vmul.f32 0.125, %v2450_v51  ;;  %v5564_v54 = vpop.f32.mrb[49].mxu1  ;;  %v2823_v51 = vld [vmem:[%s7472_s30 + $0x38] sm:$0xff] }
 0xf11   :  { %v2824_v54 = vld [vmem:[%s7472_s30 + $0x40] sm:$0xff] }
 0xf12   :  { %v2455_v57 = vmul.f32 %v2454_v52, %v2454_v52 }
 0xf14   :  { %v2457_v58 = vrot.slane %v2455_v57, 7  ;;  %v2825_v57 = vld [vmem:[%s7472_s30 + $0x48] sm:$0xff] }
 0xf16   :  { %v2459_v59 = vsub.f32 %v2454_v52, %v2457_v58  ;;  %v5958_v58 = vpack.c.bf16 %v2825_v57, %v2824_v54  ;;  %v6221_v54 = vld [vmem:[%s7474_s16 + $0x30] ss:$8 sps:$4 sm:$0xff]   ;;  %v6226_v57 = vld [vmem:[%s7474_s16 + $0x44] ss:$8 sps:$4 sm:$0xff]  }
 0xf18   :  { %v2460_v60 = vmax.f32 %v2459_v59, 0.0  ;;  %v2826_v59 = vld [vmem:[%s7472_s30 + $0x50] sm:$0xff] }
 0xf1a   :  { %v2462_v61 = vadd.f32 1e-05, %v2460_v60  ;;  %v2827_v60 = vld [vmem:[%s7472_s30 + $0x58] sm:$0xff] }
 0xf1c   :  { %6284 = vrsqrt.f32 %v2462_v61  ;;  %v5961_v61 = vpack.c.bf16 %v2827_v60, %v2826_v59  ;;  %v6229_v59 = vld [vmem:[%s7474_s16 + $0x54] ss:$8 sps:$4 sm:$0xff]   ;;  %v6227_v60 = vld [vmem:[%s7474_s16 + $0x50] ss:$8 sps:$4 sm:$0xff]  }
 0xf26   :  { %v6285_v63 = vpop.eup %6284 }
 0xf27   :  { %v2465_v5 = vrot.slane %v6285_v63, 1  ;;  %v2828_v63 = vld [vmem:[%s7472_s30 + $0x60] sm:$0xff] }
 0xf29   :  { %v2467_v6 = vmul.f32 %v2465_v5, %v2461_v2 }
 0xf2b   :  { %v2468_v7 = vmul.f32 %v2467_v6, %v2454_v52  ;;  %v5955_v52 = vpack.c.bf16 %v2823_v51, %v2822_v50  ;;  %v6220_v50 = vld [vmem:[%s7474_s16 + $0x24] ss:$8 sps:$4 sm:$0xff]   ;;  %v6218_v51 = vld [vmem:[%s7474_s16 + $0x20] ss:$8 sps:$4 sm:$0xff]  }
 0xf2d   :  { %v2470_v8 = vrot.slane %v2468_v7, 7  ;;  %v2831_v7 = vld [vmem:[%s7472_s30 + $0x78] sm:$0xff] }
 0xf2f   :  { %v2472_v9 = vsub.f32 %v2461_v2, %v2470_v8  ;;  %v2829_v2 = vld [vmem:[%s7472_s30 + $0x68] sm:$0xff] }
 0xf30   :  { %v5964_v5 = vpack.c.bf16 %v2829_v2, %v2828_v63  ;;  %v6230_v63 = vld [vmem:[%s7474_s16 + $0x60] ss:$8 sps:$4 sm:$0xff]   ;;  %v6235_v2 = vld [vmem:[%s7474_s16 + $0x74] ss:$8 sps:$4 sm:$0xff]  }
 0xf31   :  { %v2473_v12 = vsel %vm598_vm4, %v2467_v6, %v2472_v9  ;;  %v2830_v6 = vld [vmem:[%s7472_s30 + $0x70] sm:$0xff] }
 0xf32   :  { %5582 = vmatmul.mubr.msk.f32.vlgmr.msra.gmra.mrb[36].mxu0 %vm241_vm0, %v2473_v12  ;;  %v5967_v8 = vpack.c.bf16 %v2831_v7, %v2830_v6 }
 0xf33   :  { %2664 = vmatpush1.bf16.msra.mxu0 %v6188_v10  ;;  %2695 = vmatprep.mubr.bf16.mxu0 %v6439_v16 }
 0xf34   :  { %2665 = vmatprep.subr.bf16.mxu0 %v6193_v11 }
 0xf37   :  { %2666 = vmatpush1.bf16.msra.mxu0 %v6191_v13 }
 0xf38   :  { %2667 = vmatprep.subr.bf16.mxu0 %v6196_v14 }
 0xf3b   :  { %2668 = vmatpush1.bf16.msra.mxu0 %v6194_v15 }
 0xf3c   :  { %2669 = vmatprep.subr.bf16.mxu0 %v6199_v0 }
 0xf3f   :  { %2670 = vmatpush1.bf16.msra.mxu0 %v6197_v1 }
 0xf40   :  { %2671 = vmatprep.subr.bf16.mxu0 %v6202_v3 }
 0xf43   :  { %2672 = vmatpush1.bf16.msra.mxu0 %v6200_v4 }
 0xf44   :  { %2673 = vmatprep.subr.bf16.mxu0 %v6205_v17 }
 0xf47   :  { %2674 = vmatpush1.bf16.msra.mxu0 %v6203_v19 }
 0xf48   :  { %2675 = vmatprep.subr.bf16.mxu0 %v6208_v20 }
 0xf4b   :  { %2676 = vmatpush1.bf16.msra.mxu0 %v6206_v21 }
 0xf4c   :  { %2677 = vmatprep.subr.bf16.mxu0 %v6211_v22 }
 0xf4f   :  { %2678 = vmatpush1.bf16.msra.mxu0 %v6209_v23 }
 0xf50   :  { %5969 = vmatprep.subr.bf16.mxu0 %v6436_v53 }
0x1005   :  { %v2551_v24 = vpop.f32.mrb[36].mxu0 }
0x1006   :  { %v2558_v25 = vrot.slane %v2551_v24, %v6768_v55  ;;  %v5583_v26 = vpop.f32.mrb[37].mxu0  ;;  %v2563_v28 = vrot.slane %v2551_v24, %v6770_v56 }
0x1007   :  { %v2923_v26 = vld [vmem:[%s7473_s6 + $0x8] sm:$0xff] }
0x1008   :  { %v2559_v27 = vmul.f32 %v2558_v25, %v7022_v18  ;;  %v2922_v25 = vld [vmem:[%s7473_s6] sm:$0xff] }
0x100a   :  { %v2564_v29 = vadd.f32 %v2563_v28, %v2559_v27  ;;  %v5970_v27 = vpack.c.bf16 %v2923_v26, %v2922_v25  ;;  %v2924_v28 = vld [vmem:[%s7473_s6 + $0x10] sm:$0xff]  ;;  %v3279_v26 = vld [vmem:[%s7477_s23 + $0x18] sm:$0xff] }
0x100b   :  { %v3278_v25 = vld [vmem:[%s7477_s23 + $0x10] sm:$0xff] }
0x100c   :  { %v2565_v30 = vmax.f32 %v2564_v29, 0.0  ;;  %v2925_v29 = vld [vmem:[%s7473_s6 + $0x18] sm:$0xff] }
0x100e   :  { %v2566_v31 = vpack.c.bf16 %v2565_v30, %v2565_v30  ;;  %v5973_v30 = vpack.c.bf16 %v2925_v29, %v2924_v28  ;;  %v3280_v28 = vld [vmem:[%s7477_s23 + $0x20] sm:$0xff]  ;;  %v3281_v29 = vld [vmem:[%s7477_s23 + $0x28] sm:$0xff] }
0x1010   :  { %2696 = vmatmul.mubr.bf16.vlgmr.msra.gmra.mrb[40].mxu0 %v2566_v31  ;;  %v6214_v31 = vld [vmem:[%s7474_s16 + $0x4] ss:$8 sps:$4 sm:$0xff]  }
0x1011   :  { %5639 = vmatprep.mubr.msk.f32.mxu0 %vm6437_vm3, %v6438_v62  ;;  %5971 = vmatpush3.bf16.msra.mxu0 %v5970_v27  ;;  %v5979_v27 = vpack.c.bf16 %v3279_v26, %v3278_v25  ;;  %v3369_v25 = vld [vmem:[%s7480_s1] sm:$0x3] }
0x1012   :  { %5972 = vmatprep.subr.bf16.mxu0 %v6436_v53 }
0x1015   :  { %5974 = vmatpush3.bf16.msra.mxu0 %v5973_v30  ;;  %v5982_v30 = vpack.c.bf16 %v3281_v29, %v3280_v28 }
0x1016   :  { %3107 = vmatprep.subr.bf16.mxu0 %v6214_v31  ;;  %v3282_v31 = vld [vmem:[%s7477_s23 + $0x30] sm:$0xff] }
0x10e3   :  { %v2697_v32 = vpop.f32.mrb[40].mxu0 }
0x10e4   :  { %v2699_v33 = vpop.f32.mrb[41].mxu0  ;;  %v2704_v36 = vpack.c.bf16 %v2697_v32, %v2697_v32 }
0x10e5   :  { %v2705_v34 = vpack.c.bf16 %v2699_v33, %v2699_v33  ;;  %v2701_v35 = vpop.f32.mrb[42].mxu0 }
0x10e6   :  { %v2702_v18 = vpop.f32.mrb[43].mxu0  ;;  %v2760_v39 = vsel %vm2712_vm9, %v2704_v36, 0 }
0x10e7   :  { %v2714_v37 = vsel %vm2712_vm9, %v2705_v34, 0 }
0x10e8   :  { %5585 = vmatpush3.bf16.msra.mxu1 %v2714_v37 }
0x10e9   :  { %5590 = vmatprep.subr.bf16.mxu1 %v6438_v62 }
0x10eb   :  { %5587 = vmatmul.mubr.msk.bf16.vlgmr.msra.gmra.mrb[52].mxu1 %vm702_vm6, %v4864_v38 }
0x10ec   :  { %5591 = vmatpush3.bf16.msra.mxu1 %v2760_v39  ;;  %5592 = vmatprep.mubr.msk.bf16.mxu1 %vm6437_vm3, %v6438_v62 }
0x10ed   :  { %5945 = vmatprep.subr.bf16.mxu1 %v6436_v53 }
0x10f7   :  { %5593 = vmatmul.mubr.msk.bf16.vlgmr.msra.gmra.mrb[52].mxu1 %vm702_vm6, %v2706_v42 }
0x10f8   :  { %5947 = vmatpush3.bf16.msra.mxu1 %v5946_v43  ;;  %5628 = vmatprep.mubr.msk.f32.mxu1 %vm6437_vm3, %v6438_v62 }
0x10f9   :  { %5948 = vmatprep.subr.bf16.mxu1 %v6436_v53 }
0x10fc   :  { %5950 = vmatpush3.bf16.msra.mxu1 %v5949_v46  ;;  %v6212_v46 = vld [vmem:[%s7474_s16] ss:$8 sps:$4 sm:$0xff]  }
0x10fd   :  { %5951 = vmatprep.subr.bf16.mxu1 %v6436_v53 }
0x1100   :  { %5953 = vmatpush3.bf16.msra.mxu1 %v5952_v49  ;;  %v6215_v49 = vld [vmem:[%s7474_s16 + $0x10] ss:$8 sps:$4 sm:$0xff]  }
0x1101   :  { %5954 = vmatprep.subr.bf16.mxu1 %v6436_v53 }
0x1104   :  { %5956 = vmatpush3.bf16.msra.mxu1 %v5955_v52  ;;  %v6223_v52 = vld [vmem:[%s7474_s16 + $0x34] ss:$8 sps:$4 sm:$0xff]  }
0x1105   :  { %5957 = vmatprep.subr.bf16.mxu1 %v6436_v53 }
0x1108   :  { %5959 = vmatpush3.bf16.msra.mxu1 %v5958_v58  ;;  %v6224_v58 = vld [vmem:[%s7474_s16 + $0x40] ss:$8 sps:$4 sm:$0xff]  }
0x1109   :  { %5960 = vmatprep.subr.bf16.mxu1 %v6436_v53 }
0x110c   :  { %5962 = vmatpush3.bf16.msra.mxu1 %v5961_v61  ;;  %v6232_v61 = vld [vmem:[%s7474_s16 + $0x64] ss:$8 sps:$4 sm:$0xff]  }
0x110d   :  { %5963 = vmatprep.subr.bf16.mxu1 %v6436_v53 }
0x1110   :  { %5965 = vmatpush3.bf16.msra.mxu1 %v5964_v5  ;;  %v6233_v5 = vld [vmem:[%s7474_s16 + $0x70] ss:$8 sps:$4 sm:$0xff]  }
0x1111   :  { %5966 = vmatprep.subr.bf16.mxu1 %v6436_v53 }
0x1114   :  { %5968 = vmatpush3.bf16.msra.mxu1 %v5967_v8 }
0x1115   :  { %5642 = vmatprep.subr.bf16.mxu1 %v6438_v62 }
0x11ca   :  { %v7103_v9 = vpop.f32.mrb[52].mxu1 }
0x11cb   :  { %v2802_v10 = vrot.slane %v7103_v9, 4  ;;  %v2808_v11 = vmul.f32 %v7103_v9, %v7103_v9  ;;  %v5594_v12 = vpop.f32.mrb[53].mxu1 }
0x11cc   :  { %v2799_v13 = vpop.f32.mrb[54].mxu1 }
0x11cd   :  { %v2803_v14 = vadd.f32 %v2802_v10, %v7103_v9  ;;  %v2809_v15 = vrot.slane %v2808_v11, 4  ;;  %v5595_v0 = vpop.f32.mrb[55].mxu1 }
0x11cf   :  { %v2804_v1 = vrot.slane %v2803_v14, 2  ;;  %v2810_v3 = vadd.f32 %v2809_v15, %v2808_v11 }
0x11d1   :  { %v2805_v4 = vadd.f32 %v2804_v1, %v2803_v14  ;;  %v2811_v17 = vrot.slane %v2810_v3, 2 }
0x11d3   :  { %v2806_v19 = vrot.slane %v2805_v4, 1  ;;  %v2812_v20 = vadd.f32 %v2811_v17, %v2810_v3 }
0x11d5   :  { %v2813_v21 = vrot.slane %v2812_v20, 1  ;;  %v2807_v22 = vadd.f32 %v2806_v19, %v2805_v4  ;;  %v6236_v19 = vld [vmem:[%s7476_s22 + $0x8] sm:$0xff]  }
0x11d7   :  { %v2814_v23 = vadd.f32 %v2813_v21, %v2812_v20  ;;  %v3276_v21 = vld [vmem:[%s7477_s23] sm:$0xff] }
0x11d9   :  { %v2815_v24 = vsel %vm598_vm4, %v2807_v22, %v2814_v23  ;;  %v3277_v22 = vld [vmem:[%s7477_s23 + $0x8] sm:$0xff]  ;;  %v6237_v23 = vld [vmem:[%s7476_s22] sm:$0xff]  }
0x11da   :  { %5629 = vmatmul.mubr.f32.vlgmr.msra.gmra.mrb[50].mxu1 %v2815_v24  ;;  %v5976_v24 = vpack.c.bf16 %v3277_v22, %v3276_v21 }
0x11db   :  { %5644 = vmatprep.mubr.msk.bf16.mxu1 %vm6437_vm3, %v6438_v62 }
0x12ad   :  { %v2898_v32 = vpop.f32.mrb[50].mxu1 }
0x12ae   :  { %v2902_v33 = vmul.f32 0.03125, %v2898_v32  ;;  %v5630_v34 = vpop.f32.mrb[51].mxu1  ;;  %v3283_v32 = vld [vmem:[%s7477_s23 + $0x38] sm:$0xff] }
0x12af   :  { %v3284_v34 = vld [vmem:[%s7477_s23 + $0x40] sm:$0xff] }
0x12b0   :  { %v2903_v35 = vmul.f32 %v2902_v33, %v2902_v33 }
0x12b2   :  { %v2905_v18 = vrot.slane %v2903_v35, 7  ;;  %v3285_v35 = vld [vmem:[%s7477_s23 + $0x48] sm:$0xff] }
0x12b4   :  { %v2907_v36 = vsub.f32 %v2902_v33, %v2905_v18  ;;  %v5988_v18 = vpack.c.bf16 %v3285_v35, %v3284_v34  ;;  %v6245_v34 = vld [vmem:[%s7479_s28 + $0x38] sm:$0xff]  }
0x12b6   :  { %v2908_v37 = vmax.f32 %v2907_v36, 0.0  ;;  %v3286_v36 = vld [vmem:[%s7477_s23 + $0x50] sm:$0xff] }
0x12b8   :  { %v2910_v38 = vadd.f32 1e-05, %v2908_v37  ;;  %v3287_v37 = vld [vmem:[%s7477_s23 + $0x58] sm:$0xff] }
0x12ba   :  { %6286 = vrsqrt.f32 %v2910_v38  ;;  %v5991_v38 = vpack.c.bf16 %v3287_v37, %v3286_v36 }
0x12c4   :  { %v6287_v39 = vpop.eup %6286 }
0x12c5   :  { %v2913_v41 = vrot.slane %v6287_v39, 1  ;;  %v3288_v39 = vld [vmem:[%s7477_s23 + $0x60] sm:$0xff] }
0x12c7   :  { %v2915_v42 = vmul.f32 %v2913_v41, %v2909_v40 }
0x12c9   :  { %v2916_v43 = vmul.f32 %v2915_v42, %v2902_v33  ;;  %v5985_v33 = vpack.c.bf16 %v3283_v32, %v3282_v31  ;;  %v6243_v32 = vld [vmem:[%s7479_s28 + $0x28] sm:$0xff]  }
0x12cb   :  { %v2918_v44 = vrot.slane %v2916_v43, 7  ;;  %v3291_v43 = vld [vmem:[%s7477_s23 + $0x78] sm:$0xff] }
0x12cd   :  { %v2920_v45 = vsub.f32 %v2909_v40, %v2918_v44  ;;  %v3289_v40 = vld [vmem:[%s7477_s23 + $0x68] sm:$0xff] }
0x12ce   :  { %v5994_v41 = vpack.c.bf16 %v3289_v40, %v3288_v39 }
0x12cf   :  { %v2921_v48 = vsel %vm598_vm4, %v2915_v42, %v2920_v45  ;;  %v3290_v42 = vld [vmem:[%s7477_s23 + $0x70] sm:$0xff] }
0x12d0   :  { %5640 = vmatmul.mubr.msk.f32.vlgmr.msra.gmra.mrb[38].mxu0 %vm455_vm1, %v2921_v48  ;;  %v5997_v44 = vpack.c.bf16 %v3291_v43, %v3290_v42 }
0x12d1   :  { %3108 = vmatpush1.bf16.msra.mxu0 %v6212_v46  ;;  %3139 = vmatprep.mubr.bf16.mxu0 %v6439_v16 }
0x12d2   :  { %3109 = vmatprep.subr.bf16.mxu0 %v6217_v47 }
0x12d5   :  { %3110 = vmatpush1.bf16.msra.mxu0 %v6215_v49 }
0x12d6   :  { %3111 = vmatprep.subr.bf16.mxu0 %v6220_v50 }
0x12d9   :  { %3112 = vmatpush1.bf16.msra.mxu0 %v6218_v51 }
0x12da   :  { %3113 = vmatprep.subr.bf16.mxu0 %v6223_v52 }
0x12dd   :  { %3114 = vmatpush1.bf16.msra.mxu0 %v6221_v54 }
0x12de   :  { %3115 = vmatprep.subr.bf16.mxu0 %v6226_v57 }
0x12e1   :  { %3116 = vmatpush1.bf16.msra.mxu0 %v6224_v58 }
0x12e2   :  { %3117 = vmatprep.subr.bf16.mxu0 %v6229_v59 }
0x12e5   :  { %3118 = vmatpush1.bf16.msra.mxu0 %v6227_v60 }
0x12e6   :  { %3119 = vmatprep.subr.bf16.mxu0 %v6232_v61 }
0x12e9   :  { %3120 = vmatpush1.bf16.msra.mxu0 %v6230_v63 }
0x12ea   :  { %3121 = vmatprep.subr.bf16.mxu0 %v6235_v2 }
0x12ed   :  { %3122 = vmatpush1.bf16.msra.mxu0 %v6233_v5 }
0x12ee   :  { %5696 = vmatprep.subr.bf16.mxu0 %v6438_v62 }
0x13a3   :  { %v2995_v6 = vpop.f32.mrb[38].mxu0 }
0x13a4   :  { %v3002_v7 = vrot.slane %v2995_v6, %v6768_v55  ;;  %v5641_v8 = vpop.f32.mrb[39].mxu0  ;;  %v3007_v11 = vrot.slane %v2995_v6, %v6770_v56 }
0x13a6   :  { %v3003_v10 = vmul.f32 %v3002_v7, %v7103_v9 }
0x13a8   :  { %v3008_v12 = vadd.f32 %v3007_v11, %v3003_v10  ;;  %v3382_v11 = vld [vmem:[%s7478_s26] sm:$0xff] }
0x13aa   :  { %v3009_v13 = vmax.f32 %v3008_v12, 0.0  ;;  %v3383_v12 = vld [vmem:[%s7478_s26 + $0x8] sm:$0xff] }
0x13ac   :  { %v3010_v14 = vpack.c.bf16 %v3009_v13, %v3009_v13  ;;  %v6000_v13 = vpack.c.bf16 %v3383_v12, %v3382_v11 }
0x13ae   :  { %3140 = vmatmul.mubr.bf16.vlgmr.msra.gmra.mrb[44].mxu0 %v3010_v14  ;;  %v6238_v14 = vld [vmem:[%s7479_s28] sm:$0xff]  }
0x13af   :  { %5712 = vmatprep.mubr.msk.bf16.mxu0 %vm6437_vm3, %v6438_v62  ;;  %5697 = vmatpush3.bf16.msra.mxu0 %v6238_v14 }
0x13b0   :  { %5698 = vmatprep.subr.bf16.mxu0 %v6438_v62 }
0x1481   :  { %v3141_v15 = vpop.f32.mrb[44].mxu0 }
0x1482   :  { %v3143_v0 = vpop.f32.mrb[45].mxu0  ;;  %v3148_v9 = vpack.c.bf16 %v3141_v15, %v3141_v15  ;;  %v6239_v15 = vld [vmem:[%s7479_s28 + $0x8] sm:$0xff]  }
0x1483   :  { %v3149_v1 = vpack.c.bf16 %v3143_v0, %v3143_v0  ;;  %v3145_v3 = vpop.f32.mrb[46].mxu0  ;;  %5699 = vmatpush3.bf16.msra.mxu0 %v6239_v15  ;;  %v6240_v0 = vld [vmem:[%s7479_s28 + $0x10] sm:$0xff]  }
0x1484   :  { %v3146_v4 = vpop.f32.mrb[47].mxu0  ;;  %v3216_v20 = vsel %vm706_vm5, %v3148_v9, 0  ;;  %5700 = vmatprep.subr.bf16.mxu0 %v6438_v62  ;;  %v6242_v3 = vld [vmem:[%s7479_s28 + $0x20] sm:$0xff]  }
0x1485   :  { %v3164_v17 = vsel %vm706_vm5, %v3149_v1, 0  ;;  %v6241_v1 = vld [vmem:[%s7479_s28 + $0x18] sm:$0xff]  }
0x1486   :  { %5643 = vmatpush3.bf16.msra.mxu1 %v3164_v17 }
0x1487   :  { %5648 = vmatprep.subr.bf16.mxu1 %v6438_v62  ;;  %5701 = vmatpush3.bf16.msra.mxu0 %v6240_v0 }
0x1488   :  { %5702 = vmatprep.subr.bf16.mxu0 %v6438_v62 }
0x1489   :  { %5645 = vmatmul.mubr.msk.bf16.vlgmr.msra.gmra.mrb[56].mxu1 %vm1940_vm8, %v6236_v19 }
0x148a   :  { %5649 = vmatpush3.bf16.msra.mxu1 %v3216_v20  ;;  %5650 = vmatprep.mubr.msk.bf16.mxu1 %vm6437_vm3, %v6438_v62 }
0x148b   :  { %5975 = vmatprep.subr.bf16.mxu1 %v6436_v53  ;;  %5703 = vmatpush3.bf16.msra.mxu0 %v6241_v1 }
0x148c   :  { %5704 = vmatprep.subr.bf16.mxu0 %v6438_v62 }
0x148f   :  { %5705 = vmatpush3.bf16.msra.mxu0 %v6242_v3 }
0x1490   :  { %5706 = vmatprep.subr.bf16.mxu0 %v6438_v62 }
0x1493   :  { %5707 = vmatpush3.bf16.msra.mxu0 %v6243_v32 }
0x1494   :  { %5708 = vmatprep.subr.bf16.mxu0 %v6438_v62 }
0x1495   :  { %5651 = vmatmul.mubr.msk.bf16.vlgmr.msra.gmra.mrb[56].mxu1 %vm1940_vm8, %v6237_v23 }
0x1496   :  { %5977 = vmatpush3.bf16.msra.mxu1 %v5976_v24  ;;  %5686 = vmatprep.mubr.msk.f32.mxu1 %vm6437_vm3, %v6438_v62 }
0x1497   :  { %5978 = vmatprep.subr.bf16.mxu1 %v6436_v53 }
0x149a   :  { %5980 = vmatpush3.bf16.msra.mxu1 %v5979_v27 }
0x149b   :  { %5981 = vmatprep.subr.bf16.mxu1 %v6436_v53 }
0x149e   :  { %5983 = vmatpush3.bf16.msra.mxu1 %v5982_v30 }
0x149f   :  { %5984 = vmatprep.subr.bf16.mxu1 %v6436_v53 }
0x14a2   :  { %5986 = vmatpush3.bf16.msra.mxu1 %v5985_v33  ;;  %v6244_v33 = vld [vmem:[%s7479_s28 + $0x30] sm:$0xff]  }
0x14a3   :  { %5987 = vmatprep.subr.bf16.mxu1 %v6436_v53  ;;  %5709 = vmatpush3.bf16.msra.mxu0 %v6244_v33 }
0x14a4   :  { %5710 = vmatprep.subr.bf16.mxu0 %v6438_v62 }
0x14a6   :  { %5989 = vmatpush3.bf16.msra.mxu1 %v5988_v18 }
0x14a7   :  { %5990 = vmatprep.subr.bf16.mxu1 %v6436_v53  ;;  %5711 = vmatpush3.bf16.msra.mxu0 %v6245_v34 }
0x14a8   :  { %6002 = vmatprep.subr.bf16.mxu0 %v6436_v53 }
0x14aa   :  { %5992 = vmatpush3.bf16.msra.mxu1 %v5991_v38 }
0x14ab   :  { %5993 = vmatprep.subr.bf16.mxu1 %v6436_v53 }
0x14ae   :  { %5995 = vmatpush3.bf16.msra.mxu1 %v5994_v41 }
0x14af   :  { %5996 = vmatprep.subr.bf16.mxu1 %v6436_v53 }
0x14b2   :  { %5998 = vmatpush3.bf16.msra.mxu1 %v5997_v44 }
0x14b3   :  { %5999 = vmatprep.subr.bf16.mxu1 %v6436_v53 }
0x1568   :  { %v7179_v45 = vpop.f32.mrb[56].mxu1 }
0x1569   :  { %v5652_v46 = vpop.f32.mrb[57].mxu1  ;;  %v3266_v48 = vmul.f32 %v7179_v45, %v7179_v45 }
0x156a   :  { %v7181_v47 = vpop.f32.mrb[58].mxu1  ;;  %v6246_v46 = vld [vmem:[%s7481_s2 + $0x10] sm:$0xff]  }
0x156b   :  { %v3259_v49 = vadd.f32 %v7181_v47, %v7179_v45  ;;  %v3267_v50 = vmul.f32 %v7181_v47, %v7181_v47  ;;  %v5653_v51 = vpop.f32.mrb[59].mxu1 }
0x156d   :  { %v3260_v52 = vrot.slane %v3259_v49, 4  ;;  %v3268_v54 = vadd.f32 %v3267_v50, %v3266_v48 }
0x156f   :  { %v3261_v57 = vadd.f32 %v3260_v52, %v3259_v49  ;;  %v3269_v58 = vrot.slane %v3268_v54, 4  ;;  %v6247_v52 = vld [vmem:[%s7481_s2 + $0x18] sm:$0xff]  }
0x1571   :  { %v3262_v59 = vrot.slane %v3261_v57, 2  ;;  %v3270_v60 = vadd.f32 %v3269_v58, %v3268_v54  ;;  %v6248_v54 = vld [vmem:[%s7481_s2] sm:$0xff]  }
0x1572   :  { %v3752_v58 = vld [vmem:[%s7482_s0] sm:$0xff] }
0x1573   :  { %v3263_v61 = vadd.f32 %v3262_v59, %v3261_v57  ;;  %v3271_v63 = vrot.slane %v3270_v60, 2  ;;  %v6249_v57 = vld [vmem:[%s7481_s2 + $0x8] sm:$0xff]  }
0x1574   :  { %v3753_v59 = vld [vmem:[%s7482_s0 + $0x8] sm:$0xff] }
0x1575   :  { %v3264_v2 = vrot.slane %v3263_v61, 1  ;;  %v3272_v5 = vadd.f32 %v3271_v63, %v3270_v60  ;;  %v6003_v60 = vpack.c.bf16 %v3753_v59, %v3752_v58  ;;  %v3755_v63 = vld [vmem:[%s7482_s0 + $0x18] sm:$0xff] }
0x1577   :  { %v3273_v6 = vrot.slane %v3272_v5, 1  ;;  %v3265_v7 = vadd.f32 %v3264_v2, %v3263_v61  ;;  %v3754_v61 = vld [vmem:[%s7482_s0 + $0x10] sm:$0xff] }
0x1578   :  { %v6006_v2 = vpack.c.bf16 %v3755_v63, %v3754_v61 }
0x1579   :  { %v3274_v8 = vadd.f32 %v3273_v6, %v3272_v5  ;;  %v3756_v5 = vld [vmem:[%s7482_s0 + $0x20] sm:$0xff]  ;;  %v3757_v6 = vld [vmem:[%s7482_s0 + $0x28] sm:$0xff] }
0x157b   :  { %v3275_v10 = vsel %vm598_vm4, %v3265_v7, %v3274_v8  ;;  %v6009_v7 = vpack.c.bf16 %v3757_v6, %v3756_v5  ;;  %v3758_v8 = vld [vmem:[%s7482_s0 + $0x30] sm:$0xff] }
0x157c   :  { %5687 = vmatmul.mubr.f32.vlgmr.msra.gmra.mrb[60].mxu1 %v3275_v10  ;;  %v3759_v10 = vld [vmem:[%s7482_s0 + $0x38] sm:$0xff] }
0x157d   :  { %5693 = vmatprep.mubr.msk.f32.mxu1 %vm6437_vm3, %v6438_v62  ;;  %6001 = vmatpush3.bf16.msra.mxu1 %v6000_v13  ;;  %v6012_v11 = vpack.c.bf16 %v3759_v10, %v3758_v8  ;;  %v6255_v5 = vld [vmem:[%s7484_s10 + $0x14] ss:$8 sps:$4 sm:$0xff]   ;;  %v6258_v8 = vld [vmem:[%s7484_s10 + $0x24] ss:$8 sps:$4 sm:$0xff]   ;;  %v6256_v10 = vld [vmem:[%s7484_s10 + $0x20] ss:$8 sps:$4 sm:$0xff]  }
0x164f   :  { %v3358_v4 = vpop.f32.mrb[60].mxu1 }
0x1650   :  { %v3362_v9 = vmul.f32 0.0078125, %v3358_v4  ;;  %v5688_v17 = vpop.f32.mrb[61].mxu1 }
0x1652   :  { %v3363_v19 = vmul.f32 %v3362_v9, %v3362_v9 }
0x1654   :  { %v3365_v20 = vrot.slane %v3363_v19, 7 }
0x1656   :  { %v3367_v21 = vsub.f32 %v3362_v9, %v3365_v20 }
0x1658   :  { %v3368_v22 = vmax.f32 %v3367_v21, 0.0 }
0x165a   :  { %v3370_v23 = vadd.f32 1e-05, %v3368_v22 }
0x165c   :  { %6288 = vrsqrt.f32 %v3370_v23 }
0x1666   :  { %v6289_v24 = vpop.eup %6288 }
0x1667   :  { %v3373_v26 = vrot.slane %v6289_v24, 1 }
0x1669   :  { %v3375_v27 = vmul.f32 %v3373_v26, %v3369_v25 }
0x166b   :  { %v3376_v28 = vmul.f32 %v3375_v27, %v3362_v9 }
0x166d   :  { %v3378_v29 = vrot.slane %v3376_v28, 7 }
0x166f   :  { %v3380_v30 = vsub.f32 %v3369_v25, %v3378_v29 }
0x1671   :  { %v3381_v31 = vsel %vm598_vm4, %v3375_v27, %v3380_v30 }
0x1672   :  { %5694 = vmatmul.mubr.msk.f32.vlgmr.msra.gmra.mrb[62].mxu1 %vm1232_vm7, %v3381_v31 }
0x1673   :  { %5718 = vmatprep.mubr.msk.bf16.mxu1 %vm1232_vm7, %v6246_v46 }
0x1745   :  { %v3453_v35 = vpop.f32.mrb[62].mxu1 }
0x1746   :  { %v3460_v18 = vrot.slane %v3453_v35, %v6768_v55  ;;  %v5695_v36 = vpop.f32.mrb[63].mxu1  ;;  %v3466_v39 = vrot.slane %v3453_v35, %v6770_v56 }
0x1748   :  { %v3461_v37 = vmul.f32 %v3460_v18, %v7179_v45  ;;  %v3462_v38 = vmul.f32 %v3460_v18, %v7181_v47 }
0x174a   :  { %v3467_v40 = vadd.f32 %v3466_v39, %v3461_v37  ;;  %v3468_v41 = vadd.f32 %v3466_v39, %v3462_v38 }
0x174c   :  { %v3469_v42 = vmax.f32 %v3467_v40, 0.0  ;;  %v3470_v43 = vmax.f32 %v3468_v41, 0.0 }
0x174e   :  { %v3471_v44 = vpack.c.bf16 %v3470_v43, %v3469_v42  ;;  %v3853_v43 = vld [vmem:[%s7483_s7] sm:$0xf] }
0x1750   :  { %5713 = vmatmul.mubr.bf16.vlgmr.msra.gmra.mrb[48].mxu0 %v3471_v44  ;;  %v6252_v44 = vld [vmem:[%s7484_s10 + $0x4] ss:$8 sps:$4 sm:$0xff]  }
0x1751   :  { %5744 = vmatprep.mubr.msk.f32.mxu0 %vm6437_vm3, %v6438_v62  ;;  %6004 = vmatpush3.bf16.msra.mxu0 %v6003_v60 }
0x1752   :  { %6005 = vmatprep.subr.bf16.mxu0 %v6436_v53 }
0x1755   :  { %6007 = vmatpush3.bf16.msra.mxu0 %v6006_v2  ;;  %v6250_v2 = vld [vmem:[%s7484_s10] ss:$8 sps:$4 sm:$0xff]  }
0x1756   :  { %6008 = vmatprep.subr.bf16.mxu0 %v6436_v53 }
0x1759   :  { %6010 = vmatpush3.bf16.msra.mxu0 %v6009_v7  ;;  %v6253_v7 = vld [vmem:[%s7484_s10 + $0x10] ss:$8 sps:$4 sm:$0xff]  }
0x175a   :  { %6011 = vmatprep.subr.bf16.mxu0 %v6436_v53 }
0x175d   :  { %6013 = vmatpush3.bf16.msra.mxu0 %v6012_v11  ;;  %v6261_v11 = vld [vmem:[%s7484_s10 + $0x34] ss:$8 sps:$4 sm:$0xff]  }
0x1823   :  { %v3570_v48 = vpop.f32.mrb[48].mxu0 }
0x1824   :  { %v5714_v45 = vpop.f32.mrb[49].mxu0 }
0x1825   :  { %v3573_v47 = vpop.f32.mrb[50].mxu0 }
0x1826   :  { %v3577_v49 = vpack.c.bf16 %v3573_v47, %v3570_v48  ;;  %v5715_v50 = vpop.f32.mrb[51].mxu0 }
0x1828   :  { %3598 = vrot.lane.b32.xlu1 %v3577_v49, %s6434_s5  ;;  %s7488_s5 = sld [smem:[#allocation37_spill]] }
0x189a   :  { %v3599_v51 = vpop.permute.xlu1 %3598 }
0x189b   :  { %5716 = vmatprep.subr.bf16.mxu1 %v3599_v51 }
0x189c   :  { %5717 = vmatpush3.bf16.msra.mxu1 %v3599_v51 }
0x189d   :  { %5722 = vmatprep.subr.bf16.mxu1 %v3577_v49 }
0x189f   :  { %5719 = vmatmul.mubr.msk.bf16.vlgmr.msra.gmra.mrb[64].mxu1 %vm1232_vm7, %v6247_v52 }
0x18a0   :  { %5723 = vmatpush3.bf16.msra.mxu1 %v3577_v49  ;;  %5724 = vmatprep.mubr.msk.bf16.mxu1 %vm1232_vm7, %v6248_v54 }
0x18a1   :  { %5747 = vmatprep.subr.mxu1 %v6438_v62 }
0x18ab   :  { %5725 = vmatmul.mubr.msk.bf16.vlgmr.msra.gmra.mrb[64].mxu1 %vm1232_vm7, %v6249_v57  ;;  %v3840_v57 = vld [vmem:[%s7485_s11] sm:$0x3] }
0x18ac   :  { %5749 = vmatprep.mubr.msk.f32.mxu1 %vm6437_vm3, %v6438_v62  ;;  %5748 = vmatpush3.msk.msra.mxu1 %vm706_vm5, %v3853_v43  ;;  %v6267_v43 = vld [vmem:[%s7486_s25 + $0x8] sm:$0xff]  }
0x18ad   :  { %4006 = vmatprep.subr.bf16.mxu1 %v6252_v44  ;;  %v6268_v44 = vld [vmem:[%s7486_s25 + $0x10] sm:$0xff]  }
0x197e   :  { %v7242_v12 = vpop.f32.mrb[64].mxu1 }
0x197f   :  { %v7244_v13 = vpop.f32.mrb[65].mxu1  ;;  %v3736_v1 = vmul.f32 %v7242_v12, %v7242_v12  ;;  %v3724_v19 = vsel %vm241_vm0, %v7242_v12, 0.0 }
0x1980   :  { %v3734_v14 = vmul.f32 %v7244_v13, %v7244_v13  ;;  %v7248_v15 = vpop.f32.mrb[66].mxu1  ;;  %v3721_v3 = vsel %vm241_vm0, %v7244_v13, 0.0 }
0x1981   :  { %v7250_v0 = vpop.f32.mrb[67].mxu1  ;;  %v3737_v21 = vmul.f32 %v7248_v15, %v7248_v15  ;;  %v3741_v25 = vsel %vm241_vm0, %v3736_v1, 0.0  ;;  %v3726_v26 = vsel %vm241_vm0, %v7248_v15, 0.0 }
0x1982   :  { %v3722_v4 = vsel %vm241_vm0, %v7250_v0, 0.0  ;;  %v3735_v9 = vmul.f32 %v7250_v0, %v7250_v0  ;;  %v3738_v20 = vsel %vm241_vm0, %v3734_v14, 0.0  ;;  %v6259_v14 = vld [vmem:[%s7484_s10 + $0x30] ss:$8 sps:$4 sm:$0xff]  }
0x1983   :  { %v3723_v17 = vadd.f32 %v3722_v4, %v3721_v3  ;;  %v3743_v29 = vsel %vm241_vm0, %v3737_v21, 0.0 }
0x1984   :  { %v3739_v22 = vsel %vm241_vm0, %v3735_v9, 0.0 }
0x1985   :  { %v3725_v23 = vadd.f32 %v3724_v19, %v3723_v17  ;;  %v3740_v24 = vadd.f32 %v3739_v22, %v3738_v20 }
0x1987   :  { %v3727_v27 = vadd.f32 %v3726_v26, %v3725_v23  ;;  %v3742_v28 = vadd.f32 %v3741_v25, %v3740_v24 }
0x1989   :  { %v3728_v30 = vrot.slane %v3727_v27, 4  ;;  %v3744_v31 = vadd.f32 %v3743_v29, %v3742_v28 }
0x198b   :  { %v3729_v32 = vadd.f32 %v3728_v30, %v3727_v27  ;;  %v3745_v33 = vrot.slane %v3744_v31, 4 }
0x198d   :  { %v3730_v34 = vrot.slane %v3729_v32, 2  ;;  %v3746_v35 = vadd.f32 %v3745_v33, %v3744_v31 }
0x198f   :  { %v3731_v18 = vadd.f32 %v3730_v34, %v3729_v32  ;;  %v3747_v36 = vrot.slane %v3746_v35, 2 }
0x1991   :  { %v3732_v37 = vrot.slane %v3731_v18, 1  ;;  %v3748_v38 = vadd.f32 %v3747_v36, %v3746_v35 }
0x1993   :  { %v3749_v39 = vrot.slane %v3748_v38, 1  ;;  %v3733_v40 = vadd.f32 %v3732_v37, %v3731_v18 }
0x1995   :  { %v3750_v41 = vadd.f32 %v3749_v39, %v3748_v38  ;;  %v6263_v39 = vld [vmem:[%s7486_s25 + $0x28] sm:$0xff]  }
0x1997   :  { %v3751_v42 = vsel %vm598_vm4, %v3733_v40, %v3750_v41  ;;  %v6264_v40 = vld [vmem:[%s7486_s25 + $0x30] sm:$0xff]   ;;  %v6265_v41 = vld [vmem:[%s7486_s25 + $0x38] sm:$0xff]  }
0x1998   :  { %5745 = vmatmul.mubr.msk.f32.vlgmr.msra.gmra.mrb[52].mxu0 %vm241_vm0, %v3751_v42  ;;  %v6266_v42 = vld [vmem:[%s7486_s25] sm:$0xff]  }
0x1a6b   :  { %v3829_v46 = vpop.f32.mrb[52].mxu0 }
0x1a6c   :  { %v3833_v48 = vmul.f32 0.001953125, %v3829_v46  ;;  %v5746_v45 = vpop.f32.mrb[53].mxu0  ;;  %v6269_v46 = vld [vmem:[%s7486_s25 + $0x18] sm:$0xff]  }
0x1a6d   :  { %v4310_v45 = vld [vmem:[%s7487_s15 + $0x8] sm:$0xff] }
0x1a6e   :  { %v3834_v47 = vmul.f32 %v3833_v48, %v3833_v48 }
0x1a70   :  { %v3836_v49 = vrot.slane %v3834_v47, 7 }
0x1a72   :  { %v3838_v50 = vsub.f32 %v3833_v48, %v3836_v49  ;;  %v4311_v49 = vld [vmem:[%s7487_s15 + $0x10] sm:$0xff] }
0x1a74   :  { %v3839_v51 = vmax.f32 %v3838_v50, 0.0  ;;  %v4312_v50 = vld [vmem:[%s7487_s15 + $0x18] sm:$0xff] }
0x1a76   :  { %v3841_v52 = vadd.f32 1e-05, %v3839_v51  ;;  %v6018_v51 = vpack.c.bf16 %v4312_v50, %v4311_v49 }
0x1a78   :  { %6290 = vrsqrt.f32 %v3841_v52  ;;  %v4313_v52 = vld [vmem:[%s7487_s15 + $0x20] sm:$0xff] }
0x1a82   :  { %v6291_v54 = vpop.eup %6290 }
0x1a83   :  { %v3844_v58 = vrot.slane %v6291_v54, 1 }
0x1a85   :  { %v3846_v59 = vmul.f32 %v3844_v58, %v3840_v57  ;;  %v4316_v58 = vld [vmem:[%s7487_s15 + $0x38] sm:$0xff] }
0x1a87   :  { %v3847_v60 = vmul.f32 %v3846_v59, %v3833_v48  ;;  %v4309_v48 = vld [vmem:[%s7487_s15] sm:$0xff] }
0x1a88   :  { %v6015_v47 = vpack.c.bf16 %v4310_v45, %v4309_v48 }
0x1a89   :  { %v3849_v61 = vrot.slane %v3847_v60, 7  ;;  %v4317_v60 = vld [vmem:[%s7487_s15 + $0x40] sm:$0xff] }
0x1a8b   :  { %v3851_v63 = vsub.f32 %v3840_v57, %v3849_v61  ;;  %v4315_v57 = vld [vmem:[%s7487_s15 + $0x30] sm:$0xff]  ;;  %v4318_v61 = vld [vmem:[%s7487_s15 + $0x48] sm:$0xff] }
0x1a8d   :  { %v3852_v6 = vsel %vm598_vm4, %v3846_v59, %v3851_v63  ;;  %v6024_v59 = vpack.c.bf16 %v4316_v58, %v4315_v57  ;;  %v6027_v63 = vpack.c.bf16 %v4318_v61, %v4317_v60 }
0x1a8e   :  { %5750 = vmatmul.mubr.msk.f32.vlgmr.msra.gmra.mrb[68].mxu1 %vm702_vm6, %v3852_v6 }
0x1a8f   :  { %4007 = vmatpush1.bf16.msra.mxu1 %v6250_v2  ;;  %4038 = vmatprep.mubr.bf16.mxu1 %v6439_v16  ;;  %v4319_v2 = vld [vmem:[%s7487_s15 + $0x50] sm:$0xff] }
0x1a90   :  { %4008 = vmatprep.subr.bf16.mxu1 %v6255_v5  ;;  %v4320_v5 = vld [vmem:[%s7487_s15 + $0x58] sm:$0xff] }
0x1a91   :  { %v6030_v6 = vpack.c.bf16 %v4320_v5, %v4319_v2  ;;  %v4402_v5 = vld [vmem:[%s6651_s27] sm:$0x3] }
0x1a93   :  { %4009 = vmatpush1.bf16.msra.mxu1 %v6253_v7  ;;  %v4321_v7 = vld [vmem:[%s7487_s15 + $0x60] sm:$0xff] }
0x1a94   :  { %4010 = vmatprep.subr.bf16.mxu1 %v6258_v8  ;;  %v4322_v8 = vld [vmem:[%s7487_s15 + $0x68] sm:$0xff] }
0x1a97   :  { %4011 = vmatpush1.bf16.msra.mxu1 %v6256_v10  ;;  %v4323_v10 = vld [vmem:[%s7487_s15 + $0x70] sm:$0xff] }
0x1a98   :  { %4012 = vmatprep.subr.bf16.mxu1 %v6261_v11  ;;  %v6033_v11 = vpack.c.bf16 %v4322_v8, %v4321_v7 }
0x1a9b   :  { %4013 = vmatpush1.bf16.msra.mxu1 %v6259_v14  ;;  %v4324_v14 = vld [vmem:[%s7487_s15 + $0x78] sm:$0xff] }
0x1a9c   :  { %6014 = vmatprep.subr.bf16.mxu1 %v6436_v53 }
0x1b61   :  { %v3926_v1 = vpop.f32.mrb[68].mxu1 }
0x1b62   :  { %v3933_v3 = vrot.slane %v3926_v1, %v6768_v55  ;;  %v5751_v4 = vpop.f32.mrb[69].mxu1  ;;  %v3941_v9 = vrot.slane %v3926_v1, %v6770_v56  ;;  %v6036_v1 = vpack.c.bf16 %v4324_v14, %v4323_v10  ;;  %v6271_v14 = vld [vmem:[%s6656_s4 + $0x8] sm:$0xff]  }
0x1b64   :  { %v3934_v17 = vmul.f32 %v3933_v3, %v7244_v13  ;;  %v3935_v19 = vmul.f32 %v3933_v3, %v7250_v0  ;;  %v3936_v20 = vmul.f32 %v7242_v12, %v3933_v3  ;;  %v3937_v21 = vmul.f32 %v7248_v15, %v3933_v3  ;;  %v6262_v12 = vld [vmem:[%s7486_s25 + $0x20] sm:$0xff]  }
0x1b65   :  { %5756 = vmatprep.mubr.msk.bf16.mxu0 %vm455_vm1, %v6262_v12 }
0x1b66   :  { %v3942_v22 = vadd.f32 %v3941_v9, %v3934_v17  ;;  %v3943_v23 = vadd.f32 %v3941_v9, %v3935_v19  ;;  %v3944_v24 = vadd.f32 %v3941_v9, %v3936_v20  ;;  %v3945_v25 = vadd.f32 %v3941_v9, %v3937_v21 }
0x1b68   :  { %v3946_v26 = vmax.f32 %v3942_v22, 0.0  ;;  %v3947_v27 = vmax.f32 %v3943_v23, 0.0  ;;  %v3948_v28 = vmax.f32 %v3944_v24, 0.0  ;;  %v3949_v29 = vmax.f32 %v3945_v25, 0.0 }
0x1b6a   :  { %v3950_v30 = vpack.c.bf16 %v3947_v27, %v3946_v26  ;;  %v3951_v31 = vpack.c.bf16 %v3949_v29, %v3948_v28 }
0x1b6c   :  { %4922 = vmatmul.mubr.msk.bf16.vlgmr.msra.gmra.mrb[72].mxu1 %vm241_vm0, %v3950_v30 }
0x1b6d   :  { %4048 = vmatprep.mubr.bf16.mxu1 %v6439_v16  ;;  %6016 = vmatpush3.bf16.msra.mxu1 %v6015_v47 }
0x1b6e   :  { %6017 = vmatprep.subr.bf16.mxu1 %v6436_v53 }
0x1b71   :  { %6019 = vmatpush3.bf16.msra.mxu1 %v6018_v51  ;;  %v4415_v51 = vld [vmem:[%s7488_s5] sm:$0xf] }
0x1b72   :  { %6020 = vmatprep.subr.bf16.mxu1 %v6436_v53 }
0x1b74   :  { %4923 = vmatmul.mubr.msk.bf16.gmra.mrb[76].mxu1 %vm241_vm0, %v3951_v31 }
0x1b75   :  { %5808 = vmatprep.mubr.msk.f32.mxu1 %vm6437_vm3, %v6438_v62 }
0x1c3f   :  { %v4040_v13 = vpop.f32.mrb[72].mxu1 }
0x1c40   :  { %v4042_v15 = vpop.f32.mrb[73].mxu1 }
0x1c41   :  { %v4044_v0 = vpop.f32.mrb[74].mxu1 }
0x1c42   :  { %v4059_v32 = vpack.c.bf16 %v4044_v0, %v4040_v13  ;;  %v4046_v33 = vpop.f32.mrb[75].mxu1 }
0x1c43   :  { %v4061_v34 = vpack.c.bf16 %v4046_v33, %v4042_v15 }
0x1c45   :  { %5752 = vmatprep.subr.bf16.mxu0 %v4061_v34 }
0x1c46   :  { %5753 = vmatpush3.bf16.msra.mxu0 %v4061_v34 }
0x1c47   :  { %v4050_v16 = vpop.f32.mrb[76].mxu1 }
0x1c48   :  { %v4052_v35 = vpop.f32.mrb[77].mxu1 }
0x1c49   :  { %v4054_v18 = vpop.f32.mrb[78].mxu1 }
0x1c4a   :  { %v4060_v36 = vpack.c.bf16 %v4054_v18, %v4050_v16  ;;  %v4056_v37 = vpop.f32.mrb[79].mxu1 }
0x1c4b   :  { %v4062_v38 = vpack.c.bf16 %v4056_v37, %v4052_v35 }
0x1c4d   :  { %5754 = vmatprep.subr.bf16.mxu0 %v4062_v38 }
0x1c4e   :  { %5755 = vmatpush3.bf16.msra.mxu0 %v4062_v38 }
0x1c4f   :  { %5764 = vmatprep.subr.bf16.mxu0 %v4059_v32 }
0x1c51   :  { %5757 = vmatmul.mubr.msk.bf16.vlgmr.msra.gmra.mrb[56].mxu0 %vm455_vm1, %v6263_v39 }
0x1c52   :  { %5765 = vmatpush3.bf16.msra.mxu0 %v4059_v32  ;;  %5760 = vmatprep.mubr.msk.bf16.mxu0 %vm455_vm1, %v6264_v40 }
0x1c53   :  { %5766 = vmatprep.subr.bf16.mxu0 %v4060_v36 }
0x1c56   :  { %5767 = vmatpush3.bf16.msra.mxu0 %v4060_v36 }
0x1c57   :  { %5811 = vmatprep.subr.mxu0 %v6438_v62 }
0x1c59   :  { %5761 = vmatmul.mubr.msk.bf16.gmra.mrb[60].mxu0 %vm455_vm1, %v6265_v41 }
0x1c5a   :  { %5768 = vmatprep.mubr.msk.bf16.mxu0 %vm455_vm1, %v6266_v42 }
0x1c61   :  { %5769 = vmatmul.mubr.msk.bf16.vlgmr.msra.gmra.mrb[56].mxu0 %vm455_vm1, %v6267_v43 }
0x1c62   :  { %5772 = vmatprep.mubr.msk.bf16.mxu0 %vm455_vm1, %v6268_v44  ;;  %5812 = vmatpush3.msk.msra.mxu0 %vm706_vm5, %v4415_v51 }
0x1c69   :  { %5773 = vmatmul.mubr.msk.bf16.gmra.mrb[60].mxu0 %vm455_vm1, %v6269_v46 }
0x1c6a   :  { %5813 = vmatprep.mubr.msk.f32.mxu0 %vm6437_vm3, %v6438_v62  ;;  %v4314_v62 = vld [vmem:[%s7487_s15 + $0x28] sm:$0xff] }
0x1c6b   :  { %v6021_v54 = vpack.c.bf16 %v4314_v62, %v4313_v52  ;;  %v6270_v52 = vld [vmem:[%s6656_s4] sm:$0xff]  }
0x1c6c   :  { %5816 = vmatprep.subr.bf16.mxu0 %v6270_v52 }
0x1c6d   :  { %6022 = vmatpush3.bf16.msra.mxu1 %v6021_v54 }
0x1c6e   :  { %6023 = vmatprep.subr.bf16.mxu1 %v6436_v53 }
0x1c71   :  { %6025 = vmatpush3.bf16.msra.mxu1 %v6024_v59 }
0x1c72   :  { %6026 = vmatprep.subr.bf16.mxu1 %v6436_v53 }
0x1c75   :  { %6028 = vmatpush3.bf16.msra.mxu1 %v6027_v63 }
0x1c76   :  { %6029 = vmatprep.subr.bf16.mxu1 %v6436_v53 }
0x1c79   :  { %6031 = vmatpush3.bf16.msra.mxu1 %v6030_v6 }
0x1c7a   :  { %6032 = vmatprep.subr.bf16.mxu1 %v6436_v53 }
0x1c7d   :  { %6034 = vmatpush3.bf16.msra.mxu1 %v6033_v11 }
0x1c7e   :  { %6035 = vmatprep.subr.bf16.mxu1 %v6436_v53 }
0x1c81   :  { %6037 = vmatpush3.bf16.msra.mxu1 %v6036_v1 }
0x1d34   :  { %v7340_v3 = vpop.f32.mrb[56].mxu0 }
0x1d35   :  { %v7342_v4 = vpop.f32.mrb[57].mxu0  ;;  %v4289_v53 = vmul.f32 %v7340_v3, %v7340_v3 }
0x1d36   :  { %v7344_v9 = vpop.f32.mrb[58].mxu0  ;;  %v4287_v19 = vmul.f32 %v7342_v4, %v7342_v4 }
0x1d37   :  { %v7346_v17 = vpop.f32.mrb[59].mxu0  ;;  %v4290_v24 = vmul.f32 %v7344_v9, %v7344_v9 }
0x1d38   :  { %v4274_v20 = vadd.f32 %v7346_v17, %v7342_v4  ;;  %v4288_v21 = vmul.f32 %v7346_v17, %v7346_v17 }
0x1d3a   :  { %v4275_v22 = vadd.f32 %v7340_v3, %v4274_v20  ;;  %v4295_v23 = vadd.f32 %v4288_v21, %v4287_v19  ;;  %v6272_v19 = vld [vmem:[%s6656_s4 + $0x10] sm:$0xff]   ;;  %v6273_v20 = vld [vmem:[%s6656_s4 + $0x18] sm:$0xff]   ;;  %v6274_v21 = vld [vmem:[%s6656_s4 + $0x20] sm:$0xff]  }
0x1d3c   :  { %v4296_v25 = vadd.f32 %v4295_v23, %v4289_v53  ;;  %v7359_v26 = vpop.f32.mrb[60].mxu0  ;;  %v4276_v27 = vadd.f32 %v7344_v9, %v4275_v22  ;;  %v6275_v53 = vld [vmem:[%s6656_s4 + $0x28] sm:$0xff]   ;;  %v6276_v22 = vld [vmem:[%s6656_s4 + $0x30] sm:$0xff]   ;;  %v6277_v23 = vld [vmem:[%s6656_s4 + $0x38] sm:$0xff]  }
0x1d3d   :  { %v7362_v28 = vpop.f32.mrb[61].mxu0  ;;  %v4293_v33 = vmul.f32 %v7359_v26, %v7359_v26 }
0x1d3e   :  { %v4277_v29 = vadd.f32 %v4276_v27, %v7362_v28  ;;  %v4291_v30 = vmul.f32 %v7362_v28, %v7362_v28  ;;  %v4297_v31 = vadd.f32 %v4296_v25, %v4290_v24  ;;  %v7367_v12 = vpop.f32.mrb[62].mxu0 }
0x1d3f   :  { %v7369_v13 = vpop.f32.mrb[63].mxu0  ;;  %v4294_v35 = vmul.f32 %v7367_v12, %v7367_v12 }
0x1d40   :  { %v4298_v15 = vadd.f32 %v4297_v31, %v4291_v30  ;;  %v4278_v0 = vadd.f32 %v4277_v29, %v7369_v13  ;;  %v4292_v32 = vmul.f32 %v7369_v13, %v7369_v13 }
0x1d42   :  { %v4279_v34 = vadd.f32 %v7359_v26, %v4278_v0  ;;  %v4299_v16 = vadd.f32 %v4298_v15, %v4292_v32 }
0x1d44   :  { %v4280_v18 = vadd.f32 %v7367_v12, %v4279_v34  ;;  %v4300_v36 = vadd.f32 %v4299_v16, %v4293_v33 }
0x1d46   :  { %v4281_v37 = vrot.slane %v4280_v18, 4  ;;  %v4301_v38 = vadd.f32 %v4300_v36, %v4294_v35 }
0x1d48   :  { %v4282_v39 = vadd.f32 %v4281_v37, %v4280_v18  ;;  %v4302_v40 = vrot.slane %v4301_v38, 4 }
0x1d4a   :  { %v4283_v41 = vrot.slane %v4282_v39, 2  ;;  %v4303_v42 = vadd.f32 %v4302_v40, %v4301_v38 }
0x1d4c   :  { %v4284_v43 = vadd.f32 %v4283_v41, %v4282_v39  ;;  %v4304_v44 = vrot.slane %v4303_v42, 2 }
0x1d4e   :  { %v4285_v46 = vrot.slane %v4284_v43, 1  ;;  %v4305_v48 = vadd.f32 %v4304_v44, %v4303_v42  ;;  %v4950_v44 = vld [vmem:[%s6661_s12] ss:$0 sm:$0xff]  ;;  %s6440_s12 = smov [#allocation8]  }
0x1d4f   :  { %s4677_s27 = sshll.u32 %s6440_s12, 4  ;;  %s4678_s27 = int_to_ptr.vmem [resolvable:$true] %s4677_s27 }
0x1d50   :  { %v4306_v45 = vrot.slane %v4305_v48, 1  ;;  %v4286_v47 = vadd.f32 %v4285_v46, %v4284_v43  ;;  %s6360_s4 = scalar_lea.vmem %s4678_s27, 1024  ;;  %p6365_p11 = scmp.lt.s32.totalorder %s4678_s27, %s4678_s27 }
0x1d51   :  { %p6361_p10 = scmp.ne.s32.totalorder %s4678_s27, %s6360_s4  ;;  %p6366_p12 = scmp.lt.s32.totalorder %s6360_s4, %s6360_s4 }
0x1d52   :  { %v4307_v49 = vadd.f32 %v4306_v45, %v4305_v48 }
0x1d53   :  { %p6367_p13 = por %p6366_p12, %p6365_p11 }
0x1d54   :  { %v4308_v50 = vsel %vm598_vm4, %v4286_v47, %v4307_v49 }
0x1d55   :  { %5809 = vmatmul.mubr.f32.vlgmr.msra.gmra.mrb[70].mxu1 %v4308_v50  ;;  %p6368_p0 = pnand %p6367_p13, %p6361_p10 }
0x1e28   :  { %v4391_v62 = vpop.f32.mrb[70].mxu1 }
0x1e29   :  { %v4395_v54 = vmul.f32 0.00048828125, %v4391_v62  ;;  %v5810_v57 = vpop.f32.mrb[71].mxu1 }
0x1e2b   :  { %v4396_v58 = vmul.f32 %v4395_v54, %v4395_v54 }
0x1e2d   :  { %v4398_v59 = vrot.slane %v4396_v58, 7 }
0x1e2f   :  { %v4400_v60 = vsub.f32 %v4395_v54, %v4398_v59 }
0x1e31   :  { %v4401_v61 = vmax.f32 %v4400_v60, 0.0 }
0x1e33   :  { %v4403_v63 = vadd.f32 1e-05, %v4401_v61 }
0x1e35   :  { %6292 = vrsqrt.f32 %v4403_v63 }
0x1e3f   :  { %v6293_v2 = vpop.eup %6292 }
0x1e40   :  { %v4406_v6 = vrot.slane %v6293_v2, 1 }
0x1e42   :  { %v4408_v7 = vmul.f32 %v4406_v6, %v4402_v5 }
0x1e44   :  { %v4409_v8 = vmul.f32 %v4408_v7, %v4395_v54 }
0x1e46   :  { %v4411_v10 = vrot.slane %v4409_v8, 7 }
0x1e48   :  { %v4413_v11 = vsub.f32 %v4402_v5, %v4411_v10 }
0x1e4a   :  { %v4414_v1 = vsel %vm598_vm4, %v4408_v7, %v4413_v11 }
0x1e4b   :  { %5814 = vmatmul.mubr.msk.f32.vlgmr.msra.gmra.mrb[54].mxu0 %vm702_vm6, %v4414_v1 }
0x1e4c   :  { %5817 = vmatpush3.bf16.msra.mxu0 %v6270_v52 }
0x1e4d   :  { %5818 = vmatprep.subr.bf16.mxu0 %v6271_v14 }
0x1e50   :  { %5819 = vmatpush3.bf16.msra.mxu0 %v6271_v14 }
0x1e51   :  { %5820 = vmatprep.subr.bf16.mxu0 %v6272_v19 }
0x1e54   :  { %5821 = vmatpush3.bf16.msra.mxu0 %v6272_v19 }
0x1e55   :  { %5822 = vmatprep.subr.bf16.mxu0 %v6273_v20 }
0x1e58   :  { %5823 = vmatpush3.bf16.msra.mxu0 %v6273_v20 }
0x1e59   :  { %5824 = vmatprep.subr.bf16.mxu0 %v6274_v21 }
0x1e5c   :  { %5825 = vmatpush3.bf16.msra.mxu0 %v6274_v21 }
0x1e5d   :  { %5826 = vmatprep.subr.bf16.mxu0 %v6275_v53 }
0x1e60   :  { %5827 = vmatpush3.bf16.msra.mxu0 %v6275_v53 }
0x1e61   :  { %5828 = vmatprep.subr.bf16.mxu0 %v6276_v22 }
0x1e64   :  { %5829 = vmatpush3.bf16.msra.mxu0 %v6276_v22 }
0x1e65   :  { %5830 = vmatprep.subr.bf16.mxu0 %v6277_v23 }
0x1e68   :  { %5831 = vmatpush3.bf16.msra.mxu0 %v6277_v23 }
0x1f1e   :  { %v4488_v24 = vpop.f32.mrb[54].mxu0 }
0x1f1f   :  { %v4495_v25 = vrot.slane %v4488_v24, %v6768_v55  ;;  %v5815_v27 = vpop.f32.mrb[55].mxu0  ;;  %v4507_v29 = vrot.slane %v4488_v24, %v6770_v56 }
0x1f21   :  { %v4496_v30 = vmul.f32 %v4495_v25, %v7342_v4  ;;  %v4497_v31 = vmul.f32 %v4495_v25, %v7346_v17  ;;  %v4498_v15 = vmul.f32 %v7340_v3, %v4495_v25  ;;  %v4499_v0 = vmul.f32 %v7344_v9, %v4495_v25 }
0x1f22   :  { %v4500_v32 = vmul.f32 %v4495_v25, %v7362_v28  ;;  %v4501_v33 = vmul.f32 %v4495_v25, %v7369_v13  ;;  %v4502_v34 = vmul.f32 %v7359_v26, %v4495_v25  ;;  %v4503_v16 = vmul.f32 %v7367_v12, %v4495_v25 }
0x1f23   :  { %v4508_v55 = vadd.f32 %v4507_v29, %v4496_v30  ;;  %v4509_v35 = vadd.f32 %v4507_v29, %v4497_v31  ;;  %v4510_v18 = vadd.f32 %v4507_v29, %v4498_v15  ;;  %v4511_v56 = vadd.f32 %v4507_v29, %v4499_v0 }
0x1f24   :  { %v4512_v36 = vadd.f32 %v4507_v29, %v4500_v32  ;;  %v4513_v4 = vadd.f32 %v4507_v29, %v4501_v33  ;;  %v4514_v37 = vadd.f32 %v4507_v29, %v4502_v34  ;;  %v4515_v17 = vadd.f32 %v4507_v29, %v4503_v16 }
0x1f25   :  { %v4516_v38 = vmax.f32 %v4508_v55, 0.0  ;;  %v4517_v3 = vmax.f32 %v4509_v35, 0.0  ;;  %v4518_v9 = vmax.f32 %v4510_v18, 0.0  ;;  %v4519_v39 = vmax.f32 %v4511_v56, 0.0 }
0x1f26   :  { %v4520_v28 = vmax.f32 %v4512_v36, 0.0  ;;  %v4521_v40 = vmax.f32 %v4513_v4, 0.0  ;;  %v4522_v13 = vmax.f32 %v4514_v37, 0.0  ;;  %v4523_v41 = vmax.f32 %v4515_v17, 0.0 }
0x1f27   :  { %v4524_v26 = vpack.c.bf16 %v4517_v3, %v4516_v38  ;;  %v4525_v42 = vpack.c.bf16 %v4519_v39, %v4518_v9 }
0x1f28   :  { %v4526_v12 = vpack.c.bf16 %v4521_v40, %v4520_v28  ;;  %v4527_v43 = vpack.c.bf16 %v4523_v41, %v4522_v13 }
0x1f29   :  { %5832 = vmatprep.mubr.bf16.mxu0 %v4524_v26 }
0x1f2a   :  { %5833 = vmatmul.mubr.bf16.vlgmr.msra.gmra.mrb[64].mxu0 %v4525_v42 }
0x1f2b   :  { %5836 = vmatprep.mubr.bf16.mxu0 %v4526_v12 }
0x1f32   :  { %5837 = vmatmul.mubr.bf16.gmra.mrb[68].mxu0 %v4527_v43 }
0x1ffd   :  { %v5834_v46 = vpop.f32.mrb[64].mxu0 }
0x1ffe   :  { %v4642_v48 = vadd.f32 %v5834_v46, %v4950_v44  ;;  %v4633_v45 = vpop.f32.mrb[65].mxu0 }
0x1fff   :  { %v4634_v47 = vadd.f32 %v4950_v44, %v4633_v45  ;;  %v5835_v49 = vpop.f32.mrb[66].mxu0 }
0x2000   :  { %4666 = vst.msk [vmem:[#allocation8 + $0x10] sm:$0xff] %vm455_vm1, %v4642_v48  ;;  %v4645_v50 = vadd.f32 %v5835_v49, %v4950_v44  ;;  %v4636_v51 = vpop.f32.mrb[67].mxu0 }
0x2001   :  { %4664 = vst.msk [vmem:[#allocation8] sm:$0xff] %vm455_vm1, %v4634_v47  ;;  %v4637_v52 = vadd.f32 %v4950_v44, %v4636_v51 }
0x2002   :  { %4667 = vst.msk [vmem:[#allocation8 + $0x18] sm:$0xff] %vm455_vm1, %v4645_v50 }
0x2003   :  { %4665 = vst.msk [vmem:[#allocation8 + $0x8] sm:$0xff] %vm455_vm1, %v4637_v52 }
0x2005   :  { %v5838_v62 = vpop.f32.mrb[68].mxu0 }
0x2006   :  { %v4658_v54 = vadd.f32 %v5838_v62, %v4950_v44  ;;  %v4649_v57 = vpop.f32.mrb[69].mxu0 }
0x2007   :  { %v4650_v58 = vadd.f32 %v4950_v44, %v4649_v57  ;;  %v5839_v59 = vpop.f32.mrb[70].mxu0 }
0x2008   :  { %4670 = vst.msk [vmem:[#allocation8 + $0x30] sm:$0xff] %vm455_vm1, %v4658_v54  ;;  %v4661_v60 = vadd.f32 %v5839_v59, %v4950_v44  ;;  %v4652_v61 = vpop.f32.mrb[71].mxu0 }
0x2009   :  { %4668 = vst.msk [vmem:[#allocation8 + $0x20] sm:$0xff] %vm455_vm1, %v4650_v58  ;;  %v4653_v63 = vadd.f32 %v4950_v44, %v4652_v61 }
0x200a   :  { %4671 = vst.msk [vmem:[#allocation8 + $0x38] sm:$0xff] %vm455_vm1, %v4661_v60 }
0x200b   :  { %4669 = vst.msk [vmem:[#allocation8 + $0x28] sm:$0xff] %vm455_vm1, %v4653_v63 }
0x200c   :  { %6371 = shalt.err (!%p6368_p0)
}
0x200d   :  { %s6372_s9 = scalar_lea.hbm %s6666_s20, 1024 }
0x200e   :  { %p6373_p1 = scmp.ne.s32.totalorder %s6666_s20, %s6372_s9  ;;  %p6376_p2 = scmp.lt.u32.totalorder %s6372_s9, %s6666_s20 }
0x2010   :  { %p6378_p3 = pnand %p6376_p2, %p6373_p1 }
0x2012   :  { %6381 = shalt.err (!%p6378_p3)
}
0x2013   :  { %s6441_s13 = smov 128   ;;  %s6442_s17 = smov 8  }
0x2014   :  { %4683 = dma.vmem_to_hbm [thread:$0]  %s4678_s27, 1024, %s6666_s20, [#allocation4], %s6441_s13, %s6441_s13, %s6442_s17  }
0x2015   :  { %6386 = dma.done.wait [#allocation4], 1024  }
0x2016   :  { %6387 = vsyncadd [#allocation4], 4294966272 }
0x2017   :  { %4687 = vsyncpa [#allocation3], 1 }
0x2018   :  { %4688 = vsyncpa [#allocation6], 1 }
0x2019   :  { %4689 = vsyncpa [#allocation4], 1 }

</bundles_post_ra>
